<compile_context>
chip_gen: v7x
topology: tpu7x:2x2x1
jax: 0.10.0
libtpu: 0.0.40
codegen_flags: <defaults>
</compile_context>

<pallas_src>
import functools

import jax
import jax.numpy as jnp
from jax.experimental import pallas as pl
from jax.experimental.pallas import tpu as pltpu

_EPS = 1e-5
_LANE = 128  # TPU lane width: channel dims padded to this


# ----------------------------- helpers ---------------------------------------


def _round_up(x, m):
    return (x + m - 1) // m * m


def _pad_axis(a, axis, target):
    if a.shape[axis] == target:
        return a
    cfg = [(0, 0)] * a.ndim
    cfg[axis] = (0, target - a.shape[axis])
    return jnp.pad(a, cfg)


def _space_to_depth(x_nhwc, s):
    """(N,H,W,C) -> (N,H/s,W/s,s*s*C), channel order (p, q, c)."""
    n, h, w, c = x_nhwc.shape
    x = x_nhwc.reshape(n, h // s, s, w // s, s, c)
    x = x.transpose(0, 1, 3, 2, 4, 5)
    return x.reshape(n, h // s, w // s, s * s * c)


def _vmem_limit_bytes():
    """Generation-aware scoped-VMEM budget (~3/4 of physical, capped)."""
    try:
        info = pltpu.get_tpu_info()
        cap = int(getattr(info, "vmem_capacity_bytes", 0) or 0)
        if cap <= 0:
            cap = 64 * 1024 * 1024
    except Exception:
        cap = 64 * 1024 * 1024  # conservative fallback (-> 48 MiB limit)
    return min((cap * 3) // 4, 96 * 1024 * 1024)


# ----------------------------- fused kernel ----------------------------------


def _make_block_kernel(*, H1, W1, C1, KH, KW, PT, PB, HO, WO, CO, sc_cin,
                       equal_inout, compute_dtype):
    """Builds the fused BasicBlock kernel (one batch image per grid step)."""
    Hp1, Wp1 = H1 + PT + PB, W1 + PT + PB

    def kernel(*refs):
        if equal_inout:
            (x_ref, s1_ref, b1_ref, w1_ref, s2_ref, b2_ref, w2_ref,
             o_ref, ap1, ap2) = refs
            wsc_ref = None
        else:
            (x_ref, s1_ref, b1_ref, w1_ref, wsc_ref, s2_ref, b2_ref, w2_ref,
             o_ref, ap1, ap2) = refs

        # ---- BN1 + ReLU fused on the input tile (f32 math on the VPU) ----
        x = x_ref[0].astype(jnp.float32)                          # (H1, W1, C1)
        a = jnp.maximum(x * s1_ref[...].reshape(1, 1, C1)
                        + b1_ref[...].reshape(1, 1, C1), 0.0)
        a_c = a.astype(compute_dtype)

        # ---- conv1 halo scratch: zero only the constant border, write interior ----
        zr1 = jnp.zeros((1, Wp1, C1), compute_dtype)
        zc1 = jnp.zeros((Hp1, 1, C1), compute_dtype)
        ap1[pl.ds(0, 1), :, :] = zr1
        ap1[:, pl.ds(0, 1), :] = zc1
        if PB:
            ap1[pl.ds(Hp1 - 1, 1), :, :] = zr1
            ap1[:, pl.ds(Wp1 - 1, 1), :] = zc1
        ap1[pl.ds(PT, H1), pl.ds(PT, W1), :] = a_c

        # ---- conv1: KH*KW accumulating MXU matmuls (K = C1 per tap) ----
        y1 = None
        for t in range(KH * KW):
            kh, kw = divmod(t, KW)
            a_tap = ap1[pl.ds(kh, HO), pl.ds(kw, WO), :].reshape(HO * WO, C1)
            d = jnp.dot(a_tap, w1_ref[t], preferred_element_type=jnp.float32)
            y1 = d if y1 is None else y1 + d                      # (HO*WO, CO) f32

        # ---- BN2 + ReLU (never leaves VMEM) ----
        a2 = jnp.maximum(y1 * s2_ref[...] + b2_ref[...], 0.0)
        # TODO(synk): training-mode dropout (pltpu.prng_*) not implemented; eval semantics.
        a2_c = a2.astype(compute_dtype).reshape(HO, WO, CO)

        # ---- conv2 halo scratch (border-only zeroing again) ----
        zr2 = jnp.zeros((1, WO + 2, CO), compute_dtype)
        zc2 = jnp.zeros((HO + 2, 1, CO), compute_dtype)
        ap2[pl.ds(0, 1), :, :] = zr2
        ap2[pl.ds(HO + 1, 1), :, :] = zr2
        ap2[:, pl.ds(0, 1), :] = zc2
        ap2[:, pl.ds(WO + 1, 1), :] = zc2
        ap2[pl.ds(1, HO), pl.ds(1, WO), :] = a2_c

        # ---- residual folded into the conv2 accumulator init ----
        if equal_inout:
            acc = x.reshape(HO * WO, CO)                          # identity residual
        else:
            # first sc_cin channels of the (space-to-depth) activation are exactly
            # the stride-s grid samples the 1x1/stride shortcut conv needs.
            a_sc = a_c[:, :, :sc_cin].reshape(H1 * W1, sc_cin)
            acc = jnp.dot(a_sc, wsc_ref[...],
                          preferred_element_type=jnp.float32)     # (HO*WO, CO) f32

        # ---- conv2: 9 accumulating matmuls on top of the residual ----
        for t in range(9):
            kh, kw = divmod(t, 3)
            a_tap = ap2[pl.ds(kh, HO), pl.ds(kw, WO), :].reshape(HO * WO, CO)
            acc = acc + jnp.dot(a_tap, w2_ref[t],
                                preferred_element_type=jnp.float32)

        o_ref[0] = acc.reshape(HO, WO, CO).astype(o_ref.dtype)

    return kernel


# ----------------------------- public wrapper ---------------------------------


@functools.partial(jax.jit,
                   static_argnames=("stride", "drop_rate", "training",
                                    "compute_dtype"))
def basic_block_forward(x_nchw, params, *, stride, drop_rate=0.0,
                        training=False, compute_dtype=jnp.bfloat16):
    """Fused Pallas forward of BasicBlock.  Input/output NCHW (PyTorch layout)."""
    if training and drop_rate > 0.0:
        # TODO(synk): training-mode dropout not implemented (needs pltpu PRNG).
        raise NotImplementedError("training-mode dropout not implemented")

    equal_inout = "shortcut_w" not in params
    n, cin, h, w = x_nchw.shape
    cout = params["conv1_w"].shape[-1]
    if stride not in (1, 2):
        raise NotImplementedError("stride must be 1 or 2 (WideResNet uses only these)")
    assert h % stride == 0 and w % stride == 0
    if equal_inout:
        assert stride == 1 and cin == cout

    cpin = _round_up(cin, _LANE)
    cpout = _round_up(cout, _LANE)

    # Fold BN (eval mode) into per-channel scale/bias, zero-padded to lane width.
    def _fold_bn(bn, cp):
        s = bn["gamma"] / jnp.sqrt(bn["var"] + _EPS)
        b = bn["beta"] - bn["mean"] * s
        return (_pad_axis(s.astype(jnp.float32), 0, cp),
                _pad_axis(b.astype(jnp.float32), 0, cp))

    s1, b1 = _fold_bn(params["bn1"], cpin)
    s2, b2 = _fold_bn(params["bn2"], cpout)

    # Channel-padded NHWC input (lane-dense), carried in compute_dtype to halve
    # the per-step DMA; BN math is done in f32 inside the kernel.
    # TODO(synk): for chained blocks, keep activations in padded-NHWC/compute_dtype
    # between blocks instead of the per-call NCHW round-trip.
    x_nhwc = _pad_axis(jnp.transpose(x_nchw, (0, 2, 3, 1)), 3, cpin)
    x_nhwc = x_nhwc.astype(compute_dtype)

    w1p = _pad_axis(_pad_axis(params["conv1_w"], 2, cpin), 3, cpout)   # (3,3,Cpi,Cpo)
    w2p = _pad_axis(_pad_axis(params["conv2_w"], 2, cpout), 3, cpout)  # (3,3,Cpo,Cpo)

    if stride == 1:
        x_in = x_nhwc
        H1, W1, C1, KH, KW, PT, PB = h, w, cpin, 3, 3, 1, 1
        HO, WO = h, w
        s1v, b1v = s1, b1
        w1m = w1p.reshape(9, cpin, cpout)
    else:
        # Fold stride-2 into space-to-depth: 3x3/stride-2 conv == 2x2/stride-1
        # conv over (H/2, W/2, 4*Cpin) with rearranged weights
        # (kh = 2*di + p - 1, kw = 2*dj + q - 1; out-of-range taps get zero weight).
        x_in = _space_to_depth(x_nhwc, 2)
        H1, W1, C1, KH, KW, PT, PB = h // 2, w // 2, 4 * cpin, 2, 2, 1, 0
        HO, WO = h // 2, w // 2
        s1v, b1v = jnp.tile(s1, 4), jnp.tile(b1, 4)
        wz = jnp.pad(w1p, ((1, 0), (1, 0), (0, 0), (0, 0)))  # index (kh+1, kw+1)
        w1m = (wz.reshape(2, 2, 2, 2, cpin, cpout)            # (di, p, dj, q, c, co)
                 .transpose(0, 2, 1, 3, 4, 5)                 # (di, dj, p, q, c, co)
                 .reshape(KH * KW, C1, cpout))
    w2m = w2p.reshape(9, cpout, cpout)

    kernel = _make_block_kernel(
        H1=H1, W1=W1, C1=C1, KH=KH, KW=KW, PT=PT, PB=PB, HO=HO, WO=WO,
        CO=cpout, sc_cin=cpin, equal_inout=equal_inout,
        compute_dtype=compute_dtype)

    in_specs = [pl.BlockSpec((1, H1, W1, C1), lambda nn: (nn, 0, 0, 0)),
                pl.BlockSpec((1, C1), lambda nn: (0, 0)),
                pl.BlockSpec((1, C1), lambda nn: (0, 0)),
                pl.BlockSpec((KH * KW, C1, cpout), lambda nn: (0, 0, 0))]
    args = [x_in, s1v.reshape(1, C1), b1v.reshape(1, C1),
            w1m.astype(compute_dtype)]
    if not equal_inout:
        wscm = _pad_axis(_pad_axis(params["shortcut_w"], 0, cpin), 1, cpout)
        in_specs.append(pl.BlockSpec((cpin, cpout), lambda nn: (0, 0)))
        args.append(wscm.astype(compute_dtype))
    in_specs += [pl.BlockSpec((1, cpout), lambda nn: (0, 0)),
                 pl.BlockSpec((1, cpout), lambda nn: (0, 0)),
                 pl.BlockSpec((9, cpout, cpout), lambda nn: (0, 0, 0))]
    args += [s2.reshape(1, cpout), b2.reshape(1, cpout),
             w2m.astype(compute_dtype)]

    out = pl.pallas_call(
        kernel,
        out_shape=jax.ShapeDtypeStruct((n, HO, WO, cpout), compute_dtype),
        grid_spec=pltpu.PrefetchScalarGridSpec(
            num_scalar_prefetch=0,
            grid=(n,),
            in_specs=in_specs,
            out_specs=pl.BlockSpec((1, HO, WO, cpout),
                                   lambda nn: (nn, 0, 0, 0)),
            scratch_shapes=[
                pltpu.VMEM((H1 + PT + PB, W1 + PT + PB, C1), compute_dtype),
                pltpu.VMEM((HO + 2, WO + 2, cpout), compute_dtype),
            ]),
        compiler_params=pltpu.CompilerParams(
            dimension_semantics=("parallel",),
            vmem_limit_bytes=_vmem_limit_bytes()),
    )(*args)

    # Drop channel padding, return NCHW to match the PyTorch module.
    out = jnp.transpose(out[..., :cout], (0, 3, 1, 2))
    return out.astype(x_nchw.dtype)


# ----------------------------- params & reference -----------------------------


def init_params(key, in_planes, out_planes):
    equal_inout = in_planes == out_planes
    ks = jax.random.split(key, 5)

    def bn_params(k, c):
        k1, k2, k3, k4 = jax.random.split(k, 4)
        return dict(
            gamma=jax.random.uniform(k1, (c,), jnp.float32, 0.5, 1.5),
            beta=0.1 * jax.random.normal(k2, (c,), jnp.float32),
            mean=0.1 * jax.random.normal(k3, (c,), jnp.float32),
            var=jax.random.uniform(k4, (c,), jnp.float32, 0.5, 1.5),
        )

    params = dict(
        bn1=bn_params(ks[0], in_planes),
        conv1_w=jax.random.normal(ks[1], (3, 3, in_planes, out_planes), jnp.float32)
        * (2.0 / (9 * in_planes)) ** 0.5,
        bn2=bn_params(ks[2], out_planes),
        conv2_w=jax.random.normal(ks[3], (3, 3, out_planes, out_planes), jnp.float32)
        * (2.0 / (9 * out_planes)) ** 0.5,
    )
    if not equal_inout:
        params["shortcut_w"] = (
            jax.random.normal(ks[4], (in_planes, out_planes), jnp.float32)
            * (2.0 / in_planes) ** 0.5
        )
    return params


def reference_forward(x_nchw, params, *, stride):
    """Plain-JAX reference (mirrors the PyTorch module in eval mode), NCHW."""
    def bnrelu(x, p):
        s = p["gamma"] / jnp.sqrt(p["var"] + _EPS)
        b = p["beta"] - p["mean"] * s
        return jnp.maximum(x * s[None, :, None, None] + b[None, :, None, None], 0.0)

    def conv(x, w_hwio, s, pad):
        return jax.lax.conv_general_dilated(
            x, w_hwio, (s, s), [(pad, pad), (pad, pad)],
            dimension_numbers=("NCHW", "HWIO", "NCHW"))

    equal_inout = "shortcut_w" not in params
    a = bnrelu(x_nchw, params["bn1"])
    out = conv(a, params["conv1_w"], stride, 1)
    out = bnrelu(out, params["bn2"])
    out = conv(out, params["conv2_w"], 1, 1)
    if equal_inout:
        sc = x_nchw
    else:
        w = params["shortcut_w"]
        sc = conv(a, w.reshape(1, 1, *w.shape), stride, 0)
    return sc + out


# ----------------------------- main -------------------------------------------


if __name__ == "__main__":
    key = jax.random.PRNGKey(0)
    kx, kp1, kp2, kp3 = jax.random.split(key, 4)

    x = jax.random.normal(kx, (2, 4, 16, 16), jnp.float32)   # NCHW

    cases = [
        ("in!=out stride=2", init_params(kp1, 4, 8), 2, (2, 8, 8, 8)),
        ("in==out stride=1", init_params(kp2, 4, 4), 1, (2, 4, 16, 16)),
        ("in!=out stride=1", init_params(kp3, 4, 8), 1, (2, 8, 16, 16)),
    ]

    for name, params, stride, expect_shape in cases:
        ref = reference_forward(x, params, stride=stride)

        # f32 MXU path: tight correctness check.
        out32 = jax.block_until_ready(
            basic_block_forward(x, params, stride=stride,
                                compute_dtype=jnp.float32))
        assert out32.shape == expect_shape, (name, out32.shape)
        err32 = float(jnp.max(jnp.abs(out32 - ref)))
        assert jnp.allclose(out32, ref, atol=2e-3, rtol=2e-3), (name, err32)

        # bf16 MXU path (default / fast): looser check.
        out16 = jax.block_until_ready(
            basic_block_forward(x, params, stride=stride))
        assert out16.shape == expect_shape, (name, out16.shape)
        rel = float(jnp.max(jnp.abs(out16 - ref)) /
                    (jnp.max(jnp.abs(ref)) + 1e-6))
        assert rel < 8e-2, (name, rel)

    print("KERNEL_OK")
</pallas_src>

<mosaic_0001>
module attributes {stable_mosaic.version = 11 : i64} {
  func.func @kernel(%arg0: i32, %arg1: memref<1x8x8x512xf32, #tpu.memory_space<vmem>>, %arg2: memref<1x512xf32, #tpu.memory_space<vmem>>, %arg3: memref<1x512xf32, #tpu.memory_space<vmem>>, %arg4: memref<4x512x128xf32, #tpu.memory_space<vmem>>, %arg5: memref<128x128xf32, #tpu.memory_space<vmem>>, %arg6: memref<1x128xf32, #tpu.memory_space<vmem>>, %arg7: memref<1x128xf32, #tpu.memory_space<vmem>>, %arg8: memref<9x128x128xf32, #tpu.memory_space<vmem>>, %arg9: memref<1x8x8x128xf32, #tpu.memory_space<vmem>>, %arg10: memref<9x9x512xf32, #tpu.memory_space<vmem>>, %arg11: memref<10x10x128xf32, #tpu.memory_space<vmem>>) attributes {dimension_semantics = [#tpu.dimension_semantics<parallel>], iteration_bounds = array<i64: 2>, scalar_prefetch = 0 : i64, scratch_operands = 2 : i64, tpu.core_type = #tpu.core_type<tc>, window_params = [{transform_indices = @transform_0, window_bounds = array<i64: 1, 8, 8, 512>}, {pipeline_mode = #tpu.pipeline_mode<synchronous>, transform_indices = @transform_1, window_bounds = array<i64: 1, 512>}, {pipeline_mode = #tpu.pipeline_mode<synchronous>, transform_indices = @transform_2, window_bounds = array<i64: 1, 512>}, {pipeline_mode = #tpu.pipeline_mode<synchronous>, transform_indices = @transform_3, window_bounds = array<i64: 4, 512, 128>}, {pipeline_mode = #tpu.pipeline_mode<synchronous>, transform_indices = @transform_4, window_bounds = array<i64: 128, 128>}, {pipeline_mode = #tpu.pipeline_mode<synchronous>, transform_indices = @transform_5, window_bounds = array<i64: 1, 128>}, {pipeline_mode = #tpu.pipeline_mode<synchronous>, transform_indices = @transform_6, window_bounds = array<i64: 1, 128>}, {pipeline_mode = #tpu.pipeline_mode<synchronous>, transform_indices = @transform_7, window_bounds = array<i64: 9, 128, 128>}, {transform_indices = @transform_8, window_bounds = array<i64: 1, 8, 8, 128>}]} {
    %c0 = arith.constant 0 : index
    %c0_0 = arith.constant 0 : index
    %c0_1 = arith.constant 0 : index
    %c0_2 = arith.constant 0 : index
    %0 = vector.load %arg1[%c0, %c0_0, %c0_1, %c0_2] : memref<1x8x8x512xf32, #tpu.memory_space<vmem>>, vector<1x8x8x512xf32>
    %1 = vector.shape_cast %0 : vector<1x8x8x512xf32> to vector<8x8x512xf32>
    %c0_3 = arith.constant 0 : index
    %c0_4 = arith.constant 0 : index
    %2 = vector.load %arg2[%c0_3, %c0_4] : memref<1x512xf32, #tpu.memory_space<vmem>>, vector<1x512xf32>
    %3 = vector.shape_cast %2 : vector<1x512xf32> to vector<1x1x512xf32>
    %4 = vector.broadcast %3 : vector<1x1x512xf32> to vector<8x8x512xf32>
    %5 = arith.mulf %1, %4 : vector<8x8x512xf32>
    %c0_5 = arith.constant 0 : index
    %c0_6 = arith.constant 0 : index
    %6 = vector.load %arg3[%c0_5, %c0_6] : memref<1x512xf32, #tpu.memory_space<vmem>>, vector<1x512xf32>
    %7 = vector.shape_cast %6 : vector<1x512xf32> to vector<1x1x512xf32>
    %8 = vector.broadcast %7 : vector<1x1x512xf32> to vector<8x8x512xf32>
    %9 = arith.addf %5, %8 : vector<8x8x512xf32>
    %cst = arith.constant 0.000000e+00 : f32
    %10 = vector.broadcast %cst : f32 to vector<8x8x512xf32>
    %11 = arith.maximumf %9, %10 : vector<8x8x512xf32>
    %cst_7 = arith.constant 0.000000e+00 : f32
    %12 = vector.broadcast %cst_7 : f32 to vector<1x9x512xf32>
    %cst_8 = arith.constant 0.000000e+00 : f32
    %13 = vector.broadcast %cst_8 : f32 to vector<9x1x512xf32>
    %c0_9 = arith.constant 0 : index
    %c0_10 = arith.constant 0 : index
    %c0_11 = arith.constant 0 : index
    %14 = vector.load %arg10[%c0_9, %c0_10, %c0_11] : memref<9x9x512xf32, #tpu.memory_space<vmem>>, vector<1x9x512xf32>
    tpu.vector_store %arg10[%c0_9, %c0_10, %c0_11], %12 {strides = array<i32>} : memref<9x9x512xf32, #tpu.memory_space<vmem>>, vector<1x9x512xf32>,
    %c0_12 = arith.constant 0 : index
    %c0_13 = arith.constant 0 : index
    %c0_14 = arith.constant 0 : index
    %15 = vector.load %arg10[%c0_12, %c0_13, %c0_14] : memref<9x9x512xf32, #tpu.memory_space<vmem>>, vector<9x1x512xf32>
    tpu.vector_store %arg10[%c0_12, %c0_13, %c0_14], %13 {strides = array<i32>} : memref<9x9x512xf32, #tpu.memory_space<vmem>>, vector<9x1x512xf32>,
    %c1 = arith.constant 1 : index
    %c1_15 = arith.constant 1 : index
    %c0_16 = arith.constant 0 : index
    %16 = vector.load %arg10[%c1, %c1_15, %c0_16] : memref<9x9x512xf32, #tpu.memory_space<vmem>>, vector<8x8x512xf32>
    tpu.vector_store %arg10[%c1, %c1_15, %c0_16], %11 {strides = array<i32>} : memref<9x9x512xf32, #tpu.memory_space<vmem>>, vector<8x8x512xf32>,
    %c0_17 = arith.constant 0 : index
    %c0_18 = arith.constant 0 : index
    %c0_19 = arith.constant 0 : index
    %17 = vector.load %arg10[%c0_17, %c0_18, %c0_19] : memref<9x9x512xf32, #tpu.memory_space<vmem>>, vector<8x8x512xf32>
    %18 = vector.shape_cast %17 : vector<8x8x512xf32> to vector<64x512xf32>
    %c0_20 = arith.constant 0 : index
    %c0_21 = arith.constant 0 : index
    %c0_22 = arith.constant 0 : index
    %19 = vector.load %arg4[%c0_20, %c0_21, %c0_22] : memref<4x512x128xf32, #tpu.memory_space<vmem>>, vector<1x512x128xf32>
    %20 = vector.shape_cast %19 : vector<1x512x128xf32> to vector<512x128xf32>
    %cst_23 = arith.constant dense<0.000000e+00> : vector<64x128xf32>
    %21 = tpu.matmul %18, %20, %cst_23 {dimension_numbers = #tpu.dot_dimension_numbers<[1], [0], [0], [1], [0, 0, 1, 1], [], []>} : vector<64x512xf32>, vector<512x128xf32>, vector<64x128xf32> -> vector<64x128xf32>
    %c0_24 = arith.constant 0 : index
    %c1_25 = arith.constant 1 : index
    %c0_26 = arith.constant 0 : index
    %22 = vector.load %arg10[%c0_24, %c1_25, %c0_26] : memref<9x9x512xf32, #tpu.memory_space<vmem>>, vector<8x8x512xf32>
    %23 = vector.shape_cast %22 : vector<8x8x512xf32> to vector<64x512xf32>
    %c1_27 = arith.constant 1 : index
    %c0_28 = arith.constant 0 : index
    %c0_29 = arith.constant 0 : index
    %24 = vector.load %arg4[%c1_27, %c0_28, %c0_29] : memref<4x512x128xf32, #tpu.memory_space<vmem>>, vector<1x512x128xf32>
    %25 = vector.shape_cast %24 : vector<1x512x128xf32> to vector<512x128xf32>
    %cst_30 = arith.constant dense<0.000000e+00> : vector<64x128xf32>
    %26 = tpu.matmul %23, %25, %cst_30 {dimension_numbers = #tpu.dot_dimension_numbers<[1], [0], [0], [1], [0, 0, 1, 1], [], []>} : vector<64x512xf32>, vector<512x128xf32>, vector<64x128xf32> -> vector<64x128xf32>
    %27 = arith.addf %21, %26 : vector<64x128xf32>
    %c1_31 = arith.constant 1 : index
    %c0_32 = arith.constant 0 : index
    %c0_33 = arith.constant 0 : index
    %28 = vector.load %arg10[%c1_31, %c0_32, %c0_33] : memref<9x9x512xf32, #tpu.memory_space<vmem>>, vector<8x8x512xf32>
    %29 = vector.shape_cast %28 : vector<8x8x512xf32> to vector<64x512xf32>
    %c2 = arith.constant 2 : index
    %c0_34 = arith.constant 0 : index
    %c0_35 = arith.constant 0 : index
    %30 = vector.load %arg4[%c2, %c0_34, %c0_35] : memref<4x512x128xf32, #tpu.memory_space<vmem>>, vector<1x512x128xf32>
    %31 = vector.shape_cast %30 : vector<1x512x128xf32> to vector<512x128xf32>
    %cst_36 = arith.constant dense<0.000000e+00> : vector<64x128xf32>
    %32 = tpu.matmul %29, %31, %cst_36 {dimension_numbers = #tpu.dot_dimension_numbers<[1], [0], [0], [1], [0, 0, 1, 1], [], []>} : vector<64x512xf32>, vector<512x128xf32>, vector<64x128xf32> -> vector<64x128xf32>
    %33 = arith.addf %27, %32 : vector<64x128xf32>
    %c1_37 = arith.constant 1 : index
    %c1_38 = arith.constant 1 : index
    %c0_39 = arith.constant 0 : index
    %34 = vector.load %arg10[%c1_37, %c1_38, %c0_39] : memref<9x9x512xf32, #tpu.memory_space<vmem>>, vector<8x8x512xf32>
    %35 = vector.shape_cast %34 : vector<8x8x512xf32> to vector<64x512xf32>
    %c3 = arith.constant 3 : index
    %c0_40 = arith.constant 0 : index
    %c0_41 = arith.constant 0 : index
    %36 = vector.load %arg4[%c3, %c0_40, %c0_41] : memref<4x512x128xf32, #tpu.memory_space<vmem>>, vector<1x512x128xf32>
    %37 = vector.shape_cast %36 : vector<1x512x128xf32> to vector<512x128xf32>
    %cst_42 = arith.constant dense<0.000000e+00> : vector<64x128xf32>
    %38 = tpu.matmul %35, %37, %cst_42 {dimension_numbers = #tpu.dot_dimension_numbers<[1], [0], [0], [1], [0, 0, 1, 1], [], []>} : vector<64x512xf32>, vector<512x128xf32>, vector<64x128xf32> -> vector<64x128xf32>
    %39 = arith.addf %33, %38 : vector<64x128xf32>
    %c0_43 = arith.constant 0 : index
    %c0_44 = arith.constant 0 : index
    %40 = vector.load %arg6[%c0_43, %c0_44] : memref<1x128xf32, #tpu.memory_space<vmem>>, vector<1x128xf32>
    %41 = vector.broadcast %40 : vector<1x128xf32> to vector<64x128xf32>
    %42 = arith.mulf %39, %41 : vector<64x128xf32>
    %c0_45 = arith.constant 0 : index
    %c0_46 = arith.constant 0 : index
    %43 = vector.load %arg7[%c0_45, %c0_46] : memref<1x128xf32, #tpu.memory_space<vmem>>, vector<1x128xf32>
    %44 = vector.broadcast %43 : vector<1x128xf32> to vector<64x128xf32>
    %45 = arith.addf %42, %44 : vector<64x128xf32>
    %cst_47 = arith.constant 0.000000e+00 : f32
    %46 = vector.broadcast %cst_47 : f32 to vector<64x128xf32>
    %47 = arith.maximumf %45, %46 : vector<64x128xf32>
    %48 = vector.shape_cast %47 : vector<64x128xf32> to vector<8x8x128xf32>
    %cst_48 = arith.constant 0.000000e+00 : f32
    %49 = vector.broadcast %cst_48 : f32 to vector<1x10x128xf32>
    %cst_49 = arith.constant 0.000000e+00 : f32
    %50 = vector.broadcast %cst_49 : f32 to vector<10x1x128xf32>
    %c0_50 = arith.constant 0 : index
    %c0_51 = arith.constant 0 : index
    %c0_52 = arith.constant 0 : index
    %51 = vector.load %arg11[%c0_50, %c0_51, %c0_52] : memref<10x10x128xf32, #tpu.memory_space<vmem>>, vector<1x10x128xf32>
    tpu.vector_store %arg11[%c0_50, %c0_51, %c0_52], %49 {strides = array<i32>} : memref<10x10x128xf32, #tpu.memory_space<vmem>>, vector<1x10x128xf32>,
    %c9 = arith.constant 9 : index
    %c0_53 = arith.constant 0 : index
    %c0_54 = arith.constant 0 : index
    %52 = vector.load %arg11[%c9, %c0_53, %c0_54] : memref<10x10x128xf32, #tpu.memory_space<vmem>>, vector<1x10x128xf32>
    tpu.vector_store %arg11[%c9, %c0_53, %c0_54], %49 {strides = array<i32>} : memref<10x10x128xf32, #tpu.memory_space<vmem>>, vector<1x10x128xf32>,
    %c0_55 = arith.constant 0 : index
    %c0_56 = arith.constant 0 : index
    %c0_57 = arith.constant 0 : index
    %53 = vector.load %arg11[%c0_55, %c0_56, %c0_57] : memref<10x10x128xf32, #tpu.memory_space<vmem>>, vector<10x1x128xf32>
    tpu.vector_store %arg11[%c0_55, %c0_56, %c0_57], %50 {strides = array<i32>} : memref<10x10x128xf32, #tpu.memory_space<vmem>>, vector<10x1x128xf32>,
    %c0_58 = arith.constant 0 : index
    %c9_59 = arith.constant 9 : index
    %c0_60 = arith.constant 0 : index
    %54 = vector.load %arg11[%c0_58, %c9_59, %c0_60] : memref<10x10x128xf32, #tpu.memory_space<vmem>>, vector<10x1x128xf32>
    tpu.vector_store %arg11[%c0_58, %c9_59, %c0_60], %50 {strides = array<i32>} : memref<10x10x128xf32, #tpu.memory_space<vmem>>, vector<10x1x128xf32>,
    %c1_61 = arith.constant 1 : index
    %c1_62 = arith.constant 1 : index
    %c0_63 = arith.constant 0 : index
    %55 = vector.load %arg11[%c1_61, %c1_62, %c0_63] : memref<10x10x128xf32, #tpu.memory_space<vmem>>, vector<8x8x128xf32>
    tpu.vector_store %arg11[%c1_61, %c1_62, %c0_63], %48 {strides = array<i32>} : memref<10x10x128xf32, #tpu.memory_space<vmem>>, vector<8x8x128xf32>,
    %56 = vector.extract_strided_slice %11 {offsets = [0, 0, 0], sizes = [8, 8, 128], strides = [1, 1, 1]} : vector<8x8x512xf32> to vector<8x8x128xf32>
    %57 = vector.shape_cast %56 : vector<8x8x128xf32> to vector<64x128xf32>
    %c0_64 = arith.constant 0 : index
    %c0_65 = arith.constant 0 : index
    %58 = vector.load %arg5[%c0_64, %c0_65] : memref<128x128xf32, #tpu.memory_space<vmem>>, vector<128x128xf32>
    %cst_66 = arith.constant dense<0.000000e+00> : vector<64x128xf32>
    %59 = tpu.matmul %57, %58, %cst_66 {dimension_numbers = #tpu.dot_dimension_numbers<[1], [0], [0], [1], [0, 0, 1, 1], [], []>} : vector<64x128xf32>, vector<128x128xf32>, vector<64x128xf32> -> vector<64x128xf32>
    %c0_67 = arith.constant 0 : index
    %c0_68 = arith.constant 0 : index
    %c0_69 = arith.constant 0 : index
    %60 = vector.load %arg11[%c0_67, %c0_68, %c0_69] : memref<10x10x128xf32, #tpu.memory_space<vmem>>, vector<8x8x128xf32>
    %61 = vector.shape_cast %60 : vector<8x8x128xf32> to vector<64x128xf32>
    %c0_70 = arith.constant 0 : index
    %c0_71 = arith.constant 0 : index
    %c0_72 = arith.constant 0 : index
    %62 = vector.load %arg8[%c0_70, %c0_71, %c0_72] : memref<9x128x128xf32, #tpu.memory_space<vmem>>, vector<1x128x128xf32>
    %63 = vector.shape_cast %62 : vector<1x128x128xf32> to vector<128x128xf32>
    %cst_73 = arith.constant dense<0.000000e+00> : vector<64x128xf32>
    %64 = tpu.matmul %61, %63, %cst_73 {dimension_numbers = #tpu.dot_dimension_numbers<[1], [0], [0], [1], [0, 0, 1, 1], [], []>} : vector<64x128xf32>, vector<128x128xf32>, vector<64x128xf32> -> vector<64x128xf32>
    %65 = arith.addf %59, %64 : vector<64x128xf32>
    %c0_74 = arith.constant 0 : index
    %c1_75 = arith.constant 1 : index
    %c0_76 = arith.constant 0 : index
    %66 = vector.load %arg11[%c0_74, %c1_75, %c0_76] : memref<10x10x128xf32, #tpu.memory_space<vmem>>, vector<8x8x128xf32>
    %67 = vector.shape_cast %66 : vector<8x8x128xf32> to vector<64x128xf32>
    %c1_77 = arith.constant 1 : index
    %c0_78 = arith.constant 0 : index
    %c0_79 = arith.constant 0 : index
    %68 = vector.load %arg8[%c1_77, %c0_78, %c0_79] : memref<9x128x128xf32, #tpu.memory_space<vmem>>, vector<1x128x128xf32>
    %69 = vector.shape_cast %68 : vector<1x128x128xf32> to vector<128x128xf32>
    %cst_80 = arith.constant dense<0.000000e+00> : vector<64x128xf32>
    %70 = tpu.matmul %67, %69, %cst_80 {dimension_numbers = #tpu.dot_dimension_numbers<[1], [0], [0], [1], [0, 0, 1, 1], [], []>} : vector<64x128xf32>, vector<128x128xf32>, vector<64x128xf32> -> vector<64x128xf32>
    %71 = arith.addf %65, %70 : vector<64x128xf32>
    %c0_81 = arith.constant 0 : index
    %c2_82 = arith.constant 2 : index
    %c0_83 = arith.constant 0 : index
    %72 = vector.load %arg11[%c0_81, %c2_82, %c0_83] : memref<10x10x128xf32, #tpu.memory_space<vmem>>, vector<8x8x128xf32>
    %73 = vector.shape_cast %72 : vector<8x8x128xf32> to vector<64x128xf32>
    %c2_84 = arith.constant 2 : index
    %c0_85 = arith.constant 0 : index
    %c0_86 = arith.constant 0 : index
    %74 = vector.load %arg8[%c2_84, %c0_85, %c0_86] : memref<9x128x128xf32, #tpu.memory_space<vmem>>, vector<1x128x128xf32>
    %75 = vector.shape_cast %74 : vector<1x128x128xf32> to vector<128x128xf32>
    %cst_87 = arith.constant dense<0.000000e+00> : vector<64x128xf32>
    %76 = tpu.matmul %73, %75, %cst_87 {dimension_numbers = #tpu.dot_dimension_numbers<[1], [0], [0], [1], [0, 0, 1, 1], [], []>} : vector<64x128xf32>, vector<128x128xf32>, vector<64x128xf32> -> vector<64x128xf32>
    %77 = arith.addf %71, %76 : vector<64x128xf32>
    %c1_88 = arith.constant 1 : index
    %c0_89 = arith.constant 0 : index
    %c0_90 = arith.constant 0 : index
    %78 = vector.load %arg11[%c1_88, %c0_89, %c0_90] : memref<10x10x128xf32, #tpu.memory_space<vmem>>, vector<8x8x128xf32>
    %79 = vector.shape_cast %78 : vector<8x8x128xf32> to vector<64x128xf32>
    %c3_91 = arith.constant 3 : index
    %c0_92 = arith.constant 0 : index
    %c0_93 = arith.constant 0 : index
    %80 = vector.load %arg8[%c3_91, %c0_92, %c0_93] : memref<9x128x128xf32, #tpu.memory_space<vmem>>, vector<1x128x128xf32>
    %81 = vector.shape_cast %80 : vector<1x128x128xf32> to vector<128x128xf32>
    %cst_94 = arith.constant dense<0.000000e+00> : vector<64x128xf32>
    %82 = tpu.matmul %79, %81, %cst_94 {dimension_numbers = #tpu.dot_dimension_numbers<[1], [0], [0], [1], [0, 0, 1, 1], [], []>} : vector<64x128xf32>, vector<128x128xf32>, vector<64x128xf32> -> vector<64x128xf32>
    %83 = arith.addf %77, %82 : vector<64x128xf32>
    %c1_95 = arith.constant 1 : index
    %c1_96 = arith.constant 1 : index
    %c0_97 = arith.constant 0 : index
    %84 = vector.load %arg11[%c1_95, %c1_96, %c0_97] : memref<10x10x128xf32, #tpu.memory_space<vmem>>, vector<8x8x128xf32>
    %85 = vector.shape_cast %84 : vector<8x8x128xf32> to vector<64x128xf32>
    %c4 = arith.constant 4 : index
    %c0_98 = arith.constant 0 : index
    %c0_99 = arith.constant 0 : index
    %86 = vector.load %arg8[%c4, %c0_98, %c0_99] : memref<9x128x128xf32, #tpu.memory_space<vmem>>, vector<1x128x128xf32>
    %87 = vector.shape_cast %86 : vector<1x128x128xf32> to vector<128x128xf32>
    %cst_100 = arith.constant dense<0.000000e+00> : vector<64x128xf32>
    %88 = tpu.matmul %85, %87, %cst_100 {dimension_numbers = #tpu.dot_dimension_numbers<[1], [0], [0], [1], [0, 0, 1, 1], [], []>} : vector<64x128xf32>, vector<128x128xf32>, vector<64x128xf32> -> vector<64x128xf32>
    %89 = arith.addf %83, %88 : vector<64x128xf32>
    %c1_101 = arith.constant 1 : index
    %c2_102 = arith.constant 2 : index
    %c0_103 = arith.constant 0 : index
    %90 = vector.load %arg11[%c1_101, %c2_102, %c0_103] : memref<10x10x128xf32, #tpu.memory_space<vmem>>, vector<8x8x128xf32>
    %91 = vector.shape_cast %90 : vector<8x8x128xf32> to vector<64x128xf32>
    %c5 = arith.constant 5 : index
    %c0_104 = arith.constant 0 : index
    %c0_105 = arith.constant 0 : index
    %92 = vector.load %arg8[%c5, %c0_104, %c0_105] : memref<9x128x128xf32, #tpu.memory_space<vmem>>, vector<1x128x128xf32>
    %93 = vector.shape_cast %92 : vector<1x128x128xf32> to vector<128x128xf32>
    %cst_106 = arith.constant dense<0.000000e+00> : vector<64x128xf32>
    %94 = tpu.matmul %91, %93, %cst_106 {dimension_numbers = #tpu.dot_dimension_numbers<[1], [0], [0], [1], [0, 0, 1, 1], [], []>} : vector<64x128xf32>, vector<128x128xf32>, vector<64x128xf32> -> vector<64x128xf32>
    %95 = arith.addf %89, %94 : vector<64x128xf32>
    %c2_107 = arith.constant 2 : index
    %c0_108 = arith.constant 0 : index
    %c0_109 = arith.constant 0 : index
    %96 = vector.load %arg11[%c2_107, %c0_108, %c0_109] : memref<10x10x128xf32, #tpu.memory_space<vmem>>, vector<8x8x128xf32>
    %97 = vector.shape_cast %96 : vector<8x8x128xf32> to vector<64x128xf32>
    %c6 = arith.constant 6 : index
    %c0_110 = arith.constant 0 : index
    %c0_111 = arith.constant 0 : index
    %98 = vector.load %arg8[%c6, %c0_110, %c0_111] : memref<9x128x128xf32, #tpu.memory_space<vmem>>, vector<1x128x128xf32>
    %99 = vector.shape_cast %98 : vector<1x128x128xf32> to vector<128x128xf32>
    %cst_112 = arith.constant dense<0.000000e+00> : vector<64x128xf32>
    %100 = tpu.matmul %97, %99, %cst_112 {dimension_numbers = #tpu.dot_dimension_numbers<[1], [0], [0], [1], [0, 0, 1, 1], [], []>} : vector<64x128xf32>, vector<128x128xf32>, vector<64x128xf32> -> vector<64x128xf32>
    %101 = arith.addf %95, %100 : vector<64x128xf32>
    %c2_113 = arith.constant 2 : index
    %c1_114 = arith.constant 1 : index
    %c0_115 = arith.constant 0 : index
    %102 = vector.load %arg11[%c2_113, %c1_114, %c0_115] : memref<10x10x128xf32, #tpu.memory_space<vmem>>, vector<8x8x128xf32>
    %103 = vector.shape_cast %102 : vector<8x8x128xf32> to vector<64x128xf32>
    %c7 = arith.constant 7 : index
    %c0_116 = arith.constant 0 : index
    %c0_117 = arith.constant 0 : index
    %104 = vector.load %arg8[%c7, %c0_116, %c0_117] : memref<9x128x128xf32, #tpu.memory_space<vmem>>, vector<1x128x128xf32>
    %105 = vector.shape_cast %104 : vector<1x128x128xf32> to vector<128x128xf32>
    %cst_118 = arith.constant dense<0.000000e+00> : vector<64x128xf32>
    %106 = tpu.matmul %103, %105, %cst_118 {dimension_numbers = #tpu.dot_dimension_numbers<[1], [0], [0], [1], [0, 0, 1, 1], [], []>} : vector<64x128xf32>, vector<128x128xf32>, vector<64x128xf32> -> vector<64x128xf32>
    %107 = arith.addf %101, %106 : vector<64x128xf32>
    %c2_119 = arith.constant 2 : index
    %c2_120 = arith.constant 2 : index
    %c0_121 = arith.constant 0 : index
    %108 = vector.load %arg11[%c2_119, %c2_120, %c0_121] : memref<10x10x128xf32, #tpu.memory_space<vmem>>, vector<8x8x128xf32>
    %109 = vector.shape_cast %108 : vector<8x8x128xf32> to vector<64x128xf32>
    %c8 = arith.constant 8 : index
    %c0_122 = arith.constant 0 : index
    %c0_123 = arith.constant 0 : index
    %110 = vector.load %arg8[%c8, %c0_122, %c0_123] : memref<9x128x128xf32, #tpu.memory_space<vmem>>, vector<1x128x128xf32>
    %111 = vector.shape_cast %110 : vector<1x128x128xf32> to vector<128x128xf32>
    %cst_124 = arith.constant dense<0.000000e+00> : vector<64x128xf32>
    %112 = tpu.matmul %109, %111, %cst_124 {dimension_numbers = #tpu.dot_dimension_numbers<[1], [0], [0], [1], [0, 0, 1, 1], [], []>} : vector<64x128xf32>, vector<128x128xf32>, vector<64x128xf32> -> vector<64x128xf32>
    %113 = arith.addf %107, %112 : vector<64x128xf32>
    %114 = vector.shape_cast %113 : vector<64x128xf32> to vector<8x8x128xf32>
    %c0_125 = arith.constant 0 : index
    %c0_126 = arith.constant 0 : index
    %c0_127 = arith.constant 0 : index
    %c0_128 = arith.constant 0 : index
    %115 = vector.load %arg9[%c0_125, %c0_126, %c0_127, %c0_128] : memref<1x8x8x128xf32, #tpu.memory_space<vmem>>, vector<1x8x8x128xf32>
    %116 = vector.shape_cast %115 : vector<1x8x8x128xf32> to vector<8x8x128xf32>
    %117 = vector.shape_cast %114 : vector<8x8x128xf32> to vector<1x8x8x128xf32>
    tpu.vector_store %arg9[%c0_125, %c0_126, %c0_127, %c0_128], %117 {strides = array<i32>} : memref<1x8x8x128xf32, #tpu.memory_space<vmem>>, vector<1x8x8x128xf32>,
    return
  }
  func.func @transform_0(%arg0: i32) -> (i32, i32, i32, i32) {
    %c0_i32 = arith.constant 0 : i32
    %c0_i32_0 = arith.constant 0 : i32
    %c0_i32_1 = arith.constant 0 : i32
    %c0_i32_2 = arith.constant 0 : i32
    return %arg0, %c0_i32, %c0_i32_0, %c0_i32_1 : i32, i32, i32, i32
  }
  func.func @transform_1(%arg0: i32) -> (i32, i32) {
    %c0_i32 = arith.constant 0 : i32
    %c0_i32_0 = arith.constant 0 : i32
    %c0_i32_1 = arith.constant 0 : i32
    return %c0_i32, %c0_i32_0 : i32, i32
  }
  func.func @transform_2(%arg0: i32) -> (i32, i32) {
    %c0_i32 = arith.constant 0 : i32
    %c0_i32_0 = arith.constant 0 : i32
    %c0_i32_1 = arith.constant 0 : i32
    return %c0_i32, %c0_i32_0 : i32, i32
  }
  func.func @transform_3(%arg0: i32) -> (i32, i32, i32) {
    %c0_i32 = arith.constant 0 : i32
    %c0_i32_0 = arith.constant 0 : i32
    %c0_i32_1 = arith.constant 0 : i32
    %c0_i32_2 = arith.constant 0 : i32
    return %c0_i32, %c0_i32_0, %c0_i32_1 : i32, i32, i32
  }
  func.func @transform_4(%arg0: i32) -> (i32, i32) {
    %c0_i32 = arith.constant 0 : i32
    %c0_i32_0 = arith.constant 0 : i32
    %c0_i32_1 = arith.constant 0 : i32
    return %c0_i32, %c0_i32_0 : i32, i32
  }
  func.func @transform_5(%arg0: i32) -> (i32, i32) {
    %c0_i32 = arith.constant 0 : i32
    %c0_i32_0 = arith.constant 0 : i32
    %c0_i32_1 = arith.constant 0 : i32
    return %c0_i32, %c0_i32_0 : i32, i32
  }
  func.func @transform_6(%arg0: i32) -> (i32, i32) {
    %c0_i32 = arith.constant 0 : i32
    %c0_i32_0 = arith.constant 0 : i32
    %c0_i32_1 = arith.constant 0 : i32
    return %c0_i32, %c0_i32_0 : i32, i32
  }
  func.func @transform_7(%arg0: i32) -> (i32, i32, i32) {
    %c0_i32 = arith.constant 0 : i32
    %c0_i32_0 = arith.constant 0 : i32
    %c0_i32_1 = arith.constant 0 : i32
    %c0_i32_2 = arith.constant 0 : i32
    return %c0_i32, %c0_i32_0, %c0_i32_1 : i32, i32, i32
  }
  func.func @transform_8(%arg0: i32) -> (i32, i32, i32, i32) {
    %c0_i32 = arith.constant 0 : i32
    %c0_i32_0 = arith.constant 0 : i32
    %c0_i32_1 = arith.constant 0 : i32
    %c0_i32_2 = arith.constant 0 : i32
    return %arg0, %c0_i32, %c0_i32_0, %c0_i32_1 : i32, i32, i32, i32
  }
}

</mosaic_0001>

<bundles_post_ra>
// kernel: tile.13
= control target key start
LH: loop header
LB: loop body
LE: loop exit
PB: predicated region body
PF: predicated region fallthrough
CT: control target
= control target key end

     0   :  { %s22_s0 = inlined_call_operand.vmem [shape: f32[128], index: 0, kind: input, shape index: {}]   ;;  %s23_s1 = inlined_call_operand.vmem [shape: f32[4,128], index: 1, kind: output, shape index: {}]  }
   0x1   :  { %v4_v0 = vld [vmem:[%s22_s0] ss:$0 sm:$0xff] }
   0x2   :  { %5 = vst [vmem:[%s23_s1] sm:$0xf] %v4_v0 }

// kernel: basic_block_forward.1
= control target key start
LH: loop header
LB: loop body
LE: loop exit
PB: predicated region body
PF: predicated region fallthrough
CT: control target
= control target key end

     0   :  { %s6033_s27 = smov 0   ;;  %s8173_s0 = inlined_call_operand.vmem [shape: f32[2,8,8,512], index: 0, kind: input, shape index: {}]   ;;  %s8174_s1 = inlined_call_operand.vmem [shape: f32[1,512], index: 1, kind: input, shape index: {}]   ;;  %s8175_s2 = inlined_call_operand.vmem [shape: f32[1,512], index: 2, kind: input, shape index: {}]   ;;  %s8176_s3 = inlined_call_operand.vmem [shape: f32[4,512,128], index: 3, kind: input, shape index: {}]   ;;  %s8177_s4 = inlined_call_operand.vmem [shape: f32[128,128], index: 4, kind: input, shape index: {}]   ;;  %s8178_s5 = inlined_call_operand.vmem [shape: f32[1,128], index: 5, kind: input, shape index: {}]   ;;  %s8179_s6 = inlined_call_operand.vmem [shape: f32[1,128], index: 6, kind: input, shape index: {}]   ;;  %s8180_s7 = inlined_call_operand.vmem [shape: f32[9,128,128], index: 7, kind: input, shape index: {}]   ;;  %s8181_s8 = inlined_call_operand.vmem [shape: f32[2,8,8,128], index: 8, kind: output, shape index: {}]  }
   0x1 LB: > { %s3859_s28 = sadd.s32 4294967295, %s5985_s27   ;;  %p3863_p0 = scmp.ge.s32.totalorder %s5985_s27, 1  ;;  %s5985_s27 = sphi %s6033_s27, %s18_s27  }
   0x2   : > { %p262_p1 = scmp.lt.s32.totalorder %s5985_s27, 3 }
   0x4   : > { %p263_p2 = pnand %p3863_p0, %p262_p1 }
   0x5   : > { %v3884_v0 = vld [vmem:[%s8176_s3 + $0x280] sm:$0xff] (!%p263_p2)  ;;  %v3885_v1 = vld [vmem:[%s8176_s3 + $0x288] sm:$0xff] (!%p263_p2)  ;;  %p6052_p3 = scmp.lt.s32.totalorder (!%p263_p2), %s3859_s28, 1  ;;  %v340_v3 = vlaneseq (!%p263_p2)  ;;  %v3886_v6 = vld [vmem:[%s8176_s3 + $0x290] sm:$0xff] (!%p263_p2)  ;;  %v5987_v8 = vmov (!%p263_p2), 0.0   ;;  %vm901_vm1 = vcmask (!%p263_p2), 1046528  }
   0x6   : > { %266 = sbr.rel (%p263_p2) target bundleno = 953 (0x3b9), region = 52  ;;  %v3868_v2 = vld [vmem:[%s8176_s3 + $0x200] sm:$0xff] (!%p263_p2)  ;;  %v5322_v4 = vpack.c.bf16 (!%p263_p2), %v3885_v1, %v3884_v0  ;;  %v3869_v5 = vld [vmem:[%s8176_s3 + $0x208] sm:$0xff] (!%p263_p2)  ;;  %v3887_v7 = vld [vmem:[%s8176_s3 + $0x298] sm:$0xff] (!%p263_p2)  ;;  %479 = vst [vmem:[#allocation2 + $0x8] sm:$0xff] (!%p263_p2), %v5987_v8 }
   0x7   : > { %483 = vst [vmem:[#allocation2 + $0x28] sm:$0x1] (!%p263_p2), %v5987_v8  ;;  %478 = vst [vmem:[#allocation2] sm:$0xff] (!%p263_p2), %v5987_v8  ;;  %v5324_v9 = vpack.c.bf16 (!%p263_p2), %v3869_v5, %v3868_v2  ;;  %v5326_v10 = vpack.c.bf16 (!%p263_p2), %v3887_v7, %v3886_v6  ;;  %v3870_v11 = vld [vmem:[%s8176_s3 + $0x210] sm:$0xff] (!%p263_p2)  ;;  %v3871_v12 = vld [vmem:[%s8176_s3 + $0x218] sm:$0xff] (!%p263_p2)  ;;  %vm488_vm0 = vcmp.lt.s32.totalorder (!%p263_p2), %v340_v3, 512 }
   0x8   : > { %480 = vst [vmem:[#allocation2 + $0x10] sm:$0xff] (!%p263_p2), %v5987_v8  ;;  %481 = vst [vmem:[#allocation2 + $0x18] sm:$0xff] (!%p263_p2), %v5987_v8  ;;  %v3888_v13 = vld [vmem:[%s8176_s3 + $0x2a0] sm:$0xff] (!%p263_p2)  ;;  %5323 = vmatprep.subr.bf16.mxu1 (!%p263_p2), %v5322_v4  ;;  %v3889_v14 = vld [vmem:[%s8176_s3 + $0x2a8] sm:$0xff] (!%p263_p2)  ;;  %v5328_v15 = vpack.c.bf16 (!%p263_p2), %v3871_v12, %v3870_v11  ;;  %v6097_v21 = vshrl.u32 (!%p263_p2), %v340_v3, 7 }
   0x9   : > { %482 = vst [vmem:[#allocation2 + $0x20] sm:$0x1] (!%p263_p2), %v5987_v8  ;;  %484 = vst [vmem:[#allocation2 + $0x30] sm:$0x1] (!%p263_p2), %v5987_v8  ;;  %5325 = vmatpush3.bf16.msra.mxu1 (!%p263_p2), %v5324_v9  ;;  %v5330_v16 = vpack.c.bf16 (!%p263_p2), %v3889_v14, %v3888_v13  ;;  %v3872_v17 = vld [vmem:[%s8176_s3 + $0x220] sm:$0xff] (!%p263_p2)  ;;  %v3873_v18 = vld [vmem:[%s8176_s3 + $0x228] sm:$0xff] (!%p263_p2) }
   0xa   : > { %485 = vst [vmem:[#allocation2 + $0x38] sm:$0x1] (!%p263_p2), %v5987_v8  ;;  %2407 = vst [vmem:[#allocation3] sm:$0xff] (!%p263_p2), %v5987_v8  ;;  %5327 = vmatprep.subr.bf16.mxu1 (!%p263_p2), %v5326_v10  ;;  %v3890_v19 = vld [vmem:[%s8176_s3 + $0x2b0] sm:$0xff] (!%p263_p2)  ;;  %v3891_v20 = vld [vmem:[%s8176_s3 + $0x2b8] sm:$0xff] (!%p263_p2)  ;;  %v5332_v22 = vpack.c.bf16 (!%p263_p2), %v3873_v18, %v3872_v17  ;;  %v346_v29 = vsub.s32 (!%p263_p2), 1, %v6097_v21 }
   0xb   : > { %2408 = vst [vmem:[#allocation3 + $0x8] sm:$0x3] (!%p263_p2), %v5987_v8  ;;  %2410 = vst [vmem:[#allocation3 + $0x90] sm:$0xff] (!%p263_p2), %v5987_v8  ;;  %v5334_v23 = vpack.c.bf16 (!%p263_p2), %v3891_v20, %v3890_v19  ;;  %v3874_v24 = vld [vmem:[%s8176_s3 + $0x230] sm:$0xff] (!%p263_p2)  ;;  %v3875_v25 = vld [vmem:[%s8176_s3 + $0x238] sm:$0xff] (!%p263_p2)  ;;  %v342_v30 = vsub.s32 (!%p263_p2), 0, %v6097_v21 }
   0xc   : > { %2411 = vst [vmem:[#allocation3 + $0x98] sm:$0x3] (!%p263_p2), %v5987_v8  ;;  %2413 = vst [vmem:[#allocation3 + $0x10] sm:$0x1] (!%p263_p2), %v5987_v8  ;;  %v3892_v26 = vld [vmem:[%s8176_s3 + $0x2c0] sm:$0xff] (!%p263_p2)  ;;  %v3893_v27 = vld [vmem:[%s8176_s3 + $0x2c8] sm:$0xff] (!%p263_p2)  ;;  %v5336_v33 = vpack.c.bf16 (!%p263_p2), %v3875_v25, %v3874_v24 }
   0xd   : > { %2414 = vst [vmem:[#allocation3 + $0x20] sm:$0x1] %v5987_v8  ;;  %2415 = vst [vmem:[#allocation3 + $0x30] sm:$0x1] %v5987_v8  ;;  %s8190_s28 = smov (!%p6052_p3, %s3859_s28), 1  ;;  %5329 = vmatpush3.bf16.msra.mxu1 %v5328_v15  ;;  %v3876_v34 = vld [vmem:[%s8176_s3 + $0x240] sm:$0xff]  ;;  %v5338_v37 = vpack.c.bf16 %v3893_v27, %v3892_v26 }
   0xe   : > { %2416 = vst [vmem:[#allocation3 + $0x40] sm:$0x1] %v5987_v8  ;;  %2417 = vst [vmem:[#allocation3 + $0x50] sm:$0x1] %v5987_v8  ;;  %s4192_s16 = sshll.u32 %s8190_s28, 8  ;;  %5331 = vmatprep.subr.bf16.mxu1 %v5330_v16  ;;  %v3877_v35 = vld [vmem:[%s8176_s3 + $0x248] sm:$0xff] }
   0xf   : > { %2418 = vst [vmem:[#allocation3 + $0x60] sm:$0x1] %v5987_v8  ;;  %2419 = vst [vmem:[#allocation3 + $0x70] sm:$0x1] %v5987_v8  ;;  %v774_v28 = vld [vmem:[#allocation2 + $0x8] sm:$0xfe]  ;;  %s6115_s29 = scalar_lea.vmem %s8173_s0, %s4192_s16  ;;  %v5340_v51 = vpack.c.bf16 %v3877_v35, %v3876_v34 }
  0x10   : > { %2420 = vst [vmem:[#allocation3 + $0x80] sm:$0x1] %v5987_v8  ;;  %2423 = vst [vmem:[#allocation3 + $0x19] sm:$0x1] %v5987_v8  ;;  %v778_v31 = vld [vmem:[#allocation2 + $0x28] sm:$0x1] }
  0x11   : > { %2424 = vst [vmem:[#allocation3 + $0x29] sm:$0x1] %v5987_v8  ;;  %2425 = vst [vmem:[#allocation3 + $0x39] sm:$0x1] %v5987_v8  ;;  %v905_v32 = vrot.slane %v774_v28, 1  ;;  %5333 = vmatpush3.bf16.msra.mxu1 %v5332_v22  ;;  %v906_v36 = vrot.slane %v778_v31, 1 }
  0x12   : > { %2426 = vst [vmem:[#allocation3 + $0x49] sm:$0x1] %v5987_v8  ;;  %2427 = vst [vmem:[#allocation3 + $0x59] sm:$0x1] %v5987_v8  ;;  %5335 = vmatprep.subr.bf16.mxu1 %v5334_v23  ;;  %v3894_v38 = vld [vmem:[%s8176_s3 + $0x2d0] sm:$0xff]  ;;  %v307_v39 = vld [vmem:[%s6115_s29 + $0x8] sm:$0xff] }
  0x13   : > { %2428 = vst [vmem:[#allocation3 + $0x69] sm:$0x1] %v5987_v8  ;;  %2429 = vst [vmem:[#allocation3 + $0x79] sm:$0x1] %v5987_v8  ;;  %v6132_v40 = vld [vmem:[%s8174_s1] sm:$0xf]  ;;  %v907_v42 = vsel %vm901_vm1, %v905_v32, %v906_v36 }
  0x14   : > { %2430 = vst [vmem:[#allocation3 + $0x89] sm:$0x1] %v5987_v8  ;;  %2412 = vst [vmem:[#allocation3] sm:$0x1] %v5987_v8  ;;  %v3895_v41 = vld [vmem:[%s8176_s3 + $0x2d8] sm:$0xff]  ;;  %v6139_v43 = vrot.slane %v6132_v40, %v346_v29  ;;  %v306_v45 = vld [vmem:[%s6115_s29] sm:$0xff]  ;;  %v6148_v46 = vrot.slane %v6132_v40, %v342_v30  ;;  %1159 = vmatprep.mubr.f32.mxu1 %v907_v42 }
  0x15   : > { %2421 = vst [vmem:[#allocation3 + $0x90] sm:$0x1] %v5987_v8  ;;  %2422 = vst [vmem:[#allocation3 + $0x9] sm:$0x1] %v5987_v8  ;;  %v6144_v44 = vld [vmem:[%s8175_s2] sm:$0xf]  ;;  %5337 = vmatpush3.bf16.msra.mxu1 %v5336_v33  ;;  %v5342_v57 = vpack.c.bf16 %v3895_v41, %v3894_v38 }
  0x16   : > { %2431 = vst [vmem:[#allocation3 + $0x99] sm:$0x1] %v5987_v8  ;;  %490 = vst.msk [vmem:[#allocation2] ss:$8 sm:$0xf] %vm488_vm0, %v5987_v8  ;;  %v3878_v47 = vld [vmem:[%s8176_s3 + $0x250] sm:$0xff]  ;;  %v6157_v49 = vrot.slane %v6144_v44, %v346_v29  ;;  %v6160_v50 = vrot.slane %v6144_v44, %v342_v30  ;;  %v361_v53 = vmul.f32 %v6139_v43, %v307_v39  ;;  %5339 = vmatprep.subr.bf16.mxu1 %v5338_v37 }
  0x17   : > { %493 = vst.msk [vmem:[#allocation2 + $0x40] ss:$8 sm:$0xf] %vm488_vm0, %v5987_v8  ;;  %496 = vst.msk [vmem:[#allocation2 + $0x80] ss:$8 sm:$0xf] %vm488_vm0, %v5987_v8  ;;  %v360_v54 = vmul.f32 %v6148_v46, %v306_v45 }
  0x18   : > { %499 = vst.msk [vmem:[#allocation2 + $0xc0] ss:$8 sm:$0xf] %vm488_vm0, %v5987_v8  ;;  %502 = vst.msk [vmem:[#allocation2 + $0x100] ss:$8 sm:$0xf] %vm488_vm0, %v5987_v8  ;;  %v415_v0 = vadd.f32 %v6157_v49, %v361_v53 }
  0x19   : > { %505 = vst.msk [vmem:[#allocation2 + $0x140] ss:$8 sm:$0xf] %vm488_vm0, %v5987_v8  ;;  %508 = vst.msk [vmem:[#allocation2 + $0x180] ss:$8 sm:$0xf] %vm488_vm0, %v5987_v8  ;;  %v414_v1 = vadd.f32 %v6160_v50, %v360_v54  ;;  %5341 = vmatpush3.bf16.msra.mxu1 %v5340_v51 }
  0x1a   : > { %511 = vst.msk [vmem:[#allocation2 + $0x1c0] ss:$8 sm:$0xf] %vm488_vm0, %v5987_v8  ;;  %514 = vst.msk [vmem:[#allocation2 + $0x200] ss:$8 sm:$0xf] %vm488_vm0, %v5987_v8  ;;  %5343 = vmatprep.subr.bf16.mxu1 %v5342_v57 }
  0x1b   : > { %v3879_v48 = vld [vmem:[%s8176_s3 + $0x258] sm:$0xff]  ;;  %v3896_v52 = vld [vmem:[%s8176_s3 + $0x2e0] sm:$0xff]  ;;  %v311_v55 = vld [vmem:[%s6115_s29 + $0x28] sm:$0xff]  ;;  %v354_v4 = vsub.s32 3, %v6097_v21  ;;  %v447_v11 = vmax.f32 %v415_v0, 0.0  ;;  %v446_v12 = vmax.f32 %v414_v1, 0.0 }
  0x1c   : > { %v310_v56 = vld [vmem:[%s6115_s29 + $0x20] sm:$0xff]  ;;  %v3897_v58 = vld [vmem:[%s8176_s3 + $0x2e8] sm:$0xff]  ;;  %v365_v61 = vmul.f32 %v6139_v43, %v311_v55  ;;  %v5344_v63 = vpack.c.bf16 %v3879_v48, %v3878_v47  ;;  %v6202_v15 = vld [vmem:[%s8176_s3 + $0x2f0] sm:$0xff]  ;;  %s4193_s23 = sshll.u32 %s8190_s28, 6 }
  0x1d   : > { %v6175_v59 = vld [vmem:[%s8176_s3 + $0x260] sm:$0xff]  ;;  %v6180_v60 = vld [vmem:[%s8176_s3 + $0x268] sm:$0xff]  ;;  %v364_v62 = vmul.f32 %v6148_v46, %v310_v56  ;;  %v5346_v9 = vpack.c.bf16 %v3897_v58, %v3896_v52  ;;  %v6207_v16 = vld [vmem:[%s8176_s3 + $0x2f8] sm:$0xff]  ;;  %v549_v23 = vrot.slane %v447_v11, 7  ;;  %v548_v24 = vrot.slane %v446_v12, 7  ;;  %4958 = vmatprep.mubr.f32.mxu0 %v446_v12  ;;  %s305_s26 = scalar_lea.vmem %s8181_s8, %s4193_s23 }
  0x1e   : > { %v315_v2 = vld [vmem:[%s6115_s29 + $0x48] sm:$0xff]  ;;  %v314_v3 = vld [vmem:[%s6115_s29 + $0x40] sm:$0xff]  ;;  %v419_v5 = vadd.f32 %v6157_v49, %v365_v61  ;;  %v5348_v10 = vpack.c.bf16 %v6180_v60, %v6175_v59  ;;  %5345 = vmatpush3.bf16.msra.mxu1 %v5344_v63  ;;  %v5350_v34 = vpack.c.bf16 %v6207_v16, %v6202_v15  ;;  %v6228_v35 = vld [vmem:[%s8176_s3 + $0x270] sm:$0xff] }
  0x1f   : > { %v6191_v6 = vadd.f32 %v6160_v50, %v364_v62  ;;  %v369_v7 = vmul.f32 %v6139_v43, %v315_v2  ;;  %v368_v8 = vmul.f32 %v6148_v46, %v314_v3  ;;  %v319_v13 = vld [vmem:[%s6115_s29 + $0x68] sm:$0xff]  ;;  %v318_v14 = vld [vmem:[%s6115_s29 + $0x60] sm:$0xff]  ;;  %v6233_v36 = vld [vmem:[%s8176_s3 + $0x278] sm:$0xff]  ;;  %614 = vst [vmem:[#allocation2 + $0x48] sm:$0xfe] %v549_v23  ;;  %5347 = vmatprep.subr.bf16.mxu1 %v5346_v9 }
  0x20   : > { %v6209_v17 = vld [vmem:[#allocation2] sm:$0xfe]  ;;  %v451_v18 = vmax.f32 %v419_v5, 0.0  ;;  %v373_v25 = vmul.f32 %v6139_v43, %v319_v13  ;;  %v372_v26 = vmul.f32 %v6148_v46, %v318_v14  ;;  %v323_v27 = vld [vmem:[%s6115_s29 + $0x88] sm:$0xff]  ;;  %v777_v29 = vld [vmem:[#allocation2 + $0x20] sm:$0x1]  ;;  %v5352_v0 = vpack.c.bf16 %v6233_v36, %v6228_v35 }
  0x21   : > { %v450_v19 = vmax.f32 %v6191_v6, 0.0  ;;  %v423_v20 = vadd.f32 %v6157_v49, %v369_v7  ;;  %v6214_v22 = vadd.f32 %v6160_v50, %v368_v8  ;;  %v322_v28 = vld [vmem:[%s6115_s29 + $0x80] sm:$0xff]  ;;  %v902_v37 = vrot.slane %v6209_v17, 1  ;;  %618 = vst [vmem:[#allocation2 + $0x68] sm:$0x1] %v549_v23  ;;  %v6248_v42 = vld [vmem:[%s8176_s3 + $0x388] sm:$0xff] }
  0x22   : > { %v553_v30 = vrot.slane %v451_v18, 7  ;;  %613 = vst [vmem:[#allocation2 + $0x40] sm:$0xfe] %v548_v24  ;;  %617 = vst [vmem:[#allocation2 + $0x60] sm:$0x1] %v548_v24  ;;  %v427_v38 = vadd.f32 %v6157_v49, %v373_v25  ;;  %v6238_v39 = vadd.f32 %v6160_v50, %v372_v26  ;;  %v6243_v41 = vld [vmem:[%s8176_s3 + $0x380] sm:$0xff]  ;;  %v377_v51 = vmul.f32 %v6139_v43, %v323_v27 }
  0x23   : > { %v552_v31 = vrot.slane %v450_v19, 7  ;;  %v455_v32 = vmax.f32 %v423_v20, 0.0  ;;  %v454_v33 = vmax.f32 %v6214_v22, 0.0  ;;  %v6253_v45 = vld [vmem:[%s8176_s3 + $0x300] sm:$0xff]  ;;  %v376_v52 = vmul.f32 %v6148_v46, %v322_v28  ;;  %v6262_v54 = vld [vmem:[%s8176_s3 + $0x308] sm:$0xff]  ;;  %v6267_v55 = vld [vmem:[%s8176_s3 + $0x390] sm:$0xff]  ;;  %5349 = vmatpush3.bf16.msra.mxu1 %v5348_v10 }
  0x24   : > { %622 = vst [vmem:[#allocation2 + $0x88] sm:$0xfe] %v553_v30  ;;  %626 = vst [vmem:[#allocation2 + $0xa8] sm:$0x1] %v553_v30  ;;  %v903_v53 = vrot.slane %v777_v29, 1  ;;  %v6272_v56 = vld [vmem:[%s8176_s3 + $0x398] sm:$0xff]  ;;  %v431_v61 = vadd.f32 %v6157_v49, %v377_v51  ;;  %5351 = vmatprep.subr.bf16.mxu1 %v5350_v34  ;;  %v5354_v9 = vpack.c.bf16 %v6248_v42, %v6243_v41 }
  0x25   : > { %621 = vst [vmem:[#allocation2 + $0x80] sm:$0xfe] %v552_v31  ;;  %625 = vst [vmem:[#allocation2 + $0xa0] sm:$0x1] %v552_v31  ;;  %v557_v47 = vrot.slane %v455_v32, 7  ;;  %v556_v48 = vrot.slane %v454_v33, 7  ;;  %v6287_v62 = vadd.f32 %v6160_v50, %v376_v52  ;;  %v5356_v11 = vpack.c.bf16 %v6262_v54, %v6253_v45 }
  0x26   : > { %v459_v57 = vmax.f32 %v427_v38, 0.0  ;;  %v8183_v58 = vmax.f32 %v6238_v39, 0.0  ;;  %v6278_v59 = vld [vmem:[%s8176_s3 + $0x310] sm:$0xff]  ;;  %v6283_v60 = vld [vmem:[%s8176_s3 + $0x318] sm:$0xff]  ;;  %v327_v63 = vld [vmem:[%s6115_s29 + $0xa8] sm:$0xff]  ;;  %v350_v8 = vsub.s32 2, %v6097_v21  ;;  %v904_v13 = vsel %vm901_vm1, %v902_v37, %v903_v53 }
  0x27   : > { %630 = vst [vmem:[#allocation2 + $0xc8] sm:$0xfe] %v557_v47  ;;  %634 = vst [vmem:[#allocation2 + $0xe8] sm:$0x1] %v557_v47  ;;  %v326_v3 = vld [vmem:[%s6115_s29 + $0xa0] sm:$0xff]  ;;  %v331_v5 = vld [vmem:[%s6115_s29 + $0xc8] sm:$0xff]  ;;  %v5358_v14 = vpack.c.bf16 %v6272_v56, %v6267_v55  ;;  %v5360_v15 = vpack.c.bf16 %v6283_v60, %v6278_v59  ;;  %v6321_v18 = vrot.slane %v6132_v40, %v354_v4  ;;  %5353 = vmatpush3.bf16.msra.mxu1 %v5352_v0 }
  0x28   : > { %629 = vst [vmem:[#allocation2 + $0xc0] sm:$0xfe] %v556_v48  ;;  %633 = vst [vmem:[#allocation2 + $0xe0] sm:$0x1] %v556_v48  ;;  %v561_v1 = vrot.slane %v459_v57, 7  ;;  %v560_v2 = vrot.slane %v8183_v58, 7  ;;  %v381_v25 = vmul.f32 %v6139_v43, %v327_v63  ;;  %v380_v26 = vmul.f32 %v6148_v46, %v326_v3  ;;  %5355 = vmatprep.subr.bf16.mxu1 %v5354_v9 }
  0x29   : > { %v330_v7 = vld [vmem:[%s6115_s29 + $0xc0] sm:$0xff]  ;;  %v463_v10 = vmax.f32 %v431_v61, 0.0  ;;  %v8182_v12 = vmax.f32 %v6287_v62, 0.0  ;;  %v6316_v17 = vld [vmem:[%s8176_s3 + $0x3a8] sm:$0xff]  ;;  %v385_v27 = vmul.f32 %v6139_v43, %v331_v5  ;;  %v6340_v42 = vld [vmem:[%s8176_s3 + $0x3b0] sm:$0xff]  ;;  %v6372_v54 = vrot.slane %v6144_v44, %v354_v4 }
  0x2a   : > { %v6311_v16 = vld [vmem:[%s8176_s3 + $0x3a0] sm:$0xff]  ;;  %638 = vst [vmem:[#allocation2 + $0x108] sm:$0xfe] %v561_v1  ;;  %642 = vst [vmem:[#allocation2 + $0x128] sm:$0x1] %v561_v1  ;;  %v384_v28 = vmul.f32 %v6148_v46, %v330_v7  ;;  %v6335_v35 = vld [vmem:[%s8176_s3 + $0x328] sm:$0xff]  ;;  %v6377_v57 = vrot.slane %v6132_v40, %v350_v8  ;;  %1160 = vmatmul.mubr.f32.vlgmr.msra.gmra.mrb[0].mxu1 %v904_v13 }
  0x2b   : > { %637 = vst [vmem:[#allocation2 + $0x100] sm:$0xfe] %v560_v2  ;;  %641 = vst [vmem:[#allocation2 + $0x120] sm:$0x1] %v560_v2  ;;  %v782_v20 = vld [vmem:[#allocation2 + $0x48] sm:$0xfe]  ;;  %v5362_v3 = vpack.c.bf16 %v6316_v17, %v6311_v16  ;;  %5357 = vmatpush3.bf16.msra.mxu1 %v5356_v11 }
  0x2c   : > { %v786_v23 = vld [vmem:[#allocation2 + $0x68] sm:$0x1]  ;;  %v781_v24 = vld [vmem:[#allocation2 + $0x40] sm:$0xfe]  ;;  %v917_v29 = vrot.slane %v782_v20, 1  ;;  %v565_v36 = vrot.slane %v463_v10, 7  ;;  %v435_v10 = vadd.f32 %v6157_v49, %v381_v25  ;;  %v6389_v20 = vadd.f32 %v6160_v50, %v380_v26  ;;  %5359 = vmatprep.subr.bf16.mxu1 %v5358_v14 }
  0x2d   : > { %v918_v30 = vrot.slane %v786_v23, 1  ;;  %v785_v31 = vld [vmem:[#allocation2 + $0x60] sm:$0x1]  ;;  %v914_v32 = vrot.slane %v781_v24, 1  ;;  %v790_v38 = vld [vmem:[#allocation2 + $0x88] sm:$0xfe]  ;;  %v439_v24 = vadd.f32 %v6157_v49, %v385_v27 }
  0x2e   : > { %v6330_v34 = vld [vmem:[%s8176_s3 + $0x320] sm:$0xff]  ;;  %v915_v37 = vrot.slane %v785_v31, 1  ;;  %v794_v41 = vld [vmem:[#allocation2 + $0xa8] sm:$0x1]  ;;  %v6345_v45 = vld [vmem:[%s8176_s3 + $0x3b8] sm:$0xff]  ;;  %v564_v53 = vrot.slane %v8182_v12, 7 }
  0x2f   : > { %v6350_v47 = vld [vmem:[%s8176_s3 + $0x330] sm:$0xff]  ;;  %v6355_v48 = vld [vmem:[%s8176_s3 + $0x338] sm:$0xff]  ;;  %v6360_v51 = vld [vmem:[%s8176_s3 + $0x3c0] sm:$0xff]  ;;  %v919_v61 = vsel %vm901_vm1, %v917_v29, %v918_v30  ;;  %v929_v63 = vrot.slane %v790_v38, 1  ;;  %v930_v0 = vrot.slane %v794_v41, 1  ;;  %v6399_v29 = vadd.f32 %v6160_v50, %v384_v28  ;;  %5361 = vmatpush3.bf16.msra.mxu1 %v5360_v15 }
  0x30   : > { %v6365_v52 = vld [vmem:[%s8176_s3 + $0x3c8] sm:$0xff]  ;;  %v789_v1 = vld [vmem:[#allocation2 + $0x80] sm:$0xfe]  ;;  %v793_v2 = vld [vmem:[#allocation2 + $0xa0] sm:$0x1]  ;;  %1164 = vmatprep.mubr.f32.mxu1 %v919_v61  ;;  %v916_v16 = vsel %vm901_vm1, %v914_v32, %v915_v37  ;;  %v5364_v25 = vpack.c.bf16 %v6335_v35, %v6330_v34  ;;  %v5366_v14 = vpack.c.bf16 %v6345_v45, %v6340_v42  ;;  %v5368_v28 = vpack.c.bf16 %v6355_v48, %v6350_v47 }
  0x31   : > { %v6385_v5 = vld [vmem:[%s8176_s3 + $0x340] sm:$0xff]  ;;  %646 = vst [vmem:[#allocation2 + $0x148] sm:$0xfe] %v565_v36  ;;  %650 = vst [vmem:[#allocation2 + $0x168] sm:$0x1] %v565_v36  ;;  %v926_v4 = vrot.slane %v789_v1, 1  ;;  %v931_v11 = vsel %vm901_vm1, %v929_v63, %v930_v0  ;;  %v5370_v34 = vpack.c.bf16 %v6365_v52, %v6360_v51  ;;  %1165 = vmatmul.mubr.f32.gmra.mrb[2].mxu1 %v916_v16  ;;  %5363 = vmatprep.subr.bf16.mxu1 %v5362_v3 }
  0x32   : > { %v927_v40 = vrot.slane %v793_v2, 1  ;;  %v798_v7 = vld [vmem:[#allocation2 + $0xc8] sm:$0xfe]  ;;  %v802_v9 = vld [vmem:[#allocation2 + $0xe8] sm:$0x1]  ;;  %v6410_v27 = vld [vmem:[%s8176_s3 + $0x3d0] sm:$0xff]  ;;  %1169 = vmatprep.mubr.f32.mxu1 %v931_v11 }
  0x33   : > { %645 = vst [vmem:[#allocation2 + $0x140] sm:$0xfe] %v564_v53  ;;  %649 = vst [vmem:[#allocation2 + $0x160] sm:$0x1] %v564_v53  ;;  %v797_v17 = vld [vmem:[#allocation2 + $0xc0] sm:$0xfe]  ;;  %5365 = vmatpush3.bf16.msra.mxu1 %v5364_v25 }
  0x34   : > { %v801_v23 = vld [vmem:[#allocation2 + $0xe0] sm:$0x1]  ;;  %v6395_v13 = vld [vmem:[%s8176_s3 + $0x348] sm:$0xff]  ;;  %v941_v26 = vrot.slane %v798_v7, 1  ;;  %v942_v30 = vrot.slane %v802_v9, 1  ;;  %v6415_v55 = vld [vmem:[%s8176_s3 + $0x3d8] sm:$0xff]  ;;  %v928_v37 = vsel %vm901_vm1, %v926_v4, %v927_v40  ;;  %5367 = vmatprep.subr.bf16.mxu1 %v5366_v14 }
  0x35   : > { %v806_v31 = vld [vmem:[#allocation2 + $0x108] sm:$0xfe]  ;;  %v938_v56 = vrot.slane %v797_v17, 1  ;;  %v810_v32 = vld [vmem:[#allocation2 + $0x128] sm:$0x1]  ;;  %v6426_v35 = vld [vmem:[%s8176_s3 + $0x350] sm:$0xff]  ;;  %v5372_v42 = vpack.c.bf16 %v6395_v13, %v6385_v5  ;;  %v6466_v17 = vrot.slane %v6144_v44, %v350_v8  ;;  %v5374_v3 = vpack.c.bf16 %v6415_v55, %v6410_v27  ;;  %1170 = vmatmul.mubr.f32.gmra.mrb[4].mxu1 %v928_v37 }
  0x36   : > { %v6431_v36 = vld [vmem:[%s8176_s3 + $0x358] sm:$0xff]  ;;  %v939_v38 = vrot.slane %v801_v23, 1  ;;  %v6434_v41 = vld [vmem:[#allocation2 + $0x100] sm:$0xfe]  ;;  %v467_v45 = vmax.f32 %v435_v10, 0.0  ;;  %v308_v61 = vld [vmem:[%s6115_s29 + $0x10] sm:$0xff]  ;;  %v943_v60 = vsel %vm901_vm1, %v941_v26, %v942_v30 }
  0x37   : > { %v309_v53 = vld [vmem:[%s6115_s29 + $0x18] sm:$0xff]  ;;  %v953_v63 = vrot.slane %v806_v31, 1  ;;  %v6443_v0 = vld [vmem:[#allocation2 + $0x120] sm:$0x1]  ;;  %v466_v1 = vmax.f32 %v6389_v20, 0.0  ;;  %v6454_v4 = vld [vmem:[%s8176_s3 + $0x3e8] sm:$0xff]  ;;  %v362_v8 = vmul.f32 %v6377_v57, %v308_v61  ;;  %1174 = vmatprep.mubr.f32.mxu1 %v943_v60  ;;  %5369 = vmatpush3.bf16.msra.mxu1 %v5368_v28 }
  0x38   : > { %v6449_v2 = vld [vmem:[%s8176_s3 + $0x3e0] sm:$0xff]  ;;  %v471_v40 = vmax.f32 %v439_v24, 0.0  ;;  %v8184_v59 = vmax.f32 %v6399_v29, 0.0  ;;  %v954_v15 = vrot.slane %v810_v32, 1  ;;  %v814_v7 = vld [vmem:[#allocation2 + $0x148] sm:$0xfe]  ;;  %v5376_v24 = vpack.c.bf16 %v6431_v36, %v6426_v35  ;;  %5371 = vmatprep.subr.bf16.mxu1 %v5370_v34 }
  0x39   : > { %v818_v9 = vld [vmem:[#allocation2 + $0x168] sm:$0x1]  ;;  %v569_v10 = vrot.slane %v467_v45, 7  ;;  %v6461_v16 = vld [vmem:[%s8176_s3 + $0x360] sm:$0xff]  ;;  %v6480_v21 = vld [vmem:[%s8176_s3 + $0x3f0] sm:$0xff]  ;;  %v363_v44 = vmul.f32 %v6321_v18, %v309_v53  ;;  %v940_v26 = vsel %vm901_vm1, %v938_v56, %v939_v38  ;;  %v950_v30 = vrot.slane %v6434_v41, 1 }
  0x3a   : > { %v813_v23 = vld [vmem:[#allocation2 + $0x140] sm:$0xfe]  ;;  %v6475_v11 = vld [vmem:[%s8176_s3 + $0x368] sm:$0xff]  ;;  %v817_v31 = vld [vmem:[#allocation2 + $0x160] sm:$0x1]  ;;  %v568_v32 = vrot.slane %v466_v1, 7  ;;  %v955_v41 = vsel %vm901_vm1, %v953_v63, %v954_v15  ;;  %v5378_v25 = vpack.c.bf16 %v6454_v4, %v6449_v2  ;;  %1175 = vmatmul.mubr.f32.gmra.mrb[6].mxu1 %v940_v26 }
  0x3b   : > { %654 = vst [vmem:[#allocation2 + $0x188] sm:$0xfe] %v569_v10  ;;  %658 = vst [vmem:[#allocation2 + $0x1a8] sm:$0x1] %v569_v10  ;;  %v573_v45 = vrot.slane %v471_v40, 7  ;;  %v313_v12 = vld [vmem:[%s6115_s29 + $0x38] sm:$0xff]  ;;  %v416_v40 = vadd.f32 %v6466_v17, %v362_v8  ;;  %1179 = vmatprep.mubr.f32.mxu1 %v955_v41  ;;  %5373 = vmatpush3.bf16.msra.mxu1 %v5372_v42 }
  0x3c   : > { %v951_v53 = vrot.slane %v6443_v0, 1  ;;  %v965_v58 = vrot.slane %v814_v7, 1  ;;  %v966_v61 = vrot.slane %v818_v9, 1  ;;  %v572_v37 = vrot.slane %v8184_v59, 7  ;;  %v6495_v56 = vld [vmem:[%s8176_s3 + $0x3f8] sm:$0xff]  ;;  %v312_v38 = vld [vmem:[%s6115_s29 + $0x30] sm:$0xff]  ;;  %5375 = vmatprep.subr.bf16.mxu1 %v5374_v3 }
  0x3d   : > { %653 = vst [vmem:[#allocation2 + $0x180] sm:$0xfe] %v568_v32  ;;  %657 = vst [vmem:[#allocation2 + $0x1a0] sm:$0x1] %v568_v32  ;;  %v417_v0 = vadd.f32 %v6372_v54, %v363_v44  ;;  %v962_v60 = vrot.slane %v813_v23, 1  ;;  %v963_v7 = vrot.slane %v817_v31, 1  ;;  %v5380_v9 = vpack.c.bf16 %v6475_v11, %v6461_v16 }
  0x3e   : > { %662 = vst [vmem:[#allocation2 + $0x1c8] sm:$0xfe] %v573_v45  ;;  %666 = vst [vmem:[#allocation2 + $0x1e8] sm:$0x1] %v573_v45  ;;  %v367_v14 = vmul.f32 %v6321_v18, %v313_v12  ;;  %v317_v63 = vld [vmem:[%s6115_s29 + $0x58] sm:$0xff]  ;;  %v5382_v15 = vpack.c.bf16 %v6495_v56, %v6480_v21  ;;  %v6512_v10 = vld [vmem:[%s8176_s3 + $0x370] sm:$0xff]  ;;  %v366_v12 = vmul.f32 %v6377_v57, %v312_v38 }
  0x3f   : > { %661 = vst [vmem:[#allocation2 + $0x1c0] sm:$0xfe] %v572_v37  ;;  %665 = vst [vmem:[#allocation2 + $0x1e0] sm:$0x1] %v572_v37  ;;  %v6517_v23 = vld [vmem:[%s8176_s3 + $0x378] sm:$0xff]  ;;  %v449_v44 = vmax.f32 %v417_v0, 0.0  ;;  %v952_v31 = vsel %vm901_vm1, %v950_v30, %v951_v53  ;;  %v967_v32 = vsel %vm901_vm1, %v965_v58, %v966_v61  ;;  %v964_v48 = vsel %vm901_vm1, %v962_v60, %v963_v7 }
  0x40   : > { %v448_v8 = vmax.f32 %v416_v40, 0.0  ;;  %v316_v26 = vld [vmem:[%s6115_s29 + $0x50] sm:$0xff]  ;;  %v421_v45 = vadd.f32 %v6372_v54, %v367_v14  ;;  %v420_v38 = vadd.f32 %v6466_v17, %v366_v12  ;;  %v371_v40 = vmul.f32 %v6321_v18, %v317_v63  ;;  %v321_v59 = vld [vmem:[%s6115_s29 + $0x78] sm:$0xff]  ;;  %1180 = vmatmul.mubr.f32.gmra.mrb[8].mxu1 %v952_v31  ;;  %v6567_v27 = vld [vmem:[%s8176_s3 + $0x88] sm:$0xff] }
  0x41   : > { %v551_v37 = vrot.slane %v449_v44, 7  ;;  %v320_v47 = vld [vmem:[%s6115_s29 + $0x70] sm:$0xff]  ;;  %v5384_v58 = vpack.c.bf16 %v6517_v23, %v6512_v10  ;;  %v370_v61 = vmul.f32 %v6377_v57, %v316_v26  ;;  %v6538_v34 = vld [vmem:[#allocation2 + $0x18] sm:$0xfe]  ;;  %1184 = vmatprep.mubr.f32.mxu1 %v967_v32  ;;  %v6546_v44 = vld [vmem:[#allocation2 + $0x38] sm:$0x1]  ;;  %v375_v26 = vmul.f32 %v6321_v18, %v321_v59  ;;  %5377 = vmatpush3.bf16.msra.mxu1 %v5376_v24 }
  0x42   : > { %v550_v0 = vrot.slane %v448_v8, 7  ;;  %v822_v28 = vld [vmem:[#allocation2 + $0x188] sm:$0xfe]  ;;  %v826_v30 = vld [vmem:[#allocation2 + $0x1a8] sm:$0x1]  ;;  %v453_v53 = vmax.f32 %v421_v45, 0.0  ;;  %v6541_v60 = vadd.f32 %v6372_v54, %v371_v40  ;;  %v374_v31 = vmul.f32 %v6377_v57, %v320_v47  ;;  %5379 = vmatprep.subr.bf16.mxu1 %v5378_v25 }
  0x43   : > { %v977_v51 = vrot.slane %v822_v28, 1  ;;  %v978_v52 = vrot.slane %v826_v30, 1  ;;  %616 = vst [vmem:[#allocation2 + $0x58] sm:$0xfe] %v551_v37  ;;  %620 = vst [vmem:[#allocation2 + $0x78] sm:$0x1] %v551_v37  ;;  %v424_v12 = vadd.f32 %v6466_v17, %v370_v61  ;;  %v429_v40 = vadd.f32 %v6372_v54, %v375_v26 }
  0x44   : > { %615 = vst [vmem:[#allocation2 + $0x50] sm:$0xfe] %v550_v0  ;;  %619 = vst [vmem:[#allocation2 + $0x70] sm:$0x1] %v550_v0  ;;  %v452_v41 = vmax.f32 %v420_v38, 0.0  ;;  %v6562_v59 = vld [vmem:[%s8176_s3 + $0x80] sm:$0xff]  ;;  %v428_v47 = vadd.f32 %v6466_v17, %v374_v31  ;;  %1185 = vmatmul.mubr.f32.gmra.mrb[10].mxu1 %v964_v48 }
  0x45   : > { %v821_v7 = vld [vmem:[#allocation2 + $0x180] sm:$0xfe]  ;;  %v825_v14 = vld [vmem:[#allocation2 + $0x1a0] sm:$0x1]  ;;  %v830_v63 = vld [vmem:[#allocation2 + $0x1c8] sm:$0xfe]  ;;  %v979_v5 = vsel %vm901_vm1, %v977_v51, %v978_v52  ;;  %5381 = vmatpush3.bf16.msra.mxu1 %v5380_v9 }
  0x46   : > { %v6548_v8 = vld [vmem:[#allocation2 + $0x10] sm:$0xfe]  ;;  %v974_v13 = vrot.slane %v821_v7, 1  ;;  %v975_v42 = vrot.slane %v825_v14, 1  ;;  %v834_v32 = vld [vmem:[#allocation2 + $0x1e8] sm:$0x1]  ;;  %1189 = vmatprep.mubr.f32.mxu1 %v979_v5  ;;  %5383 = vmatprep.subr.bf16.mxu1 %v5382_v15 }
  0x47   : > { %v989_v45 = vrot.slane %v830_v63, 1  ;;  %v6557_v37 = vld [vmem:[#allocation2 + $0x30] sm:$0x1]  ;;  %v990_v55 = vrot.slane %v834_v32, 1  ;;  %v829_v3 = vld [vmem:[#allocation2 + $0x1c0] sm:$0xfe] }
  0x48   : > { %v833_v0 = vld [vmem:[#allocation2 + $0x1e0] sm:$0x1]  ;;  %v555_v38 = vrot.slane %v453_v53, 7  ;;  %v986_v28 = vrot.slane %v829_v3, 1  ;;  %v911_v61 = vrot.slane %v6538_v34, 1  ;;  %v554_v51 = vrot.slane %v452_v41, 7 }
  0x49   : > { %v987_v30 = vrot.slane %v833_v0, 1  ;;  %v325_v52 = vld [vmem:[%s6115_s29 + $0x98] sm:$0xff]  ;;  %v324_v7 = vld [vmem:[%s6115_s29 + $0x90] sm:$0xff]  ;;  %v976_v14 = vsel %vm901_vm1, %v974_v13, %v975_v42  ;;  %v6581_v53 = vld [vmem:[%s8176_s3] sm:$0xff]  ;;  %v457_v34 = vmax.f32 %v6541_v60, 0.0  ;;  %v456_v35 = vmax.f32 %v424_v12, 0.0  ;;  %5385 = vmatpush3.bf16.msra.mxu1 %v5384_v58 }
  0x4a   : > { %v6586_v48 = vld [vmem:[%s8176_s3 + $0x8] sm:$0xff]  ;;  %624 = vst [vmem:[#allocation2 + $0x98] sm:$0xfe] %v555_v38  ;;  %628 = vst [vmem:[#allocation2 + $0xb8] sm:$0x1] %v555_v38  ;;  %v461_v36 = vmax.f32 %v429_v40, 0.0  ;;  %v991_v24 = vsel %vm901_vm1, %v989_v45, %v990_v55  ;;  %v379_v31 = vmul.f32 %v6321_v18, %v325_v52  ;;  %v378_v5 = vmul.f32 %v6377_v57, %v324_v7 }
  0x4b   : > { %v912_v41 = vrot.slane %v6546_v44, 1  ;;  %v908_v63 = vrot.slane %v6548_v8, 1  ;;  %v6598_v26 = vld [vmem:[%s8176_s3 + $0x90] sm:$0xff]  ;;  %v6603_v60 = vld [vmem:[%s8176_s3 + $0x98] sm:$0xff]  ;;  %623 = vst [vmem:[#allocation2 + $0x90] sm:$0xfe] %v554_v51  ;;  %v5386_v44 = vpack.c.bf16 %v6567_v27, %v6562_v59  ;;  %1190 = vmatmul.mubr.f32.gmra.mrb[12].mxu1 %v976_v14  ;;  %v988_v42 = vsel %vm901_vm1, %v986_v28, %v987_v30 }
  0x4c   : > { %627 = vst [vmem:[#allocation2 + $0xb0] sm:$0x1] %v554_v51  ;;  %v460_v2 = vmax.f32 %v428_v47, 0.0  ;;  %v329_v4 = vld [vmem:[%s6115_s29 + $0xb8] sm:$0xff]  ;;  %v909_v25 = vrot.slane %v6557_v37, 1  ;;  %v328_v13 = vld [vmem:[%s6115_s29 + $0xb0] sm:$0xff]  ;;  %v5388_v32 = vpack.c.bf16 %v6586_v48, %v6581_v53  ;;  %1194 = vmatprep.mubr.f32.mxu1 %v991_v24  ;;  %v433_v47 = vadd.f32 %v6372_v54, %v379_v31 }
  0x4d   : > { %v784_v8 = vld [vmem:[#allocation2 + $0x58] sm:$0xfe]  ;;  %v788_v12 = vld [vmem:[#allocation2 + $0x78] sm:$0x1]  ;;  %v6615_v55 = vld [vmem:[#allocation2 + $0x50] sm:$0xfe]  ;;  %v913_v40 = vsel %vm901_vm1, %v911_v61, %v912_v41  ;;  %v432_v28 = vadd.f32 %v6466_v17, %v378_v5  ;;  %v383_v16 = vmul.f32 %v6321_v18, %v329_v4  ;;  %v5390_v21 = vpack.c.bf16 %v6603_v60, %v6598_v26  ;;  %5387 = vmatprep.subr.bf16.mxu1 %v5386_v44 }
  0x4e   : > { %v923_v45 = vrot.slane %v784_v8, 1  ;;  %v6617_v37 = vld [vmem:[#allocation2 + $0x70] sm:$0x1]  ;;  %v559_v59 = vrot.slane %v457_v34, 7  ;;  %v924_v27 = vrot.slane %v788_v12, 1  ;;  %v558_v3 = vrot.slane %v456_v35, 7 }
  0x4f   : > { %v563_v0 = vrot.slane %v461_v36, 7  ;;  %v562_v38 = vrot.slane %v460_v2, 7  ;;  %v333_v11 = vld [vmem:[%s6115_s29 + $0xd8] sm:$0xff]  ;;  %v920_v9 = vrot.slane %v6615_v55, 1  ;;  %v921_v30 = vrot.slane %v6617_v37, 1  ;;  %v6637_v56 = vld [vmem:[%s8176_s3 + $0x10] sm:$0xff]  ;;  %1195 = vmatmul.mubr.f32.gmra.mrb[14].mxu1 %v988_v42 }
  0x50   : > { %632 = vst [vmem:[#allocation2 + $0xd8] sm:$0xfe] %v559_v59  ;;  %636 = vst [vmem:[#allocation2 + $0xf8] sm:$0x1] %v559_v59  ;;  %v6642_v15 = vld [vmem:[%s8176_s3 + $0x18] sm:$0xff]  ;;  %v6647_v61 = vld [vmem:[%s8176_s3 + $0xa0] sm:$0xff]  ;;  %v382_v51 = vmul.f32 %v6377_v57, %v328_v13  ;;  %v910_v7 = vsel %vm901_vm1, %v908_v63, %v909_v25  ;;  %v437_v24 = vadd.f32 %v6372_v54, %v383_v16  ;;  %1264 = vmatprep.mubr.f32.mxu1 %v913_v40 }
  0x51   : > { %631 = vst [vmem:[#allocation2 + $0xd0] sm:$0xfe] %v558_v3  ;;  %635 = vst [vmem:[#allocation2 + $0xf0] sm:$0x1] %v558_v3  ;;  %v332_v52 = vld [vmem:[%s6115_s29 + $0xd0] sm:$0xff]  ;;  %v465_v35 = vmax.f32 %v433_v47, 0.0  ;;  %v925_v41 = vsel %vm901_vm1, %v923_v45, %v924_v27  ;;  %v387_v25 = vmul.f32 %v6321_v18, %v333_v11  ;;  %v5392_v5 = vpack.c.bf16 %v6642_v15, %v6637_v56 }
  0x52   : > { %640 = vst [vmem:[#allocation2 + $0x118] sm:$0xfe] %v563_v0  ;;  %644 = vst [vmem:[#allocation2 + $0x138] sm:$0x1] %v563_v0  ;;  %v792_v14 = vld [vmem:[#allocation2 + $0x98] sm:$0xfe]  ;;  %v436_v4 = vadd.f32 %v6466_v17, %v382_v51  ;;  %v386_v10 = vmul.f32 %v6377_v57, %v332_v52  ;;  %v922_v37 = vsel %vm901_vm1, %v920_v9, %v921_v30 }
  0x53   : > { %639 = vst [vmem:[#allocation2 + $0x110] sm:$0xfe] %v562_v38  ;;  %643 = vst [vmem:[#allocation2 + $0x130] sm:$0x1] %v562_v38  ;;  %v796_v34 = vld [vmem:[#allocation2 + $0xb8] sm:$0x1]  ;;  %1265 = vmatmul.mubr.f32.vlgmr.msra.gmra.mrb[16].mxu1 %v910_v7  ;;  %v441_v40 = vadd.f32 %v6372_v54, %v387_v25 }
  0x54   : > { %v464_v36 = vmax.f32 %v432_v28, 0.0  ;;  %v935_v26 = vrot.slane %v792_v14, 1  ;;  %v791_v60 = vld [vmem:[#allocation2 + $0x90] sm:$0xfe]  ;;  %v795_v2 = vld [vmem:[#allocation2 + $0xb0] sm:$0x1]  ;;  %5389 = vmatpush3.bf16.msra.mxu1 %v5388_v32  ;;  %1269 = vmatprep.mubr.f32.mxu1 %v925_v41  ;;  %v440_v32 = vadd.f32 %v6466_v17, %v386_v10 }
  0x55   : > { %v730_v63 = vld [vmem:[%s8176_s3 + $0xa8] sm:$0xff]  ;;  %v936_v8 = vrot.slane %v796_v34, 1  ;;  %v567_v12 = vrot.slane %v465_v35, 7  ;;  %v469_v23 = vmax.f32 %v437_v24, 0.0  ;;  %v468_v58 = vmax.f32 %v436_v4, 0.0  ;;  %v713_v55 = vld [vmem:[%s8176_s3 + $0x20] sm:$0xff]  ;;  %5391 = vmatprep.subr.bf16.mxu1 %v5390_v21 }
  0x56   : > { %v566_v31 = vrot.slane %v464_v36, 7  ;;  %v932_v13 = vrot.slane %v791_v60, 1  ;;  %v933_v42 = vrot.slane %v795_v2, 1  ;;  %v5394_v45 = vpack.c.bf16 %v730_v63, %v6647_v61  ;;  %v714_v44 = vld [vmem:[%s8176_s3 + $0x28] sm:$0xff]  ;;  %v731_v3 = vld [vmem:[%s8176_s3 + $0xb0] sm:$0xff]  ;;  %v732_v11 = vld [vmem:[%s8176_s3 + $0xb8] sm:$0xff] }
  0x57   : > { %648 = vst [vmem:[#allocation2 + $0x158] sm:$0xfe] %v567_v12  ;;  %652 = vst [vmem:[#allocation2 + $0x178] sm:$0x1] %v567_v12  ;;  %v800_v59 = vld [vmem:[#allocation2 + $0xd8] sm:$0xfe]  ;;  %v937_v47 = vsel %vm901_vm1, %v935_v26, %v936_v8  ;;  %1270 = vmatmul.mubr.f32.gmra.mrb[18].mxu1 %v922_v37  ;;  %v5396_v56 = vpack.c.bf16 %v714_v44, %v713_v55  ;;  %v5398_v36 = vpack.c.bf16 %v732_v11, %v731_v3 }
  0x58   : > { %647 = vst [vmem:[#allocation2 + $0x150] sm:$0xfe] %v566_v31  ;;  %651 = vst [vmem:[#allocation2 + $0x170] sm:$0x1] %v566_v31  ;;  %v804_v27 = vld [vmem:[#allocation2 + $0xf8] sm:$0x1]  ;;  %v934_v21 = vsel %vm901_vm1, %v932_v13, %v933_v42  ;;  %5393 = vmatpush3.bf16.msra.mxu1 %v5392_v5  ;;  %1274 = vmatprep.mubr.f32.mxu1 %v937_v47 }
  0x59   : > { %v571_v0 = vrot.slane %v469_v23, 7  ;;  %v570_v38 = vrot.slane %v468_v58, 7  ;;  %v947_v28 = vrot.slane %v800_v59, 1  ;;  %v948_v16 = vrot.slane %v804_v27, 1  ;;  %v799_v53 = vld [vmem:[#allocation2 + $0xd0] sm:$0xfe]  ;;  %5395 = vmatprep.subr.bf16.mxu1 %v5394_v45 }
  0x5a   : > { %v803_v48 = vld [vmem:[#allocation2 + $0xf0] sm:$0x1]  ;;  %v808_v9 = vld [vmem:[#allocation2 + $0x118] sm:$0xfe]  ;;  %v812_v30 = vld [vmem:[#allocation2 + $0x138] sm:$0x1] }
  0x5b   : > { %656 = vst [vmem:[#allocation2 + $0x198] sm:$0xfe] %v571_v0  ;;  %660 = vst [vmem:[#allocation2 + $0x1b8] sm:$0x1] %v571_v0  ;;  %v715_v15 = vld [vmem:[%s8176_s3 + $0x30] sm:$0xff]  ;;  %v944_v61 = vrot.slane %v799_v53, 1  ;;  %v949_v35 = vsel %vm901_vm1, %v947_v28, %v948_v16  ;;  %1275 = vmatmul.mubr.f32.gmra.mrb[20].mxu1 %v934_v21 }
  0x5c   : > { %655 = vst [vmem:[#allocation2 + $0x190] sm:$0xfe] %v570_v38  ;;  %659 = vst [vmem:[#allocation2 + $0x1b0] sm:$0x1] %v570_v38  ;;  %v945_v51 = vrot.slane %v803_v48, 1  ;;  %v716_v52 = vld [vmem:[%s8176_s3 + $0x38] sm:$0xff]  ;;  %5397 = vmatpush3.bf16.msra.mxu1 %v5396_v56  ;;  %1279 = vmatprep.mubr.f32.mxu1 %v949_v35 }
  0x5d   : > { %v959_v7 = vrot.slane %v808_v9, 1  ;;  %v733_v14 = vld [vmem:[%s8176_s3 + $0xc0] sm:$0xff]  ;;  %v473_v34 = vmax.f32 %v441_v40, 0.0  ;;  %v960_v24 = vrot.slane %v812_v30, 1  ;;  %v807_v41 = vld [vmem:[#allocation2 + $0x110] sm:$0xfe]  ;;  %v5400_v25 = vpack.c.bf16 %v716_v52, %v715_v15  ;;  %5399 = vmatprep.subr.bf16.mxu1 %v5398_v36 }
  0x5e   : > { %v811_v26 = vld [vmem:[#allocation2 + $0x130] sm:$0x1]  ;;  %v472_v60 = vmax.f32 %v440_v32, 0.0  ;;  %v734_v2 = vld [vmem:[%s8176_s3 + $0xc8] sm:$0xff]  ;;  %v816_v63 = vld [vmem:[#allocation2 + $0x158] sm:$0xfe]  ;;  %v946_v12 = vsel %vm901_vm1, %v944_v61, %v945_v51 }
  0x5f   : > { %v820_v4 = vld [vmem:[#allocation2 + $0x178] sm:$0x1]  ;;  %v575_v8 = vrot.slane %v473_v34, 7  ;;  %v956_v31 = vrot.slane %v807_v41, 1  ;;  %v957_v10 = vrot.slane %v811_v26, 1  ;;  %v717_v23 = vld [vmem:[%s8176_s3 + $0x40] sm:$0xff]  ;;  %v961_v42 = vsel %vm901_vm1, %v959_v7, %v960_v24  ;;  %1280 = vmatmul.mubr.f32.gmra.mrb[22].mxu1 %v946_v12 }
  0x60   : > { %v718_v58 = vld [vmem:[%s8176_s3 + $0x48] sm:$0xff]  ;;  %v735_v5 = vld [vmem:[%s8176_s3 + $0xd0] sm:$0xff]  ;;  %v574_v13 = vrot.slane %v472_v60, 7  ;;  %v5402_v45 = vpack.c.bf16 %v734_v2, %v733_v14  ;;  %v971_v55 = vrot.slane %v816_v63, 1  ;;  %v972_v44 = vrot.slane %v820_v4, 1  ;;  %v736_v27 = vld [vmem:[%s8176_s3 + $0xd8] sm:$0xff]  ;;  %5401 = vmatpush3.bf16.msra.mxu1 %v5400_v25  ;;  %1284 = vmatprep.mubr.f32.mxu1 %v961_v42 }
  0x61   : > { %v815_v37 = vld [vmem:[#allocation2 + $0x150] sm:$0xfe]  ;;  %v819_v59 = vld [vmem:[#allocation2 + $0x170] sm:$0x1]  ;;  %664 = vst [vmem:[#allocation2 + $0x1d8] sm:$0xfe] %v575_v8  ;;  %v958_v38 = vsel %vm901_vm1, %v956_v31, %v957_v10  ;;  %v5404_v40 = vpack.c.bf16 %v718_v58, %v717_v23  ;;  %v5406_v32 = vpack.c.bf16 %v736_v27, %v735_v5 }
  0x62   : > { %668 = vst [vmem:[#allocation2 + $0x1f8] sm:$0x1] %v575_v8  ;;  %v824_v3 = vld [vmem:[#allocation2 + $0x198] sm:$0xfe]  ;;  %v828_v0 = vld [vmem:[#allocation2 + $0x1b8] sm:$0x1]  ;;  %5403 = vmatprep.subr.bf16.mxu1 %v5402_v45  ;;  %v973_v48 = vsel %vm901_vm1, %v971_v55, %v972_v44 }
  0x63   : > { %663 = vst [vmem:[#allocation2 + $0x1d0] sm:$0xfe] %v574_v13  ;;  %667 = vst [vmem:[#allocation2 + $0x1f0] sm:$0x1] %v574_v13  ;;  %v968_v47 = vrot.slane %v815_v37, 1  ;;  %v969_v28 = vrot.slane %v819_v59, 1  ;;  %1285 = vmatmul.mubr.f32.gmra.mrb[24].mxu1 %v958_v38 }
  0x64   : > { %v719_v16 = vld [vmem:[%s8176_s3 + $0x50] sm:$0xff]  ;;  %v720_v53 = vld [vmem:[%s8176_s3 + $0x58] sm:$0xff]  ;;  %v983_v11 = vrot.slane %v824_v3, 1  ;;  %v984_v9 = vrot.slane %v828_v0, 1  ;;  %v737_v56 = vld [vmem:[%s8176_s3 + $0xe0] sm:$0xff]  ;;  %5405 = vmatpush3.bf16.msra.mxu1 %v5404_v40  ;;  %1289 = vmatprep.mubr.f32.mxu1 %v973_v48 }
  0x65   : > { %v823_v30 = vld [vmem:[#allocation2 + $0x190] sm:$0xfe]  ;;  %v827_v21 = vld [vmem:[#allocation2 + $0x1b0] sm:$0x1]  ;;  %v738_v15 = vld [vmem:[%s8176_s3 + $0xe8] sm:$0xff]  ;;  %v970_v52 = vsel %vm901_vm1, %v968_v47, %v969_v28  ;;  %v5408_v7 = vpack.c.bf16 %v720_v53, %v719_v16  ;;  %5407 = vmatprep.subr.bf16.mxu1 %v5406_v32 }
  0x66   : > { %v721_v61 = vld [vmem:[%s8176_s3 + $0x60] sm:$0xff]  ;;  %v722_v51 = vld [vmem:[%s8176_s3 + $0x68] sm:$0xff]  ;;  %v980_v14 = vrot.slane %v823_v30, 1  ;;  %v981_v34 = vrot.slane %v827_v21, 1  ;;  %v985_v24 = vsel %vm901_vm1, %v983_v11, %v984_v9  ;;  %v5410_v41 = vpack.c.bf16 %v738_v15, %v737_v56  ;;  %v739_v4 = vld [vmem:[%s8176_s3 + $0xf0] sm:$0xff] }
  0x67   : > { %v740_v25 = vld [vmem:[%s8176_s3 + $0xf8] sm:$0xff]  ;;  %1290 = vmatmul.mubr.f32.gmra.mrb[26].mxu1 %v970_v52  ;;  %v5412_v12 = vpack.c.bf16 %v722_v51, %v721_v61  ;;  %v723_v5 = vld [vmem:[%s8176_s3 + $0x70] sm:$0xff]  ;;  %v757_v42 = vld [vmem:[%s8176_s3 + $0x180] sm:$0xff] }
  0x68   : > { %v832_v35 = vld [vmem:[#allocation2 + $0x1d8] sm:$0xfe]  ;;  %5409 = vmatpush3.bf16.msra.mxu1 %v5408_v7  ;;  %1294 = vmatprep.mubr.f32.mxu1 %v985_v24  ;;  %v982_v8 = vsel %vm901_vm1, %v980_v14, %v981_v34  ;;  %v5414_v58 = vpack.c.bf16 %v740_v25, %v739_v4  ;;  %v758_v45 = vld [vmem:[%s8176_s3 + $0x188] sm:$0xff]  ;;  %v741_v27 = vld [vmem:[%s8176_s3 + $0x100] sm:$0xff] }
  0x69   : > { %v836_v36 = vld [vmem:[#allocation2 + $0x1f8] sm:$0x1]  ;;  %v995_v26 = vrot.slane %v832_v35, 1  ;;  %5411 = vmatprep.subr.bf16.mxu1 %v5410_v41  ;;  %v678_v37 = vld [vmem:[#allocation2 + $0x8] sm:$0xff]  ;;  %v5418_v59 = vpack.c.bf16 %v758_v45, %v757_v42  ;;  %v759_v0 = vld [vmem:[%s8176_s3 + $0x190] sm:$0xff] }
  0x6a   : > { %v996_v60 = vrot.slane %v836_v36, 1  ;;  %v831_v2 = vld [vmem:[#allocation2 + $0x1d0] sm:$0xfe]  ;;  %v835_v63 = vld [vmem:[#allocation2 + $0x1f0] sm:$0x1]  ;;  %v724_v13 = vld [vmem:[%s8176_s3 + $0x78] sm:$0xff] }
  0x6b   : > { %v992_v31 = vrot.slane %v831_v2, 1  ;;  %v993_v10 = vrot.slane %v835_v63, 1  ;;  %1295 = vmatmul.mubr.f32.gmra.mrb[28].mxu1 %v982_v8  ;;  %v5416_v44 = vpack.c.bf16 %v724_v13, %v723_v5  ;;  %v742_v3 = vld [vmem:[%s8176_s3 + $0x108] sm:$0xff]  ;;  %v760_v38 = vld [vmem:[%s8176_s3 + $0x198] sm:$0xff]  ;;  %v677_v40 = vld [vmem:[#allocation2] sm:$0xff] }
  0x6c   : > { %v997_v23 = vsel %vm901_vm1, %v995_v26, %v996_v60  ;;  %5413 = vmatpush3.bf16.msra.mxu1 %v5412_v12  ;;  %v5420_v47 = vpack.c.bf16 %v742_v3, %v741_v27  ;;  %v6768_v28 = vld [vmem:[#allocation2 + $0x48] sm:$0xff]  ;;  %v5422_v16 = vpack.c.bf16 %v760_v38, %v759_v0  ;;  %v743_v53 = vld [vmem:[%s8176_s3 + $0x110] sm:$0xff]  ;;  %v744_v48 = vld [vmem:[%s8176_s3 + $0x118] sm:$0xff] }
  0x6d   : > { %1299 = vmatprep.mubr.f32.mxu1 %v997_v23  ;;  %v994_v55 = vsel %vm901_vm1, %v992_v31, %v993_v10  ;;  %5415 = vmatprep.subr.bf16.mxu1 %v5414_v58  ;;  %v761_v32 = vld [vmem:[%s8176_s3 + $0x1a0] sm:$0xff]  ;;  %v762_v11 = vld [vmem:[%s8176_s3 + $0x1a8] sm:$0xff]  ;;  %v5424_v30 = vpack.c.bf16 %v744_v48, %v743_v53  ;;  %v763_v51 = vld [vmem:[%s8176_s3 + $0x1b0] sm:$0xff] }
  0x6e   : > { %v6783_v9 = vld [vmem:[#allocation2 + $0x40] sm:$0xff]  ;;  %v6785_v21 = vld [vmem:[#allocation2 + $0x88] sm:$0xff]  ;;  %v5426_v56 = vpack.c.bf16 %v762_v11, %v761_v32  ;;  %v764_v52 = vld [vmem:[%s8176_s3 + $0x1b8] sm:$0xff] }
  0x6f   : > { %1300 = vmatmul.mubr.f32.gmra.mrb[30].mxu1 %v994_v55  ;;  %v745_v15 = vld [vmem:[%s8176_s3 + $0x120] sm:$0xff]  ;;  %v746_v61 = vld [vmem:[%s8176_s3 + $0x128] sm:$0xff]  ;;  %v5430_v35 = vpack.c.bf16 %v764_v52, %v763_v51  ;;  %v747_v36 = vld [vmem:[%s8176_s3 + $0x130] sm:$0xff] }
  0x70   : > { %5417 = vmatpush3.bf16.msra.mxu1 %v5416_v44  ;;  %1369 = vmatprep.mubr.f32.mxu1 %v678_v37  ;;  %v6801_v7 = vld [vmem:[#allocation2 + $0x80] sm:$0xff]  ;;  %v5428_v14 = vpack.c.bf16 %v746_v61, %v745_v15  ;;  %v6803_v34 = vld [vmem:[#allocation2 + $0xc8] sm:$0xff]  ;;  %v748_v24 = vld [vmem:[%s8176_s3 + $0x138] sm:$0xff] }
  0x71   : > { %5419 = vmatprep.subr.bf16.mxu1 %v5418_v59  ;;  %v765_v41 = vld [vmem:[%s8176_s3 + $0x1c0] sm:$0xff]  ;;  %v766_v26 = vld [vmem:[%s8176_s3 + $0x1c8] sm:$0xff]  ;;  %v5432_v2 = vpack.c.bf16 %v748_v24, %v747_v36  ;;  %v767_v12 = vld [vmem:[%s8176_s3 + $0x1d0] sm:$0xff] }
  0x72   : > { %v6819_v60 = vld [vmem:[#allocation2 + $0xc0] sm:$0xff]  ;;  %v6821_v63 = vld [vmem:[#allocation2 + $0x108] sm:$0xff]  ;;  %v5434_v4 = vpack.c.bf16 %v766_v26, %v765_v41  ;;  %v768_v31 = vld [vmem:[%s8176_s3 + $0x1d8] sm:$0xff] }
  0x73   : > { %1370 = vmatmul.mubr.f32.vlgmr.msra.gmra.mrb[32].mxu1 %v677_v40  ;;  %v749_v25 = vld [vmem:[%s8176_s3 + $0x140] sm:$0xff]  ;;  %v750_v8 = vld [vmem:[%s8176_s3 + $0x148] sm:$0xff]  ;;  %v5438_v5 = vpack.c.bf16 %v768_v31, %v767_v12  ;;  %v751_v13 = vld [vmem:[%s8176_s3 + $0x150] sm:$0xff] }
  0x74   : > { %5421 = vmatpush3.bf16.msra.mxu1 %v5420_v47  ;;  %1374 = vmatprep.mubr.f32.mxu1 %v6768_v28  ;;  %v6837_v10 = vld [vmem:[#allocation2 + $0x100] sm:$0xff]  ;;  %v5436_v23 = vpack.c.bf16 %v750_v8, %v749_v25  ;;  %v6839_v58 = vld [vmem:[#allocation2 + $0x148] sm:$0xff]  ;;  %v752_v42 = vld [vmem:[%s8176_s3 + $0x158] sm:$0xff] }
  0x75   : > { %5423 = vmatprep.subr.bf16.mxu1 %v5422_v16  ;;  %v769_v45 = vld [vmem:[%s8176_s3 + $0x1e0] sm:$0xff]  ;;  %v770_v55 = vld [vmem:[%s8176_s3 + $0x1e8] sm:$0xff]  ;;  %v5440_v0 = vpack.c.bf16 %v752_v42, %v751_v13  ;;  %v771_v53 = vld [vmem:[%s8176_s3 + $0x1f0] sm:$0xff] }
  0x76   : > { %v335_v44 = vld [vmem:[%s6115_s29 + $0xe8] sm:$0xff]  ;;  %v334_v37 = vld [vmem:[%s6115_s29 + $0xe0] sm:$0xff]  ;;  %v5442_v40 = vpack.c.bf16 %v770_v55, %v769_v45  ;;  %v772_v48 = vld [vmem:[%s8176_s3 + $0x1f8] sm:$0xff] }
  0x77   : > { %1375 = vmatmul.mubr.f32.gmra.mrb[34].mxu1 %v6783_v9  ;;  %v389_v59 = vmul.f32 %v6139_v43, %v335_v44  ;;  %v388_v27 = vmul.f32 %v6148_v46, %v334_v37  ;;  %v6859_v3 = vld [vmem:[#allocation2 + $0x140] sm:$0xff]  ;;  %v6861_v38 = vld [vmem:[#allocation2 + $0x188] sm:$0xff]  ;;  %v755_v15 = vld [vmem:[%s8176_s3 + $0x170] sm:$0xff] }
  0x78   : > { %5425 = vmatpush3.bf16.msra.mxu1 %v5424_v30  ;;  %1379 = vmatprep.mubr.f32.mxu1 %v6785_v21  ;;  %v753_v47 = vld [vmem:[%s8176_s3 + $0x160] sm:$0xff]  ;;  %v754_v43 = vld [vmem:[%s8176_s3 + $0x168] sm:$0xff]  ;;  %v756_v61 = vld [vmem:[%s8176_s3 + $0x178] sm:$0xff] }
  0x79   : > { %5427 = vmatprep.subr.bf16.mxu1 %v5426_v56  ;;  %v443_v46 = vadd.f32 %v6157_v49, %v389_v59  ;;  %v6871_v16 = vadd.f32 %v6160_v50, %v388_v27  ;;  %v6882_v49 = vld [vmem:[#allocation2 + $0x180] sm:$0xff]  ;;  %v5444_v50 = vpack.c.bf16 %v754_v43, %v753_v47  ;;  %v6884_v30 = vld [vmem:[#allocation2 + $0x1c8] sm:$0xff]  ;;  %v5446_v56 = vpack.c.bf16 %v772_v48, %v771_v53  ;;  %v680_v41 = vld [vmem:[#allocation2 + $0x18] sm:$0xff] }
  0x7a   : > { %v6902_v36 = vld [vmem:[#allocation2 + $0x1c0] sm:$0xff]  ;;  %v5448_v24 = vpack.c.bf16 %v756_v61, %v755_v15  ;;  %v337_v25 = vld [vmem:[%s6115_s29 + $0xf8] sm:$0xff]  ;;  %v3950_v8 = vld [vmem:[%s8176_s3 + $0x490] sm:$0xff] }
  0x7b   : > { %1380 = vmatmul.mubr.f32.gmra.mrb[36].mxu1 %v6801_v7  ;;  %v475_v32 = vmax.f32 %v443_v46, 0.0  ;;  %v474_v11 = vmax.f32 %v6871_v16, 0.0  ;;  %v3951_v12 = vld [vmem:[%s8176_s3 + $0x498] sm:$0xff]  ;;  %v391_v31 = vmul.f32 %v6321_v18, %v337_v25  ;;  %v679_v13 = vld [vmem:[#allocation2 + $0x10] sm:$0xff]  ;;  %v3952_v59 = vld [vmem:[%s8176_s3 + $0x4a0] sm:$0xff] }
  0x7c   : > { %5429 = vmatpush3.bf16.msra.mxu1 %v5428_v14  ;;  %1384 = vmatprep.mubr.f32.mxu1 %v6803_v34  ;;  %v3948_v14 = vld [vmem:[%s8176_s3 + $0x480] sm:$0xff]  ;;  %v6922_v55 = vld [vmem:[#allocation2 + $0x58] sm:$0xff]  ;;  %v5454_v44 = vpack.c.bf16 %v3951_v12, %v3950_v8  ;;  %v3934_v37 = vld [vmem:[%s8176_s3 + $0x410] sm:$0xff] }
  0x7d   : > { %5431 = vmatprep.subr.bf16.mxu1 %v5430_v35  ;;  %v577_v51 = vrot.slane %v475_v32, 7  ;;  %v576_v52 = vrot.slane %v474_v11, 7  ;;  %v3949_v35 = vld [vmem:[%s8176_s3 + $0x488] sm:$0xff]  ;;  %v445_v45 = vadd.f32 %v6372_v54, %v391_v31  ;;  %v3935_v18 = vld [vmem:[%s8176_s3 + $0x418] sm:$0xff]  ;;  %v3936_v53 = vld [vmem:[%s8176_s3 + $0x420] sm:$0xff] }
  0x7e   : > { %v5450_v26 = vpack.c.bf16 %v3949_v35, %v3948_v14  ;;  %v3953_v54 = vld [vmem:[%s8176_s3 + $0x4a8] sm:$0xff]  ;;  %v5456_v47 = vpack.c.bf16 %v3935_v18, %v3934_v37  ;;  %v6956_v15 = vld [vmem:[#allocation2 + $0x90] sm:$0xff]  ;;  %v3939_v35 = vld [vmem:[%s8176_s3 + $0x438] sm:$0xff] }
  0x7f   : > { %1385 = vmatmul.mubr.f32.gmra.mrb[38].mxu1 %v6819_v60  ;;  %670 = vst [vmem:[#allocation2 + $0x208] sm:$0xfe] %v577_v51  ;;  %674 = vst [vmem:[#allocation2 + $0x228] sm:$0x1] %v577_v51  ;;  %v477_v27 = vmax.f32 %v445_v45, 0.0  ;;  %v5458_v46 = vpack.c.bf16 %v3953_v54, %v3952_v59  ;;  %v3937_v48 = vld [vmem:[%s8176_s3 + $0x428] sm:$0xff] }
  0x80   : > { %5433 = vmatpush3.bf16.msra.mxu1 %v5432_v2  ;;  %1389 = vmatprep.mubr.f32.mxu1 %v6821_v63  ;;  %669 = vst [vmem:[#allocation2 + $0x200] sm:$0xfe] %v576_v52  ;;  %673 = vst [vmem:[#allocation2 + $0x220] sm:$0x1] %v576_v52  ;;  %v3932_v2 = vld [vmem:[%s8176_s3 + $0x400] sm:$0xff]  ;;  %v5460_v61 = vpack.c.bf16 %v3937_v48, %v3936_v53  ;;  %v6958_v51 = vld [vmem:[#allocation2 + $0xd8] sm:$0xff] }
  0x81   : > { %5435 = vmatprep.subr.bf16.mxu1 %v5434_v4  ;;  %v3933_v4 = vld [vmem:[%s8176_s3 + $0x408] sm:$0xff]  ;;  %v579_v43 = vrot.slane %v477_v27, 7  ;;  %v3938_v14 = vld [vmem:[%s8176_s3 + $0x430] sm:$0xff]  ;;  %v3940_v8 = vld [vmem:[%s8176_s3 + $0x440] sm:$0xff] }
  0x82   : > { %v5452_v42 = vpack.c.bf16 %v3933_v4, %v3932_v2  ;;  %v5464_v2 = vpack.c.bf16 %v3939_v35, %v3938_v14  ;;  %v6976_v4 = vld [vmem:[#allocation2 + $0x118] sm:$0xff]  ;;  %v3941_v12 = vld [vmem:[%s8176_s3 + $0x448] sm:$0xff]  ;;  %v3958_v31 = vld [vmem:[%s8176_s3 + $0x4d0] sm:$0xff] }
  0x83   : > { %1390 = vmatmul.mubr.f32.gmra.mrb[40].mxu1 %v6837_v10  ;;  %672 = vst [vmem:[#allocation2 + $0x218] sm:$0xfe] %v579_v43  ;;  %676 = vst [vmem:[#allocation2 + $0x238] sm:$0x1] %v579_v43  ;;  %v3943_v37 = vld [vmem:[%s8176_s3 + $0x458] sm:$0xff]  ;;  %v3960_v18 = vld [vmem:[%s8176_s3 + $0x4e0] sm:$0xff] }
  0x84   : > { %5437 = vmatpush3.bf16.msra.mxu1 %v5436_v23  ;;  %1394 = vmatprep.mubr.f32.mxu1 %v6839_v58  ;;  %v336_v23 = vld [vmem:[%s6115_s29 + $0xf0] sm:$0xff]  ;;  %v7012_v27 = vld [vmem:[#allocation2 + $0x198] sm:$0xff]  ;;  %v3945_v43 = vld [vmem:[%s8176_s3 + $0x468] sm:$0xff] }
  0x85   : > { %5439 = vmatprep.subr.bf16.mxu1 %v5438_v5  ;;  %v390_v5 = vmul.f32 %v6377_v57, %v336_v23  ;;  %v3959_v23 = vld [vmem:[%s8176_s3 + $0x4d8] sm:$0xff]  ;;  %v7010_v59 = vld [vmem:[#allocation2 + $0x150] sm:$0xff]  ;;  %v3980_v14 = vld [vmem:[%s8176_s3 + $0x580] sm:$0xff] }
  0x86   : > { %v5470_v45 = vpack.c.bf16 %v3959_v23, %v3958_v31  ;;  %v3963_v53 = vld [vmem:[%s8176_s3 + $0x4f8] sm:$0xff]  ;;  %v7028_v48 = vld [vmem:[#allocation2 + $0x190] sm:$0xff]  ;;  %v3981_v35 = vld [vmem:[%s8176_s3 + $0x588] sm:$0xff] }
  0x87   : > { %1395 = vmatmul.mubr.f32.gmra.mrb[42].mxu1 %v6859_v3  ;;  %v444_v57 = vadd.f32 %v6466_v17, %v390_v5  ;;  %v6940_v17 = vld [vmem:[#allocation2 + $0x98] sm:$0xff]  ;;  %v6992_v5 = vld [vmem:[#allocation2 + $0x110] sm:$0xff]  ;;  %v4067_v22 = vld [vmem:[%s8180_s7 + $0xa8] sm:$0xff] }
  0x88   : > { %5441 = vmatpush3.bf16.msra.mxu1 %v5440_v0  ;;  %1399 = vmatprep.mubr.f32.mxu1 %v6861_v38  ;;  %v3983_v31 = vld [vmem:[%s8176_s3 + $0x598] sm:$0xff]  ;;  %v2470_v16 = vld [vmem:[%s8180_s7 + $0x28] sm:$0xff] }
  0x89   : > { %5443 = vmatprep.subr.bf16.mxu1 %v5442_v40  ;;  %v476_v0 = vmax.f32 %v444_v57, 0.0  ;;  %v6938_v40 = vld [vmem:[#allocation2 + $0x50] sm:$0xff]  ;;  %v3961_v57 = vld [vmem:[%s8176_s3 + $0x4e8] sm:$0xff]  ;;  %v2468_v20 = vld [vmem:[%s8180_s7 + $0x18] sm:$0xff] }
  0x8b   : > { %1400 = vmatmul.mubr.f32.gmra.mrb[44].mxu1 %v6882_v49  ;;  %v578_v32 = vrot.slane %v476_v0, 7  ;;  %v5474_v0 = vpack.c.bf16 %v3961_v57, %v3960_v18  ;;  %v3985_v18 = vld [vmem:[%s8176_s3 + $0x5a8] sm:$0xff] }
  0x8c   : > { %5445 = vmatpush3.bf16.msra.mxu1 %v5444_v50  ;;  %1404 = vmatprep.mubr.f32.mxu1 %v6884_v30  ;;  %v3954_v50 = vld [vmem:[%s8176_s3 + $0x4b0] sm:$0xff] }
  0x8d   : > { %5447 = vmatprep.subr.bf16.mxu1 %v5446_v56  ;;  %v3955_v56 = vld [vmem:[%s8176_s3 + $0x4b8] sm:$0xff]  ;;  %671 = vst [vmem:[#allocation2 + $0x210] sm:$0xfe] %v578_v32  ;;  %675 = vst [vmem:[#allocation2 + $0x230] sm:$0x1] %v578_v32 }
  0x8e   : > { %v5462_v52 = vpack.c.bf16 %v3955_v56, %v3954_v50  ;;  %v7030_v50 = vld [vmem:[#allocation2 + $0x1d8] sm:$0xff] }
  0x8f   : > { %1405 = vmatmul.mubr.f32.gmra.mrb[46].mxu1 %v6902_v36 }
  0x90   : > { %5449 = vmatpush3.bf16.msra.mxu1 %v5448_v24  ;;  %1474 = vmatprep.mubr.f32.mxu1 %v680_v41  ;;  %v3956_v24 = vld [vmem:[%s8176_s3 + $0x4c0] sm:$0xff]  ;;  %v3957_v41 = vld [vmem:[%s8176_s3 + $0x4c8] sm:$0xff] }
  0x91   : > { %5451 = vmatprep.subr.bf16.mxu1 %v5450_v26  ;;  %v6974_v26 = vld [vmem:[#allocation2 + $0xd0] sm:$0xff]  ;;  %v5466_v25 = vpack.c.bf16 %v3957_v41, %v3956_v24 }
  0x92   : > { %v7046_v24 = vld [vmem:[#allocation2 + $0x1d0] sm:$0xff] }
  0x93   : > { %1475 = vmatmul.mubr.f32.vlgmr.msra.gmra.mrb[48].mxu1 %v679_v13  ;;  %v5468_v13 = vpack.c.bf16 %v3941_v12, %v3940_v8  ;;  %v3965_v8 = vld [vmem:[%s8176_s3 + $0x508] sm:$0xff]  ;;  %v3982_v12 = vld [vmem:[%s8176_s3 + $0x590] sm:$0xff] }
  0x94   : > { %5453 = vmatpush3.bf16.msra.mxu1 %v5452_v42  ;;  %1479 = vmatprep.mubr.f32.mxu1 %v6922_v55  ;;  %v6994_v42 = vld [vmem:[#allocation2 + $0x158] sm:$0xff] }
  0x95   : > { %5455 = vmatprep.subr.bf16.mxu1 %v5454_v44  ;;  %v3942_v44 = vld [vmem:[%s8176_s3 + $0x450] sm:$0xff] }
  0x96   : > { %v5472_v54 = vpack.c.bf16 %v3943_v37, %v3942_v44  ;;  %v3967_v44 = vld [vmem:[%s8176_s3 + $0x518] sm:$0xff]  ;;  %v3984_v37 = vld [vmem:[%s8176_s3 + $0x5a0] sm:$0xff] }
  0x97   : > { %1480 = vmatmul.mubr.f32.gmra.mrb[50].mxu1 %v6938_v40  ;;  %v5490_v57 = vpack.c.bf16 %v3985_v18, %v3984_v37  ;;  %v3979_v37 = vld [vmem:[%s8176_s3 + $0x578] sm:$0xff]  ;;  %v4012_v18 = vld [vmem:[%s8176_s3 + $0x680] sm:$0xff] }
  0x98   : > { %5457 = vmatpush3.bf16.msra.mxu1 %v5456_v47  ;;  %1484 = vmatprep.mubr.f32.mxu1 %v6940_v17  ;;  %v3944_v47 = vld [vmem:[%s8176_s3 + $0x460] sm:$0xff] }
  0x99   : > { %5459 = vmatprep.subr.bf16.mxu1 %v5458_v46  ;;  %v3962_v46 = vld [vmem:[%s8176_s3 + $0x4f0] sm:$0xff]  ;;  %v5476_v32 = vpack.c.bf16 %v3945_v43, %v3944_v47 }
  0x9a   : > { %v5478_v56 = vpack.c.bf16 %v3963_v53, %v3962_v46  ;;  %v3986_v47 = vld [vmem:[%s8176_s3 + $0x5b0] sm:$0xff]  ;;  %v3971_v53 = vld [vmem:[%s8176_s3 + $0x538] sm:$0xff] }
  0x9b   : > { %1485 = vmatmul.mubr.f32.gmra.mrb[52].mxu1 %v6956_v15  ;;  %v3970_v46 = vld [vmem:[%s8176_s3 + $0x530] sm:$0xff] }
  0x9c   : > { %5461 = vmatpush3.bf16.msra.mxu1 %v5460_v61  ;;  %1489 = vmatprep.mubr.f32.mxu1 %v6958_v51  ;;  %v3946_v61 = vld [vmem:[%s8176_s3 + $0x470] sm:$0xff] }
  0x9d   : > { %5463 = vmatprep.subr.bf16.mxu1 %v5462_v52  ;;  %v3947_v52 = vld [vmem:[%s8176_s3 + $0x478] sm:$0xff] }
  0x9e   : > { %v5480_v41 = vpack.c.bf16 %v3947_v52, %v3946_v61  ;;  %v3972_v61 = vld [vmem:[%s8176_s3 + $0x540] sm:$0xff]  ;;  %v3973_v52 = vld [vmem:[%s8176_s3 + $0x548] sm:$0xff] }
  0x9f   : > { %1490 = vmatmul.mubr.f32.gmra.mrb[54].mxu1 %v6974_v26 }
  0xa0   : > { %5465 = vmatpush3.bf16.msra.mxu1 %v5464_v2  ;;  %1494 = vmatprep.mubr.f32.mxu1 %v6976_v4  ;;  %v5482_v2 = vpack.c.bf16 %v3981_v35, %v3980_v14  ;;  %v3990_v14 = vld [vmem:[%s8176_s3 + $0x5d0] sm:$0xff] }
  0xa1   : > { %5467 = vmatprep.subr.bf16.mxu1 %v5466_v25  ;;  %v3964_v25 = vld [vmem:[%s8176_s3 + $0x500] sm:$0xff] }
  0xa2   : > { %v5484_v23 = vpack.c.bf16 %v3965_v8, %v3964_v25  ;;  %v3992_v25 = vld [vmem:[%s8176_s3 + $0x5e0] sm:$0xff] }
  0xa3   : > { %1495 = vmatmul.mubr.f32.gmra.mrb[56].mxu1 %v6992_v5 }
  0xa4   : > { %5469 = vmatpush3.bf16.msra.mxu1 %v5468_v13  ;;  %1499 = vmatprep.mubr.f32.mxu1 %v6994_v42  ;;  %v5486_v13 = vpack.c.bf16 %v3983_v31, %v3982_v12  ;;  %v3976_v12 = vld [vmem:[%s8176_s3 + $0x560] sm:$0xff]  ;;  %v3977_v31 = vld [vmem:[%s8176_s3 + $0x568] sm:$0xff] }
  0xa5   : > { %5471 = vmatprep.subr.bf16.mxu1 %v5470_v45  ;;  %v3966_v45 = vld [vmem:[%s8176_s3 + $0x510] sm:$0xff] }
  0xa7   : > { %1500 = vmatmul.mubr.f32.gmra.mrb[58].mxu1 %v7010_v59 }
  0xa8   : > { %5473 = vmatpush3.bf16.msra.mxu1 %v5472_v54  ;;  %1504 = vmatprep.mubr.f32.mxu1 %v7012_v27  ;;  %v3968_v54 = vld [vmem:[%s8176_s3 + $0x520] sm:$0xff] }
  0xa9   : > { %5475 = vmatprep.subr.bf16.mxu1 %v5474_v0  ;;  %v3969_v0 = vld [vmem:[%s8176_s3 + $0x528] sm:$0xff] }
  0xab   : > { %1505 = vmatmul.mubr.f32.gmra.mrb[60].mxu1 %v7028_v48 }
  0xac   : > { %5477 = vmatpush3.bf16.msra.mxu1 %v5476_v32  ;;  %1509 = vmatprep.mubr.f32.mxu1 %v7030_v50  ;;  %v3988_v32 = vld [vmem:[%s8176_s3 + $0x5c0] sm:$0xff] }
  0xad   : > { %5479 = vmatprep.subr.bf16.mxu1 %v5478_v56 }
  0xaf   : > { %1510 = vmatmul.mubr.f32.gmra.mrb[62].mxu1 %v7046_v24 }
  0xb0   : > { %5481 = vmatpush3.bf16.msra.mxu1 %v5480_v41  ;;  %1676 = vmatprep.mubr.f32.mxu1 %v6768_v28  ;;  %v5488_v28 = vpack.c.bf16 %v3967_v44, %v3966_v45  ;;  %v3974_v41 = vld [vmem:[%s8176_s3 + $0x550] sm:$0xff] }
  0xb1   : > { %5483 = vmatprep.subr.bf16.mxu1 %v5482_v2  ;;  %v3975_v2 = vld [vmem:[%s8176_s3 + $0x558] sm:$0xff]  ;;  %v3978_v44 = vld [vmem:[%s8176_s3 + $0x570] sm:$0xff] }
  0xb3   : > { %1677 = vmatmul.mubr.f32.vlgmr.msra.gmra.mrb[64].mxu1 %v6783_v9  ;;  %v3987_v9 = vld [vmem:[%s8176_s3 + $0x5b8] sm:$0xff] }
  0xb4   : > { %5485 = vmatpush3.bf16.msra.mxu1 %v5484_v23  ;;  %1681 = vmatprep.mubr.f32.mxu1 %v6785_v21  ;;  %v5492_v21 = vpack.c.bf16 %v3969_v0, %v3968_v54  ;;  %v5494_v43 = vpack.c.bf16 %v3987_v9, %v3986_v47  ;;  %v3994_v23 = vld [vmem:[%s8176_s3 + $0x5f0] sm:$0xff]  ;;  %v3996_v54 = vld [vmem:[%s8176_s3 + $0x600] sm:$0xff]  ;;  %v3997_v0 = vld [vmem:[%s8176_s3 + $0x608] sm:$0xff] }
  0xb5   : > { %5487 = vmatprep.subr.bf16.mxu1 %v5486_v13  ;;  %v1544_v13 = vld [vmem:[#allocation2 + $0x208] sm:$0xff]  ;;  %v4014_v47 = vld [vmem:[%s8176_s3 + $0x690] sm:$0xff]  ;;  %v5516_v9 = vpack.c.bf16 %v3997_v0, %v3996_v54  ;;  %v1834_v54 = vld [vmem:[#allocation2 + $0x60] sm:$0x1] }
  0xb6   : > { %v1839_v0 = vld [vmem:[#allocation2 + $0x88] sm:$0xfe] }
  0xb7   : > { %1682 = vmatmul.mubr.f32.gmra.mrb[66].mxu1 %v6801_v7  ;;  %v3989_v7 = vld [vmem:[%s8176_s3 + $0x5c8] sm:$0xff] }
  0xb8   : > { %5489 = vmatpush3.bf16.msra.mxu1 %v5488_v28  ;;  %1686 = vmatprep.mubr.f32.mxu1 %v6803_v34  ;;  %v5496_v34 = vpack.c.bf16 %v3971_v53, %v3970_v46  ;;  %v5498_v56 = vpack.c.bf16 %v3989_v7, %v3988_v32  ;;  %v5512_v28 = vpack.c.bf16 %v3979_v37, %v3978_v44  ;;  %v3999_v46 = vld [vmem:[%s8176_s3 + $0x618] sm:$0xff]  ;;  %v4016_v53 = vld [vmem:[%s8176_s3 + $0x6a0] sm:$0xff]  ;;  %v4017_v32 = vld [vmem:[%s8176_s3 + $0x6a8] sm:$0xff] }
  0xb9   : > { %5491 = vmatprep.subr.bf16.mxu1 %v5490_v57  ;;  %v5522_v7 = vpack.c.bf16 %v4017_v32, %v4016_v53  ;;  %v4010_v44 = vld [vmem:[%s8176_s3 + $0x670] sm:$0xff]  ;;  %v4011_v37 = vld [vmem:[%s8176_s3 + $0x678] sm:$0xff]  ;;  %v4029_v53 = vld [vmem:[%s8176_s3 + $0x708] sm:$0xff] }
  0xba   : > { %v4046_v32 = vld [vmem:[%s8176_s3 + $0x790] sm:$0xff] }
  0xbb   : > { %1687 = vmatmul.mubr.f32.gmra.mrb[68].mxu1 %v6819_v60  ;;  %v3991_v60 = vld [vmem:[%s8176_s3 + $0x5d8] sm:$0xff] }
  0xbc   : > { %5493 = vmatpush3.bf16.msra.mxu1 %v5492_v21  ;;  %1691 = vmatprep.mubr.f32.mxu1 %v6821_v63  ;;  %v5500_v63 = vpack.c.bf16 %v3973_v52, %v3972_v61  ;;  %v5502_v35 = vpack.c.bf16 %v3991_v60, %v3990_v14  ;;  %v4018_v61 = vld [vmem:[%s8176_s3 + $0x6b0] sm:$0xff]  ;;  %v4003_v60 = vld [vmem:[%s8176_s3 + $0x638] sm:$0xff] }
  0xbd   : > { %5495 = vmatprep.subr.bf16.mxu1 %v5494_v43  ;;  %v3998_v43 = vld [vmem:[%s8176_s3 + $0x610] sm:$0xff] }
  0xbe   : > { %v4002_v14 = vld [vmem:[%s8176_s3 + $0x630] sm:$0xff] }
  0xbf   : > { %1692 = vmatmul.mubr.f32.gmra.mrb[70].mxu1 %v6837_v10  ;;  %v3993_v10 = vld [vmem:[%s8176_s3 + $0x5e8] sm:$0xff] }
  0xc0   : > { %5497 = vmatpush3.bf16.msra.mxu1 %v5496_v34  ;;  %1696 = vmatprep.mubr.f32.mxu1 %v6839_v58  ;;  %v5504_v58 = vpack.c.bf16 %v3975_v2, %v3974_v41  ;;  %v5506_v8 = vpack.c.bf16 %v3993_v10, %v3992_v25  ;;  %v4000_v34 = vld [vmem:[%s8176_s3 + $0x620] sm:$0xff]  ;;  %v4005_v2 = vld [vmem:[%s8176_s3 + $0x648] sm:$0xff]  ;;  %v4022_v25 = vld [vmem:[%s8176_s3 + $0x6d0] sm:$0xff] }
  0xc1   : > { %5499 = vmatprep.subr.bf16.mxu1 %v5498_v56  ;;  %v4001_v56 = vld [vmem:[%s8176_s3 + $0x628] sm:$0xff]  ;;  %v4004_v41 = vld [vmem:[%s8176_s3 + $0x640] sm:$0xff] }
  0xc3   : > { %1697 = vmatmul.mubr.f32.gmra.mrb[72].mxu1 %v6859_v3  ;;  %v3995_v3 = vld [vmem:[%s8176_s3 + $0x5f8] sm:$0xff] }
  0xc4   : > { %5501 = vmatpush3.bf16.msra.mxu1 %v5500_v63  ;;  %1701 = vmatprep.mubr.f32.mxu1 %v6861_v38  ;;  %v5508_v38 = vpack.c.bf16 %v3977_v31, %v3976_v12  ;;  %v5510_v45 = vpack.c.bf16 %v3995_v3, %v3994_v23  ;;  %v4020_v63 = vld [vmem:[%s8176_s3 + $0x6c0] sm:$0xff]  ;;  %v4009_v3 = vld [vmem:[%s8176_s3 + $0x668] sm:$0xff] }
  0xc5   : > { %5503 = vmatprep.subr.bf16.mxu1 %v5502_v35  ;;  %v4024_v12 = vld [vmem:[%s8176_s3 + $0x6e0] sm:$0xff] }
  0xc6   : > { %v4008_v23 = vld [vmem:[%s8176_s3 + $0x660] sm:$0xff] }
  0xc7   : > { %1702 = vmatmul.mubr.f32.gmra.mrb[74].mxu1 %v6882_v49  ;;  %v4013_v49 = vld [vmem:[%s8176_s3 + $0x688] sm:$0xff] }
  0xc8   : > { %5505 = vmatpush3.bf16.msra.mxu1 %v5504_v58  ;;  %1706 = vmatprep.mubr.f32.mxu1 %v6884_v30  ;;  %v1543_v30 = vld [vmem:[#allocation2 + $0x200] sm:$0xff]  ;;  %v5514_v57 = vpack.c.bf16 %v4013_v49, %v4012_v18  ;;  %v4006_v58 = vld [vmem:[%s8176_s3 + $0x650] sm:$0xff]  ;;  %v1546_v49 = vld [vmem:[#allocation2 + $0x218] sm:$0xff] }
  0xc9   : > { %5507 = vmatprep.subr.bf16.mxu1 %v5506_v8  ;;  %v4007_v8 = vld [vmem:[%s8176_s3 + $0x658] sm:$0xff]  ;;  %v1830_v18 = vld [vmem:[#allocation2 + $0x40] sm:$0xfe] }
  0xcb   : > { %1707 = vmatmul.mubr.f32.gmra.mrb[76].mxu1 %v6902_v36  ;;  %v4015_v36 = vld [vmem:[%s8176_s3 + $0x698] sm:$0xff] }
  0xcc   : > { %5509 = vmatpush3.bf16.msra.mxu1 %v5508_v38  ;;  %1711 = vmatprep.mubr.f32.mxu1 %v1544_v13  ;;  %v5518_v21 = vpack.c.bf16 %v4015_v36, %v4014_v47  ;;  %v4026_v38 = vld [vmem:[%s8176_s3 + $0x6f0] sm:$0xff]  ;;  %v1835_v13 = vld [vmem:[#allocation2 + $0x68] sm:$0x1]  ;;  %v4028_v36 = vld [vmem:[%s8176_s3 + $0x700] sm:$0xff] }
  0xcd   : > { %5511 = vmatprep.subr.bf16.mxu1 %v5510_v45  ;;  %v5540_v45 = vpack.c.bf16 %v4009_v3, %v4008_v23  ;;  %v1843_v47 = vld [vmem:[#allocation2 + $0xa8] sm:$0x1] }
  0xcf   : > { %1712 = vmatmul.mubr.f32.gmra.mrb[78].mxu1 %v1543_v30 }
  0xd0   : > { %5513 = vmatpush3.bf16.msra.mxu1 %v5512_v28  ;;  %1781 = vmatprep.mubr.f32.mxu1 %v6922_v55  ;;  %v5520_v55 = vpack.c.bf16 %v3999_v46, %v3998_v43  ;;  %v1958_v43 = vrot.slane %v1830_v18, 1  ;;  %v1959_v46 = vrot.slane %v1834_v54, 1  ;;  %v1858_v18 = vld [vmem:[#allocation2 + $0x120] sm:$0x1] }
  0xd1   : > { %5515 = vmatprep.subr.bf16.mxu1 %v5514_v57  ;;  %v1962_v57 = vrot.slane %v1835_v13, 1 }
  0xd3   : > { %1782 = vmatmul.mubr.f32.vlgmr.msra.gmra.mrb[80].mxu1 %v6938_v40  ;;  %v4019_v40 = vld [vmem:[%s8176_s3 + $0x6b8] sm:$0xff] }
  0xd4   : > { %5517 = vmatpush3.bf16.msra.mxu1 %v5516_v9  ;;  %1786 = vmatprep.mubr.f32.mxu1 %v6940_v17  ;;  %v5524_v17 = vpack.c.bf16 %v4001_v56, %v4000_v34  ;;  %v5526_v52 = vpack.c.bf16 %v4019_v40, %v4018_v61  ;;  %v1545_v9 = vld [vmem:[#allocation2 + $0x210] sm:$0xff]  ;;  %v1974_v34 = vrot.slane %v1843_v47, 1  ;;  %v1838_v56 = vld [vmem:[#allocation2 + $0x80] sm:$0xfe]  ;;  %v1842_v61 = vld [vmem:[#allocation2 + $0xa0] sm:$0x1] }
  0xd5   : > { %5519 = vmatprep.subr.bf16.mxu1 %v5518_v21  ;;  %v5544_v21 = vpack.c.bf16 %v4011_v37, %v4010_v44  ;;  %v4047_v40 = vld [vmem:[%s8176_s3 + $0x798] sm:$0xff]  ;;  %v1862_v47 = vld [vmem:[#allocation2 + $0x140] sm:$0xfe] }
  0xd7   : > { %1787 = vmatmul.mubr.f32.gmra.mrb[82].mxu1 %v6956_v15  ;;  %v4021_v15 = vld [vmem:[%s8176_s3 + $0x6c8] sm:$0xff] }
  0xd8   : > { %5521 = vmatpush3.bf16.msra.mxu1 %v5520_v55  ;;  %1791 = vmatprep.mubr.f32.mxu1 %v6958_v51  ;;  %v5528_v51 = vpack.c.bf16 %v4003_v60, %v4002_v14  ;;  %v5530_v35 = vpack.c.bf16 %v4021_v15, %v4020_v63  ;;  %v1960_v14 = vsel %vm901_vm1, %v1958_v43, %v1959_v46  ;;  %v1970_v63 = vrot.slane %v1838_v56, 1  ;;  %v4034_v43 = vld [vmem:[%s8176_s3 + $0x730] sm:$0xff]  ;;  %v4035_v46 = vld [vmem:[%s8176_s3 + $0x738] sm:$0xff] }
  0xd9   : > { %5523 = vmatprep.subr.bf16.mxu1 %v5522_v7  ;;  %v1973_v7 = vrot.slane %v1839_v0, 1  ;;  %v5548_v60 = vpack.c.bf16 %v4029_v53, %v4028_v36  ;;  %v1971_v15 = vrot.slane %v1842_v61, 1  ;;  %v1995_v0 = vrot.slane %v1858_v18, 1  ;;  %v1866_v36 = vld [vmem:[#allocation2 + $0x160] sm:$0x1] }
  0xda   : > { %v2006_v56 = vrot.slane %v1862_v47, 1  ;;  %v2007_v61 = vrot.slane %v1866_v36, 1  ;;  %v4041_v47 = vld [vmem:[%s8176_s3 + $0x768] sm:$0xff] }
  0xdb   : > { %1792 = vmatmul.mubr.f32.gmra.mrb[84].mxu1 %v6974_v26  ;;  %v4023_v26 = vld [vmem:[%s8176_s3 + $0x6d8] sm:$0xff] }
  0xdc   : > { %5525 = vmatpush3.bf16.msra.mxu1 %v5524_v17  ;;  %1796 = vmatprep.mubr.f32.mxu1 %v6976_v4  ;;  %v5532_v4 = vpack.c.bf16 %v4005_v2, %v4004_v41  ;;  %v5534_v10 = vpack.c.bf16 %v4023_v26, %v4022_v25  ;;  %v1847_v17 = vld [vmem:[#allocation2 + $0xc8] sm:$0xfe]  ;;  %v4048_v41 = vld [vmem:[%s8176_s3 + $0x7a0] sm:$0xff]  ;;  %v1975_v2 = vsel %vm901_vm1, %v1973_v7, %v1974_v34  ;;  %v1875_v34 = vld [vmem:[#allocation2 + $0x1a8] sm:$0x1] }
  0xdd   : > { %5527 = vmatprep.subr.bf16.mxu1 %v5526_v52  ;;  %v1851_v52 = vld [vmem:[#allocation2 + $0xe8] sm:$0x1]  ;;  %v5550_v25 = vpack.c.bf16 %v4047_v40, %v4046_v32  ;;  %v1985_v26 = vrot.slane %v1847_v17, 1  ;;  %v1871_v7 = vld [vmem:[#allocation2 + $0x188] sm:$0xfe]  ;;  %v5560_v17 = vpack.c.bf16 %v4035_v46, %v4034_v43  ;;  %v4059_v46 = vld [vmem:[%s8176_s3 + $0x7f8] sm:$0xff] }
  0xdf   : > { %1797 = vmatmul.mubr.f32.gmra.mrb[86].mxu1 %v6992_v5  ;;  %v4025_v5 = vld [vmem:[%s8176_s3 + $0x6e8] sm:$0xff] }
  0xe0   : > { %5529 = vmatpush3.bf16.msra.mxu1 %v5528_v51  ;;  %1801 = vmatprep.mubr.f32.mxu1 %v6994_v42  ;;  %v5536_v42 = vpack.c.bf16 %v4007_v8, %v4006_v58  ;;  %v5538_v31 = vpack.c.bf16 %v4025_v5, %v4024_v12  ;;  %v4030_v51 = vld [vmem:[%s8176_s3 + $0x710] sm:$0xff]  ;;  %v1850_v58 = vld [vmem:[#allocation2 + $0xe0] sm:$0x1]  ;;  %v4049_v8 = vld [vmem:[%s8176_s3 + $0x7a8] sm:$0xff] }
  0xe1   : > { %5531 = vmatprep.subr.bf16.mxu1 %v5530_v35  ;;  %v4031_v35 = vld [vmem:[%s8176_s3 + $0x718] sm:$0xff]  ;;  %v1855_v12 = vld [vmem:[#allocation2 + $0x108] sm:$0xfe]  ;;  %v1859_v5 = vld [vmem:[#allocation2 + $0x128] sm:$0x1]  ;;  %v1983_v3 = vrot.slane %v1850_v58, 1  ;;  %v5554_v13 = vpack.c.bf16 %v4049_v8, %v4048_v41 }
  0xe2   : > { %v1997_v44 = vrot.slane %v1855_v12, 1  ;;  %v1998_v37 = vrot.slane %v1859_v5, 1  ;;  %v1874_v41 = vld [vmem:[#allocation2 + $0x1a0] sm:$0x1]  ;;  %v4038_v5 = vld [vmem:[%s8176_s3 + $0x750] sm:$0xff] }
  0xe3   : > { %1802 = vmatmul.mubr.f32.gmra.mrb[88].mxu1 %v7010_v59  ;;  %v4027_v59 = vld [vmem:[%s8176_s3 + $0x6f8] sm:$0xff]  ;;  %v2019_v12 = vrot.slane %v1874_v41, 1 }
  0xe4   : > { %5533 = vmatpush3.bf16.msra.mxu1 %v5532_v4  ;;  %1806 = vmatprep.mubr.f32.mxu1 %v7012_v27  ;;  %v1831_v27 = vld [vmem:[#allocation2 + $0x48] sm:$0xfe]  ;;  %v5542_v30 = vpack.c.bf16 %v4027_v59, %v4026_v38  ;;  %v1986_v4 = vrot.slane %v1851_v52, 1  ;;  %v4032_v38 = vld [vmem:[%s8176_s3 + $0x720] sm:$0xff]  ;;  %v1841_v41 = vld [vmem:[#allocation2 + $0x98] sm:$0xfe] }
  0xe5   : > { %5535 = vmatprep.subr.bf16.mxu1 %v5534_v10  ;;  %v1961_v28 = vrot.slane %v1831_v27, 1  ;;  %v1846_v10 = vld [vmem:[#allocation2 + $0xc0] sm:$0xfe] }
  0xe6   : > { %v1982_v23 = vrot.slane %v1846_v10, 1  ;;  %v1854_v59 = vld [vmem:[#allocation2 + $0x100] sm:$0xfe]  ;;  %v1987_v27 = vsel %vm901_vm1, %v1985_v26, %v1986_v4  ;;  %v4055_v26 = vld [vmem:[%s8176_s3 + $0x7d8] sm:$0xff]  ;;  %v1883_v4 = vld [vmem:[#allocation2 + $0x1e8] sm:$0x1]  ;;  %v2008_v10 = vsel %vm901_vm1, %v2006_v56, %v2007_v61 }
  0xe7   : > { %1807 = vmatmul.mubr.f32.gmra.mrb[90].mxu1 %v7028_v48  ;;  %v4044_v48 = vld [vmem:[%s8176_s3 + $0x780] sm:$0xff] }
  0xe8   : > { %5537 = vmatpush3.bf16.msra.mxu1 %v5536_v42  ;;  %1811 = vmatprep.mubr.f32.mxu1 %v7030_v50  ;;  %v4045_v50 = vld [vmem:[%s8176_s3 + $0x788] sm:$0xff]  ;;  %v1972_v42 = vsel %vm901_vm1, %v1970_v63, %v1971_v15  ;;  %v1984_v54 = vsel %vm901_vm1, %v1982_v23, %v1983_v3  ;;  %v4036_v52 = vld [vmem:[%s8176_s3 + $0x740] sm:$0xff] }
  0xe9   : > { %5539 = vmatprep.subr.bf16.mxu1 %v5538_v31  ;;  %v5546_v55 = vpack.c.bf16 %v4045_v50, %v4044_v48  ;;  %v5552_v31 = vpack.c.bf16 %v4031_v35, %v4030_v51  ;;  %v1994_v50 = vrot.slane %v1854_v59, 1  ;;  %v2021_v51 = vrot.slane %v1871_v7, 1  ;;  %v1878_v59 = vld [vmem:[#allocation2 + $0x1c0] sm:$0xfe] }
  0xea   : > { %v2022_v35 = vrot.slane %v1875_v34, 1 }
  0xeb   : > { %1812 = vmatmul.mubr.f32.gmra.mrb[92].mxu1 %v7046_v24  ;;  %v1963_v24 = vsel %vm901_vm1, %v1961_v28, %v1962_v57  ;;  %v1863_v28 = vld [vmem:[#allocation2 + $0x148] sm:$0xfe]  ;;  %v1867_v57 = vld [vmem:[#allocation2 + $0x168] sm:$0x1]  ;;  %v1996_v40 = vsel %vm901_vm1, %v1994_v50, %v1995_v0  ;;  %v4040_v0 = vld [vmem:[%s8176_s3 + $0x760] sm:$0xff] }
  0xec   : > { %5541 = vmatpush3.bf16.msra.mxu1 %v5540_v45  ;;  %1816 = vmatprep.mubr.f32.mxu1 %v1546_v49  ;;  %v4033_v45 = vld [vmem:[%s8176_s3 + $0x728] sm:$0xff]  ;;  %v4050_v49 = vld [vmem:[%s8176_s3 + $0x7b0] sm:$0xff]  ;;  %v2009_v53 = vrot.slane %v1863_v28, 1  ;;  %v2010_v32 = vrot.slane %v1867_v57, 1  ;;  %v2023_v23 = vsel %vm901_vm1, %v2021_v51, %v2022_v35  ;;  %v1886_v57 = vld [vmem:[#allocation2 + $0x200] sm:$0xfe]  ;;  %v5572_v61 = vpack.c.bf16 %v4041_v47, %v4040_v0 }
  0xed   : > { %5543 = vmatprep.subr.bf16.mxu1 %v5542_v30  ;;  %v4051_v30 = vld [vmem:[%s8176_s3 + $0x7b8] sm:$0xff]  ;;  %v5556_v48 = vpack.c.bf16 %v4033_v45, %v4032_v38  ;;  %v2034_v38 = vrot.slane %v1883_v4, 1  ;;  %v4057_v45 = vld [vmem:[%s8176_s3 + $0x7e8] sm:$0xff]  ;;  %v1836_v51 = vld [vmem:[#allocation2 + $0x70] sm:$0x1] }
  0xee   : > { %v2011_v63 = vsel %vm901_vm1, %v2009_v53, %v2010_v32  ;;  %v1833_v53 = vld [vmem:[#allocation2 + $0x58] sm:$0xfe]  ;;  %v1837_v32 = vld [vmem:[#allocation2 + $0x78] sm:$0x1] }
  0xef   : > { %1817 = vmatmul.mubr.f32.gmra.mrb[94].mxu1 %v1545_v9  ;;  %v1999_v9 = vsel %vm901_vm1, %v1997_v44, %v1998_v37  ;;  %v1887_v44 = vld [vmem:[#allocation2 + $0x208] sm:$0xfe]  ;;  %v1891_v37 = vld [vmem:[#allocation2 + $0x228] sm:$0x1] }
  0xf0   : > { %5545 = vmatpush3.bf16.msra.mxu1 %v5544_v21  ;;  %2215 = vmatprep.mubr.f32.mxu1 %v1963_v24  ;;  %v5558_v21 = vpack.c.bf16 %v4051_v30, %v4050_v49  ;;  %v4052_v24 = vld [vmem:[%s8176_s3 + $0x7c0] sm:$0xff]  ;;  %v2030_v30 = vrot.slane %v1878_v59, 1  ;;  %v2045_v36 = vrot.slane %v1887_v44, 1  ;;  %v1853_v59 = vld [vmem:[#allocation2 + $0xf8] sm:$0x1] }
  0xf1   : > { %5547 = vmatprep.subr.bf16.mxu1 %v5546_v55  ;;  %v4053_v55 = vld [vmem:[%s8176_s3 + $0x7c8] sm:$0xff] }
  0xf2   : > { %v5562_v15 = vpack.c.bf16 %v4053_v55, %v4052_v24  ;;  %v2042_v55 = vrot.slane %v1886_v57, 1  ;;  %v1852_v57 = vld [vmem:[#allocation2 + $0xf0] sm:$0x1] }
  0xf3   : > { %2216 = vmatmul.mubr.f32.vlgmr.msra.gmra.mrb[96].mxu1 %v1960_v14  ;;  %v4037_v14 = vld [vmem:[%s8176_s3 + $0x748] sm:$0xff] }
  0xf4   : > { %5549 = vmatpush3.bf16.msra.mxu1 %v5548_v60  ;;  %2220 = vmatprep.mubr.f32.mxu1 %v1975_v2  ;;  %v1870_v60 = vld [vmem:[#allocation2 + $0x180] sm:$0xfe]  ;;  %v1879_v2 = vld [vmem:[#allocation2 + $0x1c8] sm:$0xfe]  ;;  %v5564_v58 = vpack.c.bf16 %v4037_v14, %v4036_v52 }
  0xf5   : > { %5551 = vmatprep.subr.bf16.mxu1 %v5550_v25  ;;  %v4054_v25 = vld [vmem:[%s8176_s3 + $0x7d0] sm:$0xff]  ;;  %v2018_v8 = vrot.slane %v1870_v60, 1  ;;  %v1967_v60 = vrot.slane %v1833_v53, 1 }
  0xf6   : > { %v5566_v3 = vpack.c.bf16 %v4055_v26, %v4054_v25 }
  0xf7   : > { %2221 = vmatmul.mubr.f32.gmra.mrb[98].mxu1 %v1972_v42  ;;  %v4039_v42 = vld [vmem:[%s8176_s3 + $0x758] sm:$0xff]  ;;  %v2020_v18 = vsel %vm901_vm1, %v2018_v8, %v2019_v12  ;;  %v1965_v8 = vrot.slane %v1836_v51, 1  ;;  %v1864_v51 = vld [vmem:[#allocation2 + $0x150] sm:$0xfe] }
  0xf8   : > { %5553 = vmatpush3.bf16.msra.mxu1 %v5552_v31  ;;  %2225 = vmatprep.mubr.f32.mxu1 %v1987_v27  ;;  %v2033_v31 = vrot.slane %v1879_v2, 1  ;;  %v1882_v27 = vld [vmem:[#allocation2 + $0x1e0] sm:$0x1]  ;;  %v5568_v49 = vpack.c.bf16 %v4039_v42, %v4038_v5  ;;  %v1845_v2 = vld [vmem:[#allocation2 + $0xb8] sm:$0x1]  ;;  %v1979_v5 = vrot.slane %v1841_v41, 1 }
  0xf9   : > { %5555 = vmatprep.subr.bf16.mxu1 %v5554_v13  ;;  %v4056_v13 = vld [vmem:[%s8176_s3 + $0x7e0] sm:$0xff]  ;;  %v2031_v28 = vrot.slane %v1882_v27, 1  ;;  %v1980_v42 = vrot.slane %v1845_v2, 1  ;;  %v1873_v2 = vld [vmem:[#allocation2 + $0x198] sm:$0xfe] }
  0xfa   : > { %v5570_v50 = vpack.c.bf16 %v4057_v45, %v4056_v13 }
  0xfb   : > { %2226 = vmatmul.mubr.f32.gmra.mrb[100].mxu1 %v1984_v54  ;;  %v1890_v54 = vld [vmem:[#allocation2 + $0x220] sm:$0x1]  ;;  %v2032_v56 = vsel %vm901_vm1, %v2030_v30, %v2031_v28  ;;  %v1992_v30 = vrot.slane %v1853_v59, 1  ;;  %v1848_v28 = vld [vmem:[#allocation2 + $0xd0] sm:$0xfe] }
  0xfc   : > { %5557 = vmatpush3.bf16.msra.mxu1 %v5556_v48  ;;  %2230 = vmatprep.mubr.f32.mxu1 %v1999_v9  ;;  %v2035_v48 = vsel %vm901_vm1, %v2033_v31, %v2034_v38  ;;  %v2046_v9 = vrot.slane %v1891_v37, 1  ;;  %v2043_v7 = vrot.slane %v1890_v54, 1  ;;  %v1840_v31 = vld [vmem:[#allocation2 + $0x90] sm:$0xfe]  ;;  %v1849_v38 = vld [vmem:[#allocation2 + $0xd8] sm:$0xfe] }
  0xfd   : > { %5559 = vmatprep.subr.bf16.mxu1 %v5558_v21  ;;  %v4058_v21 = vld [vmem:[%s8176_s3 + $0x7f0] sm:$0xff]  ;;  %v4226_v43 = vpop.f32.mrb[0].mxu1  ;;  %v1976_v44 = vrot.slane %v1840_v31, 1  ;;  %v1881_v59 = vld [vmem:[#allocation2 + $0x1d8] sm:$0xfe] }
  0xfe   : > { %v4227_v24 = vpop.f32.mrb[1].mxu1  ;;  %v2047_v52 = vsel %vm901_vm1, %v2045_v36, %v2046_v9  ;;  %v5574_v14 = vpack.c.bf16 %v4059_v46, %v4058_v21  ;;  %v2044_v26 = vsel %vm901_vm1, %v2042_v55, %v2043_v7  ;;  %v1988_v9 = vrot.slane %v1848_v28, 1  ;;  %v1865_v7 = vld [vmem:[#allocation2 + $0x158] sm:$0xfe] }
  0xff   : > { %2231 = vmatmul.mubr.f32.gmra.mrb[102].mxu1 %v1996_v40  ;;  %v7366_v34 = vadd.f32 %v4227_v24, %v4226_v43  ;;  %v4042_v40 = vld [vmem:[%s8176_s3 + $0x770] sm:$0xff]  ;;  %v1989_v21 = vrot.slane %v1852_v57, 1  ;;  %v2039_v28 = vrot.slane %v1881_v59, 1  ;;  %v2444_v59 = vld [vmem:[%s8177_s4 + $0x18] sm:$0xff] }
 0x100   : > { %5561 = vmatpush3.bf16.msra.mxu1 %v5560_v17  ;;  %2235 = vmatprep.mubr.f32.mxu1 %v2011_v63  ;;  %v4043_v17 = vld [vmem:[%s8176_s3 + $0x778] sm:$0xff]  ;;  %v1968_v63 = vrot.slane %v1837_v32, 1  ;;  %v1856_v32 = vld [vmem:[#allocation2 + $0x110] sm:$0xfe]  ;;  %v1860_v24 = vld [vmem:[#allocation2 + $0x130] sm:$0x1] }
 0x101   : > { %5563 = vmatprep.subr.bf16.mxu1 %v5562_v15  ;;  %v1832_v15 = vld [vmem:[#allocation2 + $0x50] sm:$0xfe] }
 0x102   : > { %v1969_v12 = vsel %vm901_vm1, %v1967_v60, %v1968_v63  ;;  %v2015_v63 = vrot.slane %v1865_v7, 1  ;;  %v1888_v7 = vld [vmem:[#allocation2 + $0x210] sm:$0xfe] }
 0x103   : > { %2236 = vmatmul.mubr.f32.gmra.mrb[104].mxu1 %v2008_v10  ;;  %v5576_v10 = vpack.c.bf16 %v4043_v17, %v4042_v40  ;;  %v1990_v17 = vsel %vm901_vm1, %v1988_v9, %v1989_v21 }
 0x104   : > { %5565 = vmatpush3.bf16.msra.mxu1 %v5564_v58  ;;  %2240 = vmatprep.mubr.f32.mxu1 %v2023_v23  ;;  %v4229_v35 = vpop.f32.mrb[2].mxu1  ;;  %v1964_v58 = vrot.slane %v1832_v15, 1  ;;  %v1844_v23 = vld [vmem:[#allocation2 + $0xb0] sm:$0x1] }
 0x105   : > { %5567 = vmatprep.subr.bf16.mxu1 %v5566_v3  ;;  %v4230_v25 = vpop.f32.mrb[3].mxu1  ;;  %v1977_v37 = vrot.slane %v1844_v23, 1  ;;  %v1872_v23 = vld [vmem:[#allocation2 + $0x190] sm:$0xfe] }
 0x106   : > { %v7377_v4 = vadd.f32 %v4230_v25, %v4229_v35  ;;  %v1966_v45 = vsel %vm901_vm1, %v1964_v58, %v1965_v8  ;;  %v1868_v35 = vld [vmem:[#allocation2 + $0x170] sm:$0x1]  ;;  %v1877_v25 = vld [vmem:[#allocation2 + $0x1b8] sm:$0x1]  ;;  %v2012_v8 = vrot.slane %v1864_v51, 1 }
 0x107   : > { %2241 = vmatmul.mubr.f32.gmra.mrb[106].mxu1 %v2020_v18  ;;  %v1981_v18 = vsel %vm901_vm1, %v1979_v5, %v1980_v42  ;;  %v1978_v36 = vsel %vm901_vm1, %v1976_v44, %v1977_v37  ;;  %v2027_v42 = vrot.slane %v1873_v2, 1  ;;  %v2028_v31 = vrot.slane %v1877_v25, 1 }
 0x108   : > { %5569 = vmatpush3.bf16.msra.mxu1 %v5568_v49  ;;  %2245 = vmatprep.mubr.f32.mxu1 %v2035_v48  ;;  %v4232_v3 = vpop.f32.mrb[4].mxu1  ;;  %v1991_v49 = vrot.slane %v1849_v38, 1  ;;  %v1857_v48 = vld [vmem:[#allocation2 + $0x118] sm:$0xfe] }
 0x109   : > { %5571 = vmatprep.subr.bf16.mxu1 %v5570_v50  ;;  %v4233_v27 = vpop.f32.mrb[5].mxu1  ;;  %v1861_v50 = vld [vmem:[#allocation2 + $0x138] sm:$0x1]  ;;  %v2003_v46 = vrot.slane %v1857_v48, 1  ;;  %v1884_v48 = vld [vmem:[#allocation2 + $0x1f0] sm:$0x1] }
 0x10a   : > { %v7380_v13 = vadd.f32 %v4233_v27, %v4232_v3  ;;  %v1993_v43 = vsel %vm901_vm1, %v1991_v49, %v1992_v30  ;;  %v2004_v53 = vrot.slane %v1861_v50, 1  ;;  %v1876_v3 = vld [vmem:[#allocation2 + $0x1b0] sm:$0x1]  ;;  %v1885_v27 = vld [vmem:[#allocation2 + $0x1f8] sm:$0x1]  ;;  %v2029_v30 = vsel %vm901_vm1, %v2027_v42, %v2028_v31 }
 0x10b   : > { %2246 = vmatmul.mubr.f32.gmra.mrb[108].mxu1 %v2032_v56  ;;  %v1869_v56 = vld [vmem:[#allocation2 + $0x178] sm:$0x1]  ;;  %v2025_v49 = vrot.slane %v1876_v3, 1  ;;  %v2040_v57 = vrot.slane %v1885_v27, 1 }
 0x10c   : > { %5573 = vmatpush3.bf16.msra.mxu1 %v5572_v61  ;;  %2250 = vmatprep.mubr.f32.mxu1 %v2047_v52  ;;  %v2000_v52 = vrot.slane %v1856_v32, 1  ;;  %v2005_v60 = vsel %vm901_vm1, %v2003_v46, %v2004_v53  ;;  %v2016_v15 = vrot.slane %v1869_v56, 1  ;;  %v2037_v53 = vrot.slane %v1884_v48, 1  ;;  %v1892_v56 = vld [vmem:[#allocation2 + $0x230] sm:$0x1] }
 0x10d   : > { %5575 = vmatprep.subr.bf16.mxu1 %v5574_v14  ;;  %v4235_v54 = vpop.f32.mrb[6].mxu1  ;;  %v2001_v14 = vrot.slane %v1860_v24, 1  ;;  %v2041_v32 = vsel %vm901_vm1, %v2039_v28, %v2040_v57 }
 0x10e   : > { %v4236_v0 = vpop.f32.mrb[7].mxu1  ;;  %v2017_v5 = vsel %vm901_vm1, %v2015_v63, %v2016_v15  ;;  %v2049_v63 = vrot.slane %v1892_v56, 1 }
 0x10f   : > { %2251 = vmatmul.mubr.f32.gmra.mrb[110].mxu1 %v2044_v26  ;;  %v7384_v47 = vadd.f32 %v4236_v0, %v4235_v54  ;;  %v2002_v58 = vsel %vm901_vm1, %v2000_v52, %v2001_v14  ;;  %v1880_v54 = vld [vmem:[#allocation2 + $0x1d0] sm:$0xfe]  ;;  %v1889_v0 = vld [vmem:[#allocation2 + $0x218] sm:$0xfe] }
 0x110   : > { %5577 = vmatpush3.bf16.msra.mxu1 %v5576_v10  ;;  %2320 = vmatprep.mubr.f32.mxu1 %v1969_v12  ;;  %v2013_v12 = vrot.slane %v1868_v35, 1  ;;  %v2036_v46 = vrot.slane %v1880_v54, 1  ;;  %v2051_v24 = vrot.slane %v1889_v0, 1  ;;  %v2448_v0 = vld [vmem:[%s8177_s4 + $0x38] sm:$0xff] }
 0x112   : > { %v2014_v37 = vsel %vm901_vm1, %v2012_v8, %v2013_v12  ;;  %v2038_v14 = vsel %vm901_vm1, %v2036_v46, %v2037_v53  ;;  %v2449_v53 = vld [vmem:[%s8177_s4 + $0x40] sm:$0xff] }
 0x113   : > { %2321 = vmatmul.mubr.f32.vlgmr.msra.gmra.mrb[112].mxu1 %v1966_v45  ;;  %v4238_v55 = vpop.f32.mrb[8].mxu1 }
 0x114   : > { %2325 = vmatprep.mubr.f32.mxu1 %v1981_v18  ;;  %v4239_v61 = vpop.f32.mrb[9].mxu1  ;;  %v2024_v18 = vrot.slane %v1872_v23, 1 }
 0x115   : > { %v7388_v40 = vadd.f32 %v4239_v61, %v4238_v55 }
 0x117   : > { %2326 = vmatmul.mubr.f32.gmra.mrb[114].mxu1 %v1978_v36  ;;  %v4241_v41 = vpop.f32.mrb[10].mxu1  ;;  %v1893_v36 = vld [vmem:[#allocation2 + $0x238] sm:$0x1] }
 0x118   : > { %2330 = vmatprep.mubr.f32.mxu1 %v1993_v43  ;;  %v4242_v26 = vpop.f32.mrb[11].mxu1  ;;  %v2026_v43 = vsel %vm901_vm1, %v2024_v18, %v2025_v49  ;;  %v2052_v55 = vrot.slane %v1893_v36, 1  ;;  %v2445_v49 = vld [vmem:[%s8177_s4 + $0x20] sm:$0xff] }
 0x119   : > { %v7392_v10 = vadd.f32 %v4242_v26, %v4241_v41 }
 0x11a   : > { %v2053_v15 = vsel %vm901_vm1, %v2051_v24, %v2052_v55 }
 0x11b   : > { %2331 = vmatmul.mubr.f32.gmra.mrb[116].mxu1 %v1990_v17 }
 0x11c   : > { %2335 = vmatprep.mubr.f32.mxu1 %v2005_v60  ;;  %v2048_v60 = vrot.slane %v1888_v7, 1 }
 0x11e   : > { %v4244_v38 = vpop.f32.mrb[12].mxu1  ;;  %v2050_v25 = vsel %vm901_vm1, %v2048_v60, %v2049_v63 }
 0x11f   : > { %v4245_v45 = vpop.f32.mrb[13].mxu1  ;;  %2336 = vmatmul.mubr.f32.gmra.mrb[118].mxu1 %v2002_v58 }
 0x120   : > { %v7396_v44 = vadd.f32 %v4245_v45, %v4244_v38  ;;  %2340 = vmatprep.mubr.f32.mxu1 %v2017_v5  ;;  %v2441_v5 = vld [vmem:[%s8177_s4] sm:$0xff]  ;;  %v2443_v38 = vld [vmem:[%s8177_s4 + $0x10] sm:$0xff] }
 0x121   : > { %v5614_v27 = vpack.c.bf16 %v2444_v59, %v2443_v38 }
 0x122   : > { %v4247_v50 = vpop.f32.mrb[14].mxu1 }
 0x123   : > { %v4248_v9 = vpop.f32.mrb[15].mxu1  ;;  %2341 = vmatmul.mubr.f32.gmra.mrb[120].mxu1 %v2014_v37 }
 0x124   : > { %v7400_v21 = vadd.f32 %v4248_v9, %v4247_v50  ;;  %2345 = vmatprep.mubr.f32.mxu1 %v2029_v30  ;;  %v2446_v30 = vld [vmem:[%s8177_s4 + $0x28] sm:$0xff]  ;;  %v2447_v50 = vld [vmem:[%s8177_s4 + $0x30] sm:$0xff] }
 0x125   : > { %v5618_v28 = vpack.c.bf16 %v2446_v30, %v2445_v49  ;;  %v5622_v36 = vpack.c.bf16 %v2448_v0, %v2447_v50 }
 0x126   : > { %v4282_v61 = vpop.f32.mrb[16].mxu1 }
 0x127   : > { %v4283_v17 = vpop.f32.mrb[17].mxu1  ;;  %2346 = vmatmul.mubr.f32.gmra.mrb[122].mxu1 %v2026_v43 }
 0x128   : > { %v4284_v52 = vadd.f32 %v4283_v17, %v4282_v61  ;;  %2350 = vmatprep.mubr.f32.mxu1 %v2041_v32  ;;  %v2450_v32 = vld [vmem:[%s8177_s4 + $0x48] sm:$0xff]  ;;  %v2451_v61 = vld [vmem:[%s8177_s4 + $0x50] sm:$0xff]  ;;  %v2452_v17 = vld [vmem:[%s8177_s4 + $0x58] sm:$0xff] }
 0x129   : > { %v5626_v24 = vpack.c.bf16 %v2450_v32, %v2449_v53 }
 0x12a   : > { %v7407_v51 = vadd.f32 %v4284_v52, %v7366_v34  ;;  %v4285_v35 = vpop.f32.mrb[18].mxu1  ;;  %v2442_v34 = vld [vmem:[%s8177_s4 + $0x8] sm:$0xff]  ;;  %v5630_v52 = vpack.c.bf16 %v2452_v17, %v2451_v61 }
 0x12b   : > { %v4286_v41 = vpop.f32.mrb[19].mxu1  ;;  %2351 = vmatmul.mubr.f32.gmra.mrb[124].mxu1 %v2038_v14  ;;  %v5610_v42 = vpack.c.bf16 %v2442_v34, %v2441_v5 }
 0x12c   : > { %v4287_v2 = vadd.f32 %v4286_v41, %v4285_v35  ;;  %2355 = vmatprep.mubr.f32.mxu1 %v2053_v15  ;;  %v2453_v15 = vld [vmem:[%s8177_s4 + $0x60] sm:$0xff]  ;;  %v2454_v35 = vld [vmem:[%s8177_s4 + $0x68] sm:$0xff] }
 0x12d   : > { %5611 = vmatprep.subr.bf16.mxu0 %v5610_v42  ;;  %v5634_v41 = vpack.c.bf16 %v2454_v35, %v2453_v15  ;;  %v4073_v15 = vld [vmem:[%s8180_s7 + $0xd8] sm:$0xff] }
 0x12e   : > { %v7411_v26 = vadd.f32 %v4287_v2, %v7377_v4  ;;  %v4288_v58 = vpop.f32.mrb[20].mxu1  ;;  %5613 = vmatpush3.bf16.msra.mxu0 %v5610_v42  ;;  %v2472_v35 = vld [vmem:[%s8180_s7 + $0x38] sm:$0xff] }
 0x12f   : > { %v4289_v8 = vpop.f32.mrb[21].mxu1  ;;  %2356 = vmatmul.mubr.f32.gmra.mrb[126].mxu1 %v2050_v25  ;;  %5615 = vmatprep.subr.bf16.mxu0 %v5614_v27 }
 0x130   : > { %v4290_v12 = vadd.f32 %v4289_v8, %v4288_v58  ;;  %v2455_v8 = vld [vmem:[%s8177_s4 + $0x70] sm:$0xff] }
 0x132   : > { %v7420_v31 = vadd.f32 %v4290_v12, %v7380_v13  ;;  %v4291_v23 = vpop.f32.mrb[22].mxu1  ;;  %5617 = vmatpush3.bf16.msra.mxu0 %v5614_v27  ;;  %v2456_v12 = vld [vmem:[%s8177_s4 + $0x78] sm:$0xff] }
 0x133   : > { %v4292_v3 = vpop.f32.mrb[23].mxu1  ;;  %5619 = vmatprep.subr.bf16.mxu0 %v5618_v28  ;;  %v5638_v5 = vpack.c.bf16 %v2456_v12, %v2455_v8 }
 0x134   : > { %v4293_v4 = vadd.f32 %v4292_v3, %v4291_v23  ;;  %v4062_v3 = vld [vmem:[%s8180_s7 + $0x80] sm:$0xff] }
 0x136   : > { %v7429_v45 = vadd.f32 %v4293_v4, %v7384_v47  ;;  %v4294_v37 = vpop.f32.mrb[24].mxu1  ;;  %5621 = vmatpush3.bf16.msra.mxu0 %v5618_v28  ;;  %v4063_v4 = vld [vmem:[%s8180_s7 + $0x88] sm:$0xff] }
 0x137   : > { %v4295_v13 = vpop.f32.mrb[25].mxu1  ;;  %5623 = vmatprep.subr.bf16.mxu0 %v5622_v36  ;;  %v5642_v38 = vpack.c.bf16 %v4063_v4, %v4062_v3 }
 0x138   : > { %v4296_v18 = vadd.f32 %v4295_v13, %v4294_v37  ;;  %v4064_v13 = vld [vmem:[%s8180_s7 + $0x90] sm:$0xff] }
 0x13a   : > { %v7438_v57 = vadd.f32 %v4296_v18, %v7388_v40  ;;  %v4297_v54 = vpop.f32.mrb[26].mxu1  ;;  %5625 = vmatpush3.bf16.msra.mxu0 %v5622_v36  ;;  %v4065_v18 = vld [vmem:[%s8180_s7 + $0x98] sm:$0xff] }
 0x13b   : > { %v4298_v47 = vpop.f32.mrb[27].mxu1  ;;  %5627 = vmatprep.subr.bf16.mxu0 %v5626_v24 }
 0x13c   : > { %v4299_v48 = vadd.f32 %v4298_v47, %v4297_v54  ;;  %v4066_v54 = vld [vmem:[%s8180_s7 + $0xa0] sm:$0xff] }
 0x13d   : > { %v5650_v47 = vpack.c.bf16 %v4067_v22, %v4066_v54  ;;  %v4078_v22 = vld [vmem:[%s8180_s7 + $0x100] sm:$0xff] }
 0x13e   : > { %v7447_v9 = vadd.f32 %v4299_v48, %v7392_v10  ;;  %v4300_v43 = vpop.f32.mrb[28].mxu1  ;;  %5629 = vmatpush3.bf16.msra.mxu0 %v5626_v24 }
 0x13f   : > { %v4301_v40 = vpop.f32.mrb[29].mxu1  ;;  %5631 = vmatprep.subr.bf16.mxu0 %v5630_v52 }
 0x140   : > { %v4302_v46 = vadd.f32 %v4301_v40, %v4300_v43  ;;  %v4068_v43 = vld [vmem:[%s8180_s7 + $0xb0] sm:$0xff]  ;;  %v4069_v40 = vld [vmem:[%s8180_s7 + $0xb8] sm:$0xff] }
 0x142   : > { %v7456_v55 = vadd.f32 %v4302_v46, %v7396_v44  ;;  %v4303_v7 = vpop.f32.mrb[30].mxu1  ;;  %5633 = vmatpush3.bf16.msra.mxu0 %v5630_v52  ;;  %v8188_v46 = vmax.f32 %v6399_v29, 0.0  ;;  %v4071_v29 = vld [vmem:[%s8180_s7 + $0xc8] sm:$0xff] }
 0x143   : > { %v4304_v10 = vpop.f32.mrb[31].mxu1  ;;  %5635 = vmatprep.subr.bf16.mxu0 %v5634_v41 }
 0x144   : > { %v4305_v56 = vadd.f32 %v4304_v10, %v4303_v7 }
 0x146   : > { %v7465_v14 = vadd.f32 %v4305_v56, %v7400_v21  ;;  %v4338_v60 = vpop.f32.mrb[32].mxu1  ;;  %5637 = vmatpush3.bf16.msra.mxu0 %v5634_v41  ;;  %v4070_v56 = vld [vmem:[%s8180_s7 + $0xc0] sm:$0xff] }
 0x147   : > { %v4339_v44 = vpop.f32.mrb[33].mxu1  ;;  %5639 = vmatprep.subr.bf16.mxu0 %v5638_v5 }
 0x148   : > { %v4340_v63 = vadd.f32 %v4339_v44, %v4338_v60 }
 0x14a   : > { %v7474_v2 = vadd.f32 %v4340_v63, %v7407_v51  ;;  %v4341_v25 = vpop.f32.mrb[34].mxu1  ;;  %5641 = vmatpush3.bf16.msra.mxu0 %v5638_v5  ;;  %v4072_v63 = vld [vmem:[%s8180_s7 + $0xd0] sm:$0xff]  ;;  %v4074_v5 = vld [vmem:[%s8180_s7 + $0xe0] sm:$0xff] }
 0x14b   : > { %v4342_v21 = vpop.f32.mrb[35].mxu1  ;;  %5643 = vmatprep.subr.bf16.mxu0 %v5642_v38  ;;  %v5662_v41 = vpack.c.bf16 %v4073_v15, %v4072_v63 }
 0x14c   : > { %v4343_v58 = vadd.f32 %v4342_v21, %v4341_v25 }
 0x14d   : > { %4959 = vmatmul.mubr.f32.vlgmr.msra.gmra.mrb[0].mxu0 %v450_v19  ;;  %v8186_v19 = vmax.f32 %v6238_v39, 0.0  ;;  %v2466_v39 = vld [vmem:[%s8180_s7 + $0x8] sm:$0xff] }
 0x14e   : > { %v7483_v34 = vadd.f32 %v4343_v58, %v7411_v26  ;;  %v4344_v42 = vpop.f32.mrb[36].mxu1  ;;  %5645 = vmatpush3.bf16.msra.mxu0 %v5642_v38  ;;  %4961 = vmatprep.mubr.f32.mxu0 %v454_v33  ;;  %v8187_v33 = vmax.f32 %v6287_v62, 0.0 }
 0x14f   : > { %v4345_v51 = vpop.f32.mrb[37].mxu1 }
 0x150   : > { %v4346_v23 = vadd.f32 %v4345_v51, %v4344_v42  ;;  %v4075_v42 = vld [vmem:[%s8180_s7 + $0xe8] sm:$0xff] }
 0x151   : > { %4962 = vmatmul.mubr.f32.gmra.mrb[2].mxu0 %v8186_v19  ;;  %v2474_v51 = vld [vmem:[%s8180_s7 + $0x48] sm:$0xff] }
 0x152   : > { %v7492_v59 = vadd.f32 %v4346_v23, %v7420_v31  ;;  %v4347_v27 = vpop.f32.mrb[38].mxu1  ;;  %v5646_v31 = vpack.c.bf16 %v4065_v18, %v4064_v13  ;;  %4964 = vmatprep.mubr.f32.mxu0 %v8187_v33  ;;  %v5666_v23 = vpack.c.bf16 %v4075_v42, %v4074_v5  ;;  %v4077_v13 = vld [vmem:[%s8180_s7 + $0xf8] sm:$0xff]  ;;  %v4079_v33 = vld [vmem:[%s8180_s7 + $0x108] sm:$0xff] }
 0x153   : > { %v4348_v26 = vpop.f32.mrb[39].mxu1  ;;  %v2476_v18 = vld [vmem:[%s8180_s7 + $0x58] sm:$0xff] }
 0x154   : > { %v4349_v37 = vadd.f32 %v4348_v26, %v4347_v27  ;;  %5647 = vmatprep.subr.bf16.mxu0 %v5646_v31 }
 0x155   : > { %5649 = vmatpush3.bf16.msra.mxu0 %v5646_v31 }
 0x156   : > { %v7505_v49 = vadd.f32 %v4349_v37, %v7429_v45  ;;  %v4350_v30 = vpop.f32.mrb[40].mxu1  ;;  %v2465_v45 = vld [vmem:[%s8180_s7] sm:$0xff]  ;;  %5651 = vmatprep.subr.bf16.mxu0 %v5650_v47  ;;  %4965 = vmatmul.mubr.f32.gmra.mrb[4].mxu0 %v466_v1  ;;  %v5654_v1 = vpack.c.bf16 %v4069_v40, %v4068_v43  ;;  %v4076_v37 = vld [vmem:[%s8180_s7 + $0xf0] sm:$0xff] }
 0x157   : > { %v4351_v6 = vpop.f32.mrb[41].mxu1  ;;  %v5578_v0 = vpack.c.bf16 %v2466_v39, %v2465_v45  ;;  %4967 = vmatprep.mubr.f32.mxu0 %v8188_v46  ;;  %v5670_v31 = vpack.c.bf16 %v4077_v13, %v4076_v37  ;;  %v2478_v45 = vld [vmem:[%s8180_s7 + $0x68] sm:$0xff]  ;;  %v7619_v39 = vpack.c.bf16 %v4079_v33, %v4078_v22  ;;  %v2479_v40 = vld [vmem:[%s8180_s7 + $0x70] sm:$0xff] }
 0x158   : > { %v4352_v28 = vadd.f32 %v4351_v6, %v4350_v30 }
 0x159   : > { %5579 = vmatprep.subr.bf16.mxu1 %v5578_v0  ;;  %5653 = vmatpush3.bf16.msra.mxu0 %v5650_v47 }
 0x15a   : > { %v7524_v48 = vadd.f32 %v4352_v28, %v7438_v57  ;;  %v4353_v50 = vpop.f32.mrb[42].mxu1  ;;  %5581 = vmatpush3.bf16.msra.mxu1 %v5578_v0  ;;  %v2467_v57 = vld [vmem:[%s8180_s7 + $0x10] sm:$0xff]  ;;  %5655 = vmatprep.subr.bf16.mxu0 %v5654_v1 }
 0x15b   : > { %v4354_v36 = vpop.f32.mrb[43].mxu1  ;;  %v5582_v24 = vpack.c.bf16 %v2468_v20, %v2467_v57  ;;  %4968 = vmatmul.mubr.f32.gmra.mrb[6].mxu0 %v474_v11  ;;  %v5658_v11 = vpack.c.bf16 %v4071_v29, %v4070_v56  ;;  %v2480_v57 = vld [vmem:[%s8180_s7 + $0x78] sm:$0xff] }
 0x15c   : > { %v4355_v62 = vadd.f32 %v4354_v36, %v4353_v50  ;;  %v2691_v36 = vld [vmem:[#allocation3 + $0x1] sm:$0xff] }
 0x15d   : > { %5583 = vmatprep.subr.bf16.mxu1 %v5582_v24  ;;  %5657 = vmatpush3.bf16.msra.mxu0 %v5654_v1  ;;  %v5606_v1 = vpack.c.bf16 %v2480_v57, %v2479_v40 }
 0x15e   : > { %v7543_v53 = vadd.f32 %v4355_v62, %v7447_v9  ;;  %v4356_v32 = vpop.f32.mrb[44].mxu1  ;;  %5585 = vmatpush3.bf16.msra.mxu1 %v5582_v24  ;;  %v2469_v9 = vld [vmem:[%s8180_s7 + $0x20] sm:$0xff]  ;;  %5659 = vmatprep.subr.bf16.mxu0 %v5658_v11 }
 0x15f   : > { %v4357_v7 = vpop.f32.mrb[45].mxu1  ;;  %v5586_v52 = vpack.c.bf16 %v2470_v16, %v2469_v9  ;;  %5002 = vmatprep.mubr.f32.mxu0 %v2691_v36 }
 0x160   : > { %v4358_v10 = vadd.f32 %v4357_v7, %v4356_v32 }
 0x161   : > { %5587 = vmatprep.subr.bf16.mxu1 %v5586_v52  ;;  %5661 = vmatpush3.bf16.msra.mxu0 %v5658_v11 }
 0x162   : > { %v7560_v61 = vadd.f32 %v4358_v10, %v7456_v55  ;;  %v4359_v17 = vpop.f32.mrb[46].mxu1  ;;  %5589 = vmatpush3.bf16.msra.mxu1 %v5586_v52  ;;  %v2471_v55 = vld [vmem:[%s8180_s7 + $0x30] sm:$0xff]  ;;  %5663 = vmatprep.subr.bf16.mxu0 %v5662_v41  ;;  %v2457_v10 = vld [vmem:[#allocation3] sm:$0xff] }
 0x163   : > { %v4360_v60 = vpop.f32.mrb[47].mxu1  ;;  %v5590_v58 = vpack.c.bf16 %v2472_v35, %v2471_v55  ;;  %4914 = vmatprep.mubr.f32.mxu1 %v2457_v10 }
 0x164   : > { %v4361_v44 = vadd.f32 %v4360_v60, %v4359_v17 }
 0x165   : > { %5591 = vmatprep.subr.bf16.mxu1 %v5590_v58  ;;  %5665 = vmatpush3.bf16.msra.mxu0 %v5662_v41 }
 0x166   : > { %v7575_v25 = vadd.f32 %v4361_v44, %v7465_v14  ;;  %v4394_v21 = vpop.f32.mrb[48].mxu1  ;;  %5593 = vmatpush3.bf16.msra.mxu1 %v5590_v58  ;;  %v2473_v14 = vld [vmem:[%s8180_s7 + $0x40] sm:$0xff]  ;;  %5667 = vmatprep.subr.bf16.mxu0 %v5666_v23 }
 0x167   : > { %v4395_v8 = vpop.f32.mrb[49].mxu1  ;;  %v5594_v38 = vpack.c.bf16 %v2474_v51, %v2473_v14 }
 0x168   : > { %v4396_v12 = vadd.f32 %v4395_v8, %v4394_v21 }
 0x169   : > { %5595 = vmatprep.subr.bf16.mxu1 %v5594_v38  ;;  %5669 = vmatpush3.bf16.msra.mxu0 %v5666_v23 }
 0x16a   : > { %v7590_v3 = vadd.f32 %v4396_v12, %v7474_v2  ;;  %v4397_v4 = vpop.f32.mrb[50].mxu1  ;;  %5597 = vmatpush3.bf16.msra.mxu1 %v5594_v38  ;;  %v2475_v2 = vld [vmem:[%s8180_s7 + $0x50] sm:$0xff]  ;;  %5671 = vmatprep.subr.bf16.mxu0 %v5670_v31 }
 0x16b   : > { %v4398_v27 = vpop.f32.mrb[51].mxu1  ;;  %v5598_v19 = vpack.c.bf16 %v2476_v18, %v2475_v2 }
 0x16c   : > { %v4399_v26 = vadd.f32 %v4398_v27, %v4397_v4 }
 0x16d   : > { %5599 = vmatprep.subr.bf16.mxu1 %v5598_v19  ;;  %5673 = vmatpush3.bf16.msra.mxu0 %v5670_v31 }
 0x16e   : > { %v7605_v30 = vadd.f32 %v4399_v26, %v7483_v34  ;;  %v4400_v6 = vpop.f32.mrb[52].mxu1  ;;  %5601 = vmatpush3.bf16.msra.mxu1 %v5598_v19  ;;  %v2477_v34 = vld [vmem:[%s8180_s7 + $0x60] sm:$0xff]  ;;  %5675 = vmatprep.subr.bf16.mxu0 %v7619_v39 }
 0x16f   : > { %v4401_v28 = vpop.f32.mrb[53].mxu1  ;;  %v5602_v0 = vpack.c.bf16 %v2478_v45, %v2477_v34 }
 0x170   : > { %v4402_v54 = vadd.f32 %v4401_v28, %v4400_v6 }
 0x171   : > { %5603 = vmatprep.subr.bf16.mxu1 %v5602_v0 }
 0x172   : > { %v7622_v47 = vadd.f32 %v4402_v54, %v7492_v59  ;;  %v4403_v50 = vpop.f32.mrb[54].mxu1  ;;  %5605 = vmatpush3.bf16.msra.mxu1 %v5602_v0 }
 0x173   : > { %v4404_v62 = vpop.f32.mrb[55].mxu1  ;;  %5607 = vmatprep.subr.bf16.mxu1 %v5606_v1 }
 0x174   : > { %v4405_v43 = vadd.f32 %v4404_v62, %v4403_v50 }
 0x176   : > { %v7632_v59 = vadd.f32 %v4405_v43, %v7505_v49  ;;  %v4406_v20 = vpop.f32.mrb[56].mxu1  ;;  %5609 = vmatpush3.bf16.msra.mxu1 %v5606_v1 }
 0x177   : > { %v4407_v46 = vpop.f32.mrb[57].mxu1 }
 0x178   : > { %v4408_v32 = vadd.f32 %v4407_v46, %v4406_v20 }
 0x17a   : > { %v7635_v24 = vadd.f32 %v4408_v32, %v7524_v48  ;;  %v4409_v7 = vpop.f32.mrb[58].mxu1 }
 0x17b   : > { %v4410_v56 = vpop.f32.mrb[59].mxu1 }
 0x17c   : > { %v4411_v29 = vadd.f32 %v4410_v56, %v4409_v7 }
 0x17e   : > { %v7638_v9 = vadd.f32 %v4411_v29, %v7543_v53  ;;  %v4412_v16 = vpop.f32.mrb[60].mxu1 }
 0x17f   : > { %v4413_v49 = vpop.f32.mrb[61].mxu1 }
 0x180   : > { %v4414_v11 = vadd.f32 %v4413_v49, %v4412_v16 }
 0x182   : > { %v7641_v17 = vadd.f32 %v4414_v11, %v7560_v61  ;;  %v4415_v52 = vpop.f32.mrb[62].mxu1 }
 0x183   : > { %v4416_v60 = vpop.f32.mrb[63].mxu1 }
 0x184   : > { %v4417_v44 = vadd.f32 %v4416_v60, %v4415_v52 }
 0x186   : > { %v7644_v48 = vadd.f32 %v4417_v44, %v7575_v25  ;;  %v4450_v63 = vpop.f32.mrb[64].mxu1 }
 0x187   : > { %v4451_v15 = vpop.f32.mrb[65].mxu1 }
 0x188   : > { %v4452_v55 = vadd.f32 %v4451_v15, %v4450_v63 }
 0x18a   : > { %v4453_v35 = vpop.f32.mrb[66].mxu1 }
 0x18b   : > { %v4454_v41 = vpop.f32.mrb[67].mxu1 }
 0x18c   : > { %v4455_v21 = vadd.f32 %v4454_v41, %v4453_v35 }
 0x18e   : > { %v4456_v53 = vpop.f32.mrb[68].mxu1 }
 0x18f   : > { %v4457_v58 = vpop.f32.mrb[69].mxu1 }
 0x190   : > { %v4458_v8 = vadd.f32 %v4457_v58, %v4456_v53 }
 0x192   : > { %v4459_v12 = vpop.f32.mrb[70].mxu1 }
 0x193   : > { %v4460_v5 = vpop.f32.mrb[71].mxu1 }
 0x194   : > { %v4461_v42 = vadd.f32 %v4460_v5, %v4459_v12 }
 0x196   : > { %v4462_v61 = vpop.f32.mrb[72].mxu1 }
 0x197   : > { %v4463_v14 = vpop.f32.mrb[73].mxu1 }
 0x198   : > { %v4464_v51 = vadd.f32 %v4463_v14, %v4462_v61 }
 0x19a   : > { %v4465_v23 = vpop.f32.mrb[74].mxu1 }
 0x19b   : > { %v4466_v4 = vpop.f32.mrb[75].mxu1 }
 0x19c   : > { %v4467_v38 = vadd.f32 %v4466_v4, %v4465_v23 }
 0x19e   : > { %v4468_v25 = vpop.f32.mrb[76].mxu1 }
 0x19f   : > { %v4469_v27 = vpop.f32.mrb[77].mxu1 }
 0x1a0   : > { %v4470_v26 = vadd.f32 %v4469_v27, %v4468_v25 }
 0x1a2   : > { %v4471_v37 = vpop.f32.mrb[78].mxu1 }
 0x1a3   : > { %v4472_v13 = vpop.f32.mrb[79].mxu1 }
 0x1a4   : > { %v4473_v2 = vadd.f32 %v4472_v13, %v4471_v37 }
 0x1a6   : > { %v4506_v18 = vpop.f32.mrb[80].mxu1 }
 0x1a7   : > { %v4507_v31 = vpop.f32.mrb[81].mxu1 }
 0x1a8   : > { %v4508_v6 = vadd.f32 %v4507_v31, %v4506_v18 }
 0x1aa   : > { %v1784_v19 = vadd.f32 %v4508_v6, %v4452_v55  ;;  %v4509_v28 = vpop.f32.mrb[82].mxu1 }
 0x1ab   : > { %v4510_v54 = vpop.f32.mrb[83].mxu1 }
 0x1ac   : > { %v7647_v22 = vadd.f32 %v1784_v19, %v7590_v3  ;;  %v4511_v33 = vadd.f32 %v4510_v54, %v4509_v28 }
 0x1ae   : > { %v1789_v34 = vadd.f32 %v4511_v33, %v4455_v21  ;;  %v4512_v45 = vpop.f32.mrb[84].mxu1  ;;  %v7679_v33 = vld [vmem:[%s8178_s5] ss:$0 sm:$0xff] }
 0x1af   : > { %v4513_v50 = vpop.f32.mrb[85].mxu1 }
 0x1b0   : > { %v7650_v0 = vadd.f32 %v1789_v34, %v7605_v30  ;;  %v4514_v36 = vadd.f32 %v4513_v50, %v4512_v45 }
 0x1b2   : > { %v1794_v62 = vadd.f32 %v4514_v36, %v4458_v8  ;;  %v4515_v43 = vpop.f32.mrb[86].mxu1  ;;  %v7685_v36 = vld [vmem:[%s8179_s6] ss:$0 sm:$0xff] }
 0x1b3   : > { %v4516_v40 = vpop.f32.mrb[87].mxu1 }
 0x1b4   : > { %v7653_v57 = vadd.f32 %v1794_v62, %v7622_v47  ;;  %v4517_v20 = vadd.f32 %v4516_v40, %v4515_v43 }
 0x1b6   : > { %v1799_v1 = vadd.f32 %v4517_v20, %v4461_v42  ;;  %v4518_v46 = vpop.f32.mrb[88].mxu1 }
 0x1b7   : > { %v4519_v32 = vpop.f32.mrb[89].mxu1 }
 0x1b8   : > { %v7656_v3 = vadd.f32 %v1799_v1, %v7632_v59  ;;  %v4520_v7 = vadd.f32 %v4519_v32, %v4518_v46  ;;  %v4080_v1 = vld [vmem:[%s8180_s7 + $0x110] sm:$0xff]  ;;  %v4081_v46 = vld [vmem:[%s8180_s7 + $0x118] sm:$0xff] }
 0x1ba   : > { %v1804_v10 = vadd.f32 %v4520_v7, %v4464_v51  ;;  %v4521_v56 = vpop.f32.mrb[90].mxu1 }
 0x1bb   : > { %v4522_v29 = vpop.f32.mrb[91].mxu1 }
 0x1bc   : > { %v7659_v30 = vadd.f32 %v1804_v10, %v7635_v24  ;;  %v4523_v16 = vadd.f32 %v4522_v29, %v4521_v56 }
 0x1be   : > { %v1809_v49 = vadd.f32 %v4523_v16, %v4467_v38  ;;  %v4524_v11 = vpop.f32.mrb[92].mxu1 }
 0x1bf   : > { %v4525_v52 = vpop.f32.mrb[93].mxu1 }
 0x1c0   : > { %v7662_v47 = vadd.f32 %v1809_v49, %v7638_v9  ;;  %v4526_v60 = vadd.f32 %v4525_v52, %v4524_v11  ;;  %v5678_v49 = vpack.c.bf16 %v4081_v46, %v4080_v1  ;;  %v4082_v52 = vld [vmem:[%s8180_s7 + $0x120] sm:$0xff]  ;;  %v4091_v46 = vld [vmem:[%s8180_s7 + $0x168] sm:$0xff] }
 0x1c2   : > { %v1814_v44 = vadd.f32 %v4526_v60, %v4470_v26  ;;  %v4527_v63 = vpop.f32.mrb[94].mxu1  ;;  %v4083_v60 = vld [vmem:[%s8180_s7 + $0x128] sm:$0xff] }
 0x1c3   : > { %v4528_v15 = vpop.f32.mrb[95].mxu1 }
 0x1c4   : > { %v7665_v59 = vadd.f32 %v1814_v44, %v7641_v17  ;;  %v4529_v55 = vadd.f32 %v4528_v15, %v4527_v63 }
 0x1c6   : > { %v1819_v35 = vadd.f32 %v4529_v55, %v4473_v2  ;;  %v4562_v41 = vpop.f32.mrb[96].mxu1 }
 0x1c7   : > { %v4563_v21 = vpop.f32.mrb[97].mxu1 }
 0x1c8   : > { %v7668_v24 = vadd.f32 %v1819_v35, %v7644_v48  ;;  %v4564_v53 = vadd.f32 %v4563_v21, %v4562_v41  ;;  %v5682_v21 = vpack.c.bf16 %v4083_v60, %v4082_v52 }
 0x1ca   : > { %v4565_v58 = vpop.f32.mrb[98].mxu1 }
 0x1cb   : > { %v4566_v8 = vpop.f32.mrb[99].mxu1 }
 0x1cc   : > { %v4567_v12 = vadd.f32 %v4566_v8, %v4565_v58  ;;  %v4084_v58 = vld [vmem:[%s8180_s7 + $0x130] sm:$0xff] }
 0x1ce   : > { %v4568_v9 = vpop.f32.mrb[100].mxu1 }
 0x1cf   : > { %v4569_v5 = vpop.f32.mrb[101].mxu1 }
 0x1d0   : > { %v4570_v42 = vadd.f32 %v4569_v5, %v4568_v9 }
 0x1d2   : > { %v4571_v61 = vpop.f32.mrb[102].mxu1 }
 0x1d3   : > { %v4572_v14 = vpop.f32.mrb[103].mxu1 }
 0x1d4   : > { %v4573_v51 = vadd.f32 %v4572_v14, %v4571_v61 }
 0x1d6   : > { %v4574_v23 = vpop.f32.mrb[104].mxu1 }
 0x1d7   : > { %v4575_v17 = vpop.f32.mrb[105].mxu1 }
 0x1d8   : > { %v4576_v4 = vadd.f32 %v4575_v17, %v4574_v23  ;;  %v4086_v17 = vld [vmem:[%s8180_s7 + $0x140] sm:$0xff] }
 0x1da   : > { %v4577_v38 = vpop.f32.mrb[106].mxu1 }
 0x1db   : > { %v4578_v25 = vpop.f32.mrb[107].mxu1 }
 0x1dc   : > { %v7670_v27 = vadd.f32 %v4578_v25, %v4577_v38 }
 0x1de   : > { %v4580_v26 = vpop.f32.mrb[108].mxu1 }
 0x1df   : > { %v4581_v48 = vpop.f32.mrb[109].mxu1 }
 0x1e0   : > { %v7672_v37 = vadd.f32 %v4581_v48, %v4580_v26 }
 0x1e2   : > { %v4583_v13 = vpop.f32.mrb[110].mxu1 }
 0x1e3   : > { %v4584_v2 = vpop.f32.mrb[111].mxu1 }
 0x1e4   : > { %v7674_v18 = vadd.f32 %v4584_v2, %v4583_v13 }
 0x1e6   : > { %v4618_v31 = vpop.f32.mrb[112].mxu1 }
 0x1e7   : > { %v4619_v6 = vpop.f32.mrb[113].mxu1 }
 0x1e8   : > { %v4620_v19 = vadd.f32 %v4619_v6, %v4618_v31 }
 0x1ea   : > { %v2323_v28 = vadd.f32 %v4620_v19, %v4564_v53  ;;  %v4621_v54 = vpop.f32.mrb[114].mxu1 }
 0x1eb   : > { %v4622_v34 = vpop.f32.mrb[115].mxu1 }
 0x1ec   : > { %v2361_v45 = vadd.f32 %v2323_v28, %v7647_v22  ;;  %v4623_v50 = vadd.f32 %v4622_v34, %v4621_v54  ;;  %v4089_v28 = vld [vmem:[%s8180_s7 + $0x158] sm:$0xff] }
 0x1ee   : > { %v2376_v62 = vmul.f32 %v7679_v33, %v2361_v45  ;;  %v2328_v43 = vadd.f32 %v4623_v50, %v4567_v12  ;;  %v4624_v40 = vpop.f32.mrb[116].mxu1 }
 0x1ef   : > { %v4625_v20 = vpop.f32.mrb[117].mxu1 }
 0x1f0   : > { %v2391_v22 = vadd.f32 %v7685_v36, %v2376_v62  ;;  %v2362_v32 = vadd.f32 %v2328_v43, %v7650_v0  ;;  %v4626_v7 = vadd.f32 %v4625_v20, %v4624_v40 }
 0x1f2   : > { %v7696_v10 = vmax.f32 %v2391_v22, 0.0  ;;  %v2377_v56 = vmul.f32 %v7679_v33, %v2362_v32  ;;  %v2333_v29 = vadd.f32 %v4626_v7, %v4570_v42  ;;  %v4627_v16 = vpop.f32.mrb[118].mxu1 }
 0x1f3   : > { %v4628_v11 = vpop.f32.mrb[119].mxu1 }
 0x1f4   : > { %2433 = vst [vmem:[#allocation3 + $0x11] sm:$0xff] %v7696_v10  ;;  %v2392_v0 = vadd.f32 %v7685_v36, %v2377_v56  ;;  %v2363_v44 = vadd.f32 %v2333_v29, %v7653_v57  ;;  %v4629_v63 = vadd.f32 %v4628_v11, %v4627_v16  ;;  %5003 = vmatmul.mubr.f32.vlgmr.msra.gmra.mrb[0].mxu0 %v7696_v10  ;;  %v4085_v57 = vld [vmem:[%s8180_s7 + $0x138] sm:$0xff] }
 0x1f5   : > { %5677 = vmatpush3.bf16.msra.mxu0 %v7619_v39  ;;  %v5686_v14 = vpack.c.bf16 %v4085_v57, %v4084_v58  ;;  %v4093_v11 = vld [vmem:[%s8180_s7 + $0x178] sm:$0xff]  ;;  %v4096_v58 = vld [vmem:[%s8180_s7 + $0x190] sm:$0xff] }
 0x1f6   : > { %v7710_v15 = vmax.f32 %v2392_v0, 0.0  ;;  %v2378_v55 = vmul.f32 %v7679_v33, %v2363_v44  ;;  %v2338_v35 = vadd.f32 %v4629_v63, %v4573_v51  ;;  %v4630_v41 = vpop.f32.mrb[120].mxu1  ;;  %5679 = vmatprep.subr.bf16.mxu0 %v5678_v49  ;;  %v2829_v63 = vld [vmem:[#allocation3 + $0x2] sm:$0xff] }
 0x1f7   : > { %v4631_v53 = vpop.f32.mrb[121].mxu1 }
 0x1f8   : > { %2434 = vst [vmem:[#allocation3 + $0x21] sm:$0xff] %v7710_v15  ;;  %v2393_v39 = vadd.f32 %v7685_v36, %v2378_v55  ;;  %v2364_v8 = vadd.f32 %v2338_v35, %v7656_v3  ;;  %v4632_v12 = vadd.f32 %v4631_v53, %v4630_v41  ;;  %5005 = vmatprep.mubr.f32.mxu0 %v7710_v15  ;;  %v4087_v3 = vld [vmem:[%s8180_s7 + $0x148] sm:$0xff]  ;;  %v4094_v35 = vld [vmem:[%s8180_s7 + $0x180] sm:$0xff] }
 0x1f9   : > { %5681 = vmatpush3.bf16.msra.mxu0 %v5678_v49  ;;  %v5690_v31 = vpack.c.bf16 %v4087_v3, %v4086_v17  ;;  %v4101_v17 = vld [vmem:[%s8180_s7 + $0x1b8] sm:$0xff] }
 0x1fa   : > { %v7723_v9 = vmax.f32 %v2393_v39, 0.0  ;;  %v2379_v5 = vmul.f32 %v7679_v33, %v2364_v8  ;;  %v2343_v42 = vadd.f32 %v4632_v12, %v4576_v4  ;;  %v4633_v61 = vpop.f32.mrb[122].mxu1  ;;  %5683 = vmatprep.subr.bf16.mxu0 %v5682_v21  ;;  %v4098_v39 = vld [vmem:[%s8180_s7 + $0x1a0] sm:$0xff] }
 0x1fb   : > { %v4634_v51 = vpop.f32.mrb[123].mxu1  ;;  %v7726_v23 = vld [vmem:[#allocation3 + $0x10] sm:$0xff] }
 0x1fc   : > { %2435 = vst [vmem:[#allocation3 + $0x31] sm:$0xff] %v7723_v9  ;;  %v2394_v38 = vadd.f32 %v7685_v36, %v2379_v5  ;;  %v2365_v4 = vadd.f32 %v2343_v42, %v7659_v30  ;;  %v4635_v25 = vadd.f32 %v4634_v51, %v4633_v61  ;;  %4915 = vmatmul.mubr.f32.vlgmr.msra.gmra.mrb[128].mxu1 %v7726_v23  ;;  %v4088_v30 = vld [vmem:[%s8180_s7 + $0x150] sm:$0xff]  ;;  %v4099_v5 = vld [vmem:[%s8180_s7 + $0x1a8] sm:$0xff] }
 0x1fd   : > { %5006 = vmatmul.mubr.f32.gmra.mrb[2].mxu0 %v7723_v9  ;;  %v5694_v40 = vpack.c.bf16 %v4089_v28, %v4088_v30  ;;  %v7822_v12 = vld [vmem:[#allocation3 + $0x12] sm:$0xff]  ;;  %v5714_v61 = vpack.c.bf16 %v4099_v5, %v4098_v39  ;;  %v4127_v39 = vld [vmem:[%s8180_s7 + $0x288] sm:$0xff] }
 0x1fe   : > { %5685 = vmatpush3.bf16.msra.mxu0 %v5682_v21  ;;  %v7739_v26 = vmax.f32 %v2394_v38, 0.0  ;;  %v2380_v48 = vmul.f32 %v7679_v33, %v2365_v4  ;;  %v2348_v13 = vadd.f32 %v4635_v25, %v7670_v27  ;;  %v4636_v2 = vpop.f32.mrb[124].mxu1  ;;  %v4100_v51 = vld [vmem:[%s8180_s7 + $0x1b0] sm:$0xff]  ;;  %v4102_v25 = vld [vmem:[%s8180_s7 + $0x1c0] sm:$0xff]  ;;  %v4105_v30 = vld [vmem:[%s8180_s7 + $0x1d8] sm:$0xff] }
 0x1ff   : > { %5687 = vmatprep.subr.bf16.mxu0 %v5686_v14  ;;  %v4637_v6 = vpop.f32.mrb[125].mxu1  ;;  %v7743_v19 = vld [vmem:[#allocation3 + $0x20] sm:$0xff]  ;;  %v5718_v38 = vpack.c.bf16 %v4101_v17, %v4100_v51  ;;  %v4129_v51 = vld [vmem:[%s8180_s7 + $0x298] sm:$0xff] }
 0x200   : > { %2436 = vst [vmem:[#allocation3 + $0x41] sm:$0xff] %v7739_v26  ;;  %v2395_v54 = vadd.f32 %v7685_v36, %v2380_v48  ;;  %v2366_v27 = vadd.f32 %v2348_v13, %v7662_v47  ;;  %v4638_v34 = vadd.f32 %v4637_v6, %v4636_v2  ;;  %4917 = vmatprep.mubr.f32.mxu1 %v7743_v19  ;;  %v4090_v47 = vld [vmem:[%s8180_s7 + $0x160] sm:$0xff]  ;;  %v4103_v48 = vld [vmem:[%s8180_s7 + $0x1c8] sm:$0xff]  ;;  %v4104_v6 = vld [vmem:[%s8180_s7 + $0x1d0] sm:$0xff] }
 0x201   : > { %5008 = vmatprep.mubr.f32.mxu0 %v7739_v26  ;;  %v5698_v16 = vpack.c.bf16 %v4091_v46, %v4090_v47  ;;  %v7829_v42 = vld [vmem:[#allocation3 + $0x22] sm:$0xff]  ;;  %v5722_v2 = vpack.c.bf16 %v4103_v48, %v4102_v25  ;;  %v5726_v28 = vpack.c.bf16 %v4105_v30, %v4104_v6  ;;  %v4112_v47 = vld [vmem:[%s8180_s7 + $0x210] sm:$0xff]  ;;  %v4113_v46 = vld [vmem:[%s8180_s7 + $0x218] sm:$0xff] }
 0x202   : > { %5689 = vmatpush3.bf16.msra.mxu0 %v5686_v14  ;;  %v7756_v45 = vmax.f32 %v2395_v54, 0.0  ;;  %v2381_v50 = vmul.f32 %v7679_v33, %v2366_v27  ;;  %v2353_v62 = vadd.f32 %v4638_v34, %v7672_v37  ;;  %v4639_v43 = vpop.f32.mrb[126].mxu1  ;;  %v4106_v54 = vld [vmem:[%s8180_s7 + $0x1e0] sm:$0xff]  ;;  %v4107_v27 = vld [vmem:[%s8180_s7 + $0x1e8] sm:$0xff]  ;;  %v4133_v6 = vld [vmem:[%s8180_s7 + $0x2b8] sm:$0xff] }
 0x203   : > { %5691 = vmatprep.subr.bf16.mxu0 %v5690_v31  ;;  %v4640_v20 = vpop.f32.mrb[127].mxu1  ;;  %v7760_v1 = vld [vmem:[#allocation3 + $0x30] sm:$0xff]  ;;  %v5730_v34 = vpack.c.bf16 %v4107_v27, %v4106_v54  ;;  %v4131_v25 = vld [vmem:[%s8180_s7 + $0x2a8] sm:$0xff] }
 0x204   : > { %2437 = vst [vmem:[#allocation3 + $0x51] sm:$0xff] %v7756_v45  ;;  %v2396_v22 = vadd.f32 %v7685_v36, %v2381_v50  ;;  %v2367_v37 = vadd.f32 %v2353_v62, %v7665_v59  ;;  %v4641_v32 = vadd.f32 %v4640_v20, %v4639_v43  ;;  %4918 = vmatmul.mubr.f32.gmra.mrb[130].mxu1 %v7760_v1  ;;  %v4092_v59 = vld [vmem:[%s8180_s7 + $0x170] sm:$0xff]  ;;  %v4110_v43 = vld [vmem:[%s8180_s7 + $0x200] sm:$0xff]  ;;  %v4135_v54 = vld [vmem:[%s8180_s7 + $0x2c8] sm:$0xff] }
 0x205   : > { %5009 = vmatmul.mubr.f32.gmra.mrb[4].mxu0 %v7756_v45  ;;  %v5702_v44 = vpack.c.bf16 %v4093_v11, %v4092_v59  ;;  %v7832_v14 = vld [vmem:[#allocation3 + $0x32] sm:$0xff]  ;;  %v4118_v11 = vld [vmem:[%s8180_s7 + $0x240] sm:$0xff] }
 0x206   : > { %5693 = vmatpush3.bf16.msra.mxu0 %v5690_v31  ;;  %v7773_v7 = vmax.f32 %v2396_v22, 0.0  ;;  %v2382_v56 = vmul.f32 %v7679_v33, %v2367_v37  ;;  %v2358_v29 = vadd.f32 %v4641_v32, %v7674_v18  ;;  %v4108_v50 = vld [vmem:[%s8180_s7 + $0x1f0] sm:$0xff]  ;;  %v5742_v22 = vpack.c.bf16 %v4113_v46, %v4112_v47  ;;  %v4114_v37 = vld [vmem:[%s8180_s7 + $0x220] sm:$0xff]  ;;  %v4115_v32 = vld [vmem:[%s8180_s7 + $0x228] sm:$0xff] }
 0x207   : > { %5695 = vmatprep.subr.bf16.mxu0 %v5694_v40  ;;  %v7777_v49 = vld [vmem:[#allocation3 + $0x40] sm:$0xff] }
 0x208   : > { %2438 = vst [vmem:[#allocation3 + $0x61] sm:$0xff] %v7773_v7  ;;  %v2397_v52 = vadd.f32 %v7685_v36, %v2382_v56  ;;  %v2368_v60 = vadd.f32 %v2358_v29, %v7668_v24  ;;  %4920 = vmatprep.mubr.f32.mxu1 %v7777_v49  ;;  %5011 = vmatprep.mubr.f32.mxu0 %v7773_v7  ;;  %v4095_v24 = vld [vmem:[%s8180_s7 + $0x188] sm:$0xff]  ;;  %v4116_v29 = vld [vmem:[%s8180_s7 + $0x230] sm:$0xff]  ;;  %v4142_v46 = vld [vmem:[%s8180_s7 + $0x300] sm:$0xff] }
 0x209   : > { %v5706_v21 = vpack.c.bf16 %v4095_v24, %v4094_v35  ;;  %v7841_v3 = vld [vmem:[#allocation3 + $0x42] sm:$0xff]  ;;  %v5746_v56 = vpack.c.bf16 %v4115_v32, %v4114_v37  ;;  %v4144_v32 = vld [vmem:[%s8180_s7 + $0x310] sm:$0xff] }
 0x20a   : > { %5697 = vmatpush3.bf16.msra.mxu0 %v5694_v40  ;;  %v7790_v18 = vmax.f32 %v2397_v52, 0.0  ;;  %v2383_v0 = vmul.f32 %v7679_v33, %v2368_v60  ;;  %v4111_v40 = vld [vmem:[%s8180_s7 + $0x208] sm:$0xff]  ;;  %v4122_v24 = vld [vmem:[%s8180_s7 + $0x260] sm:$0xff] }
 0x20b   : > { %5699 = vmatprep.subr.bf16.mxu0 %v5698_v16  ;;  %v7793_v55 = vld [vmem:[#allocation3 + $0x50] sm:$0xff]  ;;  %v5738_v20 = vpack.c.bf16 %v4111_v40, %v4110_v43  ;;  %v4119_v52 = vld [vmem:[%s8180_s7 + $0x248] sm:$0xff] }
 0x20c   : > { %2439 = vst [vmem:[#allocation3 + $0x71] sm:$0xff] %v7790_v18  ;;  %v2398_v41 = vadd.f32 %v7685_v36, %v2383_v0  ;;  %4921 = vmatmul.mubr.f32.gmra.mrb[132].mxu1 %v7793_v55  ;;  %5012 = vmatmul.mubr.f32.gmra.mrb[6].mxu0 %v7790_v18  ;;  %v4097_v36 = vld [vmem:[%s8180_s7 + $0x198] sm:$0xff]  ;;  %v5754_v60 = vpack.c.bf16 %v4119_v52, %v4118_v11  ;;  %v4139_v43 = vld [vmem:[%s8180_s7 + $0x2e8] sm:$0xff]  ;;  %v4148_v52 = vld [vmem:[%s8180_s7 + $0x330] sm:$0xff] }
 0x20d   : > { %5046 = vmatprep.mubr.f32.mxu0 %v2829_v63  ;;  %v5710_v57 = vpack.c.bf16 %v4097_v36, %v4096_v58  ;;  %v7844_v4 = vld [vmem:[#allocation3 + $0x52] sm:$0xff] }
 0x20e   : > { %5701 = vmatpush3.bf16.msra.mxu0 %v5698_v16  ;;  %v7805_v33 = vmax.f32 %v2398_v41, 0.0  ;;  %v4117_v16 = vld [vmem:[%s8180_s7 + $0x238] sm:$0xff]  ;;  %v4123_v41 = vld [vmem:[%s8180_s7 + $0x268] sm:$0xff]  ;;  %v4124_v58 = vld [vmem:[%s8180_s7 + $0x270] sm:$0xff] }
 0x20f   : > { %5703 = vmatprep.subr.bf16.mxu0 %v5702_v44  ;;  %v7807_v53 = vld [vmem:[#allocation3 + $0x60] sm:$0xff]  ;;  %v5750_v59 = vpack.c.bf16 %v4117_v16, %v4116_v29  ;;  %v4121_v63 = vld [vmem:[%s8180_s7 + $0x258] sm:$0xff] }
 0x210   : > { %2440 = vst [vmem:[#allocation3 + $0x81] sm:$0xff] %v7805_v33  ;;  %4923 = vmatprep.mubr.f32.mxu1 %v7807_v53  ;;  %v7853_v13 = vld [vmem:[#allocation3 + $0x62] sm:$0xff] }
 0x211   : > { %v4146_v16 = vld [vmem:[%s8180_s7 + $0x320] sm:$0xff] }
 0x212   : > { %5705 = vmatpush3.bf16.msra.mxu0 %v5702_v44  ;;  %v4120_v44 = vld [vmem:[%s8180_s7 + $0x250] sm:$0xff] }
 0x213   : > { %5707 = vmatprep.subr.bf16.mxu0 %v5706_v21  ;;  %v7820_v8 = vld [vmem:[#allocation3 + $0x70] sm:$0xff]  ;;  %v5758_v35 = vpack.c.bf16 %v4121_v63, %v4120_v44  ;;  %v4150_v63 = vld [vmem:[%s8180_s7 + $0x340] sm:$0xff] }
 0x214   : > { %4924 = vmatmul.mubr.f32.gmra.mrb[134].mxu1 %v7820_v8  ;;  %v7856_v31 = vld [vmem:[#allocation3 + $0x72] sm:$0xff] }
 0x215   : > { %5047 = vmatmul.mubr.f32.vlgmr.msra.gmra.mrb[0].mxu0 %v7822_v12 }
 0x216   : > { %5049 = vmatprep.mubr.f32.mxu0 %v7829_v42  ;;  %5709 = vmatpush3.bf16.msra.mxu0 %v5706_v21  ;;  %v5762_v21 = vpack.c.bf16 %v4123_v41, %v4122_v24 }
 0x217   : > { %5711 = vmatprep.subr.bf16.mxu0 %v5710_v57  ;;  %v7914_v0 = vld [vmem:[#allocation3 + $0x80] sm:$0xff] }
 0x218   : > { %v8028_v41 = vld [vmem:[#allocation3 + $0x82] sm:$0xff] }
 0x219   : > { %5050 = vmatmul.mubr.f32.gmra.mrb[2].mxu0 %v7832_v14 }
 0x21a   : > { %5052 = vmatprep.mubr.f32.mxu0 %v7841_v3  ;;  %5713 = vmatpush3.bf16.msra.mxu0 %v5710_v57  ;;  %v4126_v57 = vld [vmem:[%s8180_s7 + $0x280] sm:$0xff] }
 0x21b   : > { %5715 = vmatprep.subr.bf16.mxu0 %v5714_v61  ;;  %v5770_v5 = vpack.c.bf16 %v4127_v39, %v4126_v57  ;;  %v4155_v57 = vld [vmem:[%s8180_s7 + $0x368] sm:$0xff] }
 0x21d   : > { %5053 = vmatmul.mubr.f32.gmra.mrb[4].mxu0 %v7844_v4 }
 0x21e   : > { %5055 = vmatprep.mubr.f32.mxu0 %v7853_v13  ;;  %5717 = vmatpush3.bf16.msra.mxu0 %v5714_v61  ;;  %v4128_v61 = vld [vmem:[%s8180_s7 + $0x290] sm:$0xff] }
 0x21f   : > { %5719 = vmatprep.subr.bf16.mxu0 %v5718_v38  ;;  %v5774_v17 = vpack.c.bf16 %v4129_v51, %v4128_v61  ;;  %v4158_v51 = vld [vmem:[%s8180_s7 + $0x380] sm:$0xff] }
 0x221   : > { %5056 = vmatmul.mubr.f32.gmra.mrb[6].mxu0 %v7856_v31 }
 0x222   : > { %5721 = vmatpush3.bf16.msra.mxu0 %v5718_v38  ;;  %5090 = vmatprep.mubr.f32.mxu0 %v7726_v23  ;;  %v4109_v23 = vld [vmem:[%s8180_s7 + $0x1f8] sm:$0xff]  ;;  %v4130_v38 = vld [vmem:[%s8180_s7 + $0x2a0] sm:$0xff] }
 0x223   : > { %5723 = vmatprep.subr.bf16.mxu0 %v5722_v2  ;;  %v5734_v62 = vpack.c.bf16 %v4109_v23, %v4108_v50  ;;  %v5778_v48 = vpack.c.bf16 %v4131_v25, %v4130_v38  ;;  %v4137_v50 = vld [vmem:[%s8180_s7 + $0x2d8] sm:$0xff]  ;;  %v4160_v25 = vld [vmem:[%s8180_s7 + $0x390] sm:$0xff] }
 0x226   : > { %5725 = vmatpush3.bf16.msra.mxu0 %v5722_v2  ;;  %v4132_v2 = vld [vmem:[%s8180_s7 + $0x2b0] sm:$0xff] }
 0x227   : > { %5727 = vmatprep.subr.bf16.mxu0 %v5726_v28  ;;  %v5782_v30 = vpack.c.bf16 %v4133_v6, %v4132_v2  ;;  %v4162_v6 = vld [vmem:[%s8180_s7 + $0x3a0] sm:$0xff] }
 0x22a   : > { %5729 = vmatpush3.bf16.msra.mxu0 %v5726_v28  ;;  %v4134_v28 = vld [vmem:[%s8180_s7 + $0x2c0] sm:$0xff] }
 0x22b   : > { %5731 = vmatprep.subr.bf16.mxu0 %v5730_v34  ;;  %v5786_v27 = vpack.c.bf16 %v4135_v54, %v4134_v28  ;;  %v4164_v54 = vld [vmem:[%s8180_s7 + $0x3b0] sm:$0xff] }
 0x22e   : > { %5733 = vmatpush3.bf16.msra.mxu0 %v5730_v34  ;;  %v4136_v34 = vld [vmem:[%s8180_s7 + $0x2d0] sm:$0xff] }
 0x22f   : > { %5735 = vmatprep.subr.bf16.mxu0 %v5734_v62  ;;  %v5790_v23 = vpack.c.bf16 %v4137_v50, %v4136_v34  ;;  %v4167_v34 = vld [vmem:[%s8180_s7 + $0x3c8] sm:$0xff]  ;;  %v3389_v50 = vld [vmem:[#allocation3 + $0x90] sm:$0xff] }
 0x232   : > { %5737 = vmatpush3.bf16.msra.mxu0 %v5734_v62  ;;  %v4138_v62 = vld [vmem:[%s8180_s7 + $0x2e0] sm:$0xff] }
 0x233   : > { %5739 = vmatprep.subr.bf16.mxu0 %v5738_v20  ;;  %v5794_v40 = vpack.c.bf16 %v4139_v43, %v4138_v62  ;;  %v4171_v62 = vld [vmem:[%s8180_s7 + $0x3e8] sm:$0xff] }
 0x235   : > { %5091 = vmatmul.mubr.f32.vlgmr.msra.gmra.mrb[0].mxu0 %v7743_v19 }
 0x236   : > { %5093 = vmatprep.mubr.f32.mxu0 %v7760_v1  ;;  %5741 = vmatpush3.bf16.msra.mxu0 %v5738_v20  ;;  %v4140_v20 = vld [vmem:[%s8180_s7 + $0x2f0] sm:$0xff] }
 0x237   : > { %5743 = vmatprep.subr.bf16.mxu0 %v5742_v22 }
 0x239   : > { %5094 = vmatmul.mubr.f32.gmra.mrb[2].mxu0 %v7777_v49 }
 0x23a   : > { %5096 = vmatprep.mubr.f32.mxu0 %v7793_v55  ;;  %5745 = vmatpush3.bf16.msra.mxu0 %v5742_v22  ;;  %v4143_v22 = vld [vmem:[%s8180_s7 + $0x308] sm:$0xff] }
 0x23b   : > { %5747 = vmatprep.subr.bf16.mxu0 %v5746_v56  ;;  %v5802_v37 = vpack.c.bf16 %v4143_v22, %v4142_v46  ;;  %v4176_v22 = vld [vmem:[%s8180_s7 + $0x410] sm:$0xff] }
 0x23d   : > { %5097 = vmatmul.mubr.f32.gmra.mrb[4].mxu0 %v7807_v53 }
 0x23e   : > { %5099 = vmatprep.mubr.f32.mxu0 %v7820_v8  ;;  %5749 = vmatpush3.bf16.msra.mxu0 %v5746_v56  ;;  %v4145_v56 = vld [vmem:[%s8180_s7 + $0x318] sm:$0xff] }
 0x23f   : > { %5751 = vmatprep.subr.bf16.mxu0 %v5750_v59  ;;  %v5806_v29 = vpack.c.bf16 %v4145_v56, %v4144_v32  ;;  %v4178_v56 = vld [vmem:[%s8180_s7 + $0x420] sm:$0xff] }
 0x241   : > { %5100 = vmatmul.mubr.f32.gmra.mrb[6].mxu0 %v7914_v0 }
 0x242   : > { %5753 = vmatpush3.bf16.msra.mxu0 %v5750_v59  ;;  %5134 = vmatprep.mubr.f32.mxu0 %v7696_v10  ;;  %v4125_v10 = vld [vmem:[%s8180_s7 + $0x278] sm:$0xff]  ;;  %v4147_v59 = vld [vmem:[%s8180_s7 + $0x328] sm:$0xff] }
 0x243   : > { %5755 = vmatprep.subr.bf16.mxu0 %v5754_v60  ;;  %v5766_v36 = vpack.c.bf16 %v4125_v10, %v4124_v58  ;;  %v5810_v11 = vpack.c.bf16 %v4147_v59, %v4146_v16  ;;  %v4153_v58 = vld [vmem:[%s8180_s7 + $0x358] sm:$0xff]  ;;  %v4180_v59 = vld [vmem:[%s8180_s7 + $0x430] sm:$0xff] }
 0x246   : > { %5757 = vmatpush3.bf16.msra.mxu0 %v5754_v60  ;;  %v4149_v60 = vld [vmem:[%s8180_s7 + $0x338] sm:$0xff] }
 0x247   : > { %5759 = vmatprep.subr.bf16.mxu0 %v5758_v35  ;;  %v5814_v44 = vpack.c.bf16 %v4149_v60, %v4148_v52  ;;  %v4183_v52 = vld [vmem:[%s8180_s7 + $0x448] sm:$0xff]  ;;  %v3527_v60 = vld [vmem:[#allocation3 + $0x91] sm:$0xff] }
 0x24a   : > { %5761 = vmatpush3.bf16.msra.mxu0 %v5758_v35  ;;  %v4151_v35 = vld [vmem:[%s8180_s7 + $0x348] sm:$0xff] }
 0x24b   : > { %5763 = vmatprep.subr.bf16.mxu0 %v5762_v21  ;;  %v5818_v24 = vpack.c.bf16 %v4151_v35, %v4150_v63  ;;  %v4187_v63 = vld [vmem:[%s8180_s7 + $0x468] sm:$0xff] }
 0x24e   : > { %5765 = vmatpush3.bf16.msra.mxu0 %v5762_v21  ;;  %v4152_v21 = vld [vmem:[%s8180_s7 + $0x350] sm:$0xff] }
 0x24f   : > { %5767 = vmatprep.subr.bf16.mxu0 %v5766_v36  ;;  %v5822_v10 = vpack.c.bf16 %v4153_v58, %v4152_v21 }
 0x252   : > { %5769 = vmatpush3.bf16.msra.mxu0 %v5766_v36  ;;  %v4154_v36 = vld [vmem:[%s8180_s7 + $0x360] sm:$0xff] }
 0x253   : > { %5771 = vmatprep.subr.bf16.mxu0 %v5770_v5  ;;  %v5826_v39 = vpack.c.bf16 %v4155_v57, %v4154_v36 }
 0x255   : > { %5135 = vmatmul.mubr.f32.vlgmr.msra.gmra.mrb[0].mxu0 %v7710_v15 }
 0x256   : > { %5137 = vmatprep.mubr.f32.mxu0 %v7723_v9  ;;  %5773 = vmatpush3.bf16.msra.mxu0 %v5770_v5  ;;  %v4156_v5 = vld [vmem:[%s8180_s7 + $0x370] sm:$0xff] }
 0x257   : > { %5775 = vmatprep.subr.bf16.mxu0 %v5774_v17 }
 0x259   : > { %5138 = vmatmul.mubr.f32.gmra.mrb[2].mxu0 %v7739_v26 }
 0x25a   : > { %5140 = vmatprep.mubr.f32.mxu0 %v7756_v45  ;;  %5777 = vmatpush3.bf16.msra.mxu0 %v5774_v17  ;;  %v4159_v17 = vld [vmem:[%s8180_s7 + $0x388] sm:$0xff] }
 0x25b   : > { %5779 = vmatprep.subr.bf16.mxu0 %v5778_v48  ;;  %v5834_v38 = vpack.c.bf16 %v4159_v17, %v4158_v51 }
 0x25d   : > { %5141 = vmatmul.mubr.f32.gmra.mrb[4].mxu0 %v7773_v7 }
 0x25e   : > { %5143 = vmatprep.mubr.f32.mxu0 %v7790_v18  ;;  %5781 = vmatpush3.bf16.msra.mxu0 %v5778_v48  ;;  %v4161_v48 = vld [vmem:[%s8180_s7 + $0x398] sm:$0xff] }
 0x25f   : > { %5783 = vmatprep.subr.bf16.mxu0 %v5782_v30  ;;  %v5838_v2 = vpack.c.bf16 %v4161_v48, %v4160_v25 }
 0x261   : > { %5144 = vmatmul.mubr.f32.gmra.mrb[6].mxu0 %v7805_v33 }
 0x262   : > { %5785 = vmatpush3.bf16.msra.mxu0 %v5782_v30  ;;  %5178 = vmatprep.mubr.f32.mxu0 %v7822_v12  ;;  %v4141_v12 = vld [vmem:[%s8180_s7 + $0x2f8] sm:$0xff]  ;;  %v4163_v30 = vld [vmem:[%s8180_s7 + $0x3a8] sm:$0xff] }
 0x263   : > { %5787 = vmatprep.subr.bf16.mxu0 %v5786_v27  ;;  %v5798_v47 = vpack.c.bf16 %v4141_v12, %v4140_v20  ;;  %v5842_v28 = vpack.c.bf16 %v4163_v30, %v4162_v6  ;;  %v4174_v12 = vld [vmem:[%s8180_s7 + $0x400] sm:$0xff] }
 0x266   : > { %5789 = vmatpush3.bf16.msra.mxu0 %v5786_v27  ;;  %v4165_v27 = vld [vmem:[%s8180_s7 + $0x3b8] sm:$0xff] }
 0x267   : > { %5791 = vmatprep.subr.bf16.mxu0 %v5790_v23 }
 0x26a   : > { %5793 = vmatpush3.bf16.msra.mxu0 %v5790_v23  ;;  %v4169_v23 = vld [vmem:[%s8180_s7 + $0x3d8] sm:$0xff] }
 0x26b   : > { %5795 = vmatprep.subr.bf16.mxu0 %v5794_v40 }
 0x26e   : > { %5797 = vmatpush3.bf16.msra.mxu0 %v5794_v40  ;;  %v4172_v40 = vld [vmem:[%s8180_s7 + $0x3f0] sm:$0xff] }
 0x26f   : > { %5799 = vmatprep.subr.bf16.mxu0 %v5798_v47 }
 0x272   : > { %5801 = vmatpush3.bf16.msra.mxu0 %v5798_v47  ;;  %v4175_v47 = vld [vmem:[%s8180_s7 + $0x408] sm:$0xff] }
 0x273   : > { %5803 = vmatprep.subr.bf16.mxu0 %v5802_v37  ;;  %v5866_v46 = vpack.c.bf16 %v4175_v47, %v4174_v12 }
 0x275   : > { %5179 = vmatmul.mubr.f32.vlgmr.msra.gmra.mrb[0].mxu0 %v7829_v42 }
 0x276   : > { %5181 = vmatprep.mubr.f32.mxu0 %v7832_v14  ;;  %5805 = vmatpush3.bf16.msra.mxu0 %v5802_v37  ;;  %v4177_v37 = vld [vmem:[%s8180_s7 + $0x418] sm:$0xff] }
 0x277   : > { %5807 = vmatprep.subr.bf16.mxu0 %v5806_v29  ;;  %v5870_v32 = vpack.c.bf16 %v4177_v37, %v4176_v22 }
 0x279   : > { %5182 = vmatmul.mubr.f32.gmra.mrb[2].mxu0 %v7841_v3 }
 0x27a   : > { %5184 = vmatprep.mubr.f32.mxu0 %v7844_v4  ;;  %5809 = vmatpush3.bf16.msra.mxu0 %v5806_v29  ;;  %v4179_v29 = vld [vmem:[%s8180_s7 + $0x428] sm:$0xff] }
 0x27b   : > { %5811 = vmatprep.subr.bf16.mxu0 %v5810_v11  ;;  %v5874_v16 = vpack.c.bf16 %v4179_v29, %v4178_v56 }
 0x27d   : > { %5185 = vmatmul.mubr.f32.gmra.mrb[4].mxu0 %v7853_v13 }
 0x27e   : > { %5187 = vmatprep.mubr.f32.mxu0 %v7856_v31  ;;  %5813 = vmatpush3.bf16.msra.mxu0 %v5810_v11  ;;  %v4181_v11 = vld [vmem:[%s8180_s7 + $0x438] sm:$0xff] }
 0x27f   : > { %5815 = vmatprep.subr.bf16.mxu0 %v5814_v44 }
 0x281   : > { %5188 = vmatmul.mubr.f32.gmra.mrb[6].mxu0 %v8028_v41 }
 0x282   : > { %5817 = vmatpush3.bf16.msra.mxu0 %v5814_v44  ;;  %5222 = vmatprep.mubr.f32.mxu0 %v7743_v19  ;;  %v4157_v19 = vld [vmem:[%s8180_s7 + $0x378] sm:$0xff] }
 0x283   : > { %5819 = vmatprep.subr.bf16.mxu0 %v5818_v24  ;;  %v5830_v61 = vpack.c.bf16 %v4157_v19, %v4156_v5  ;;  %v4185_v44 = vld [vmem:[%s8180_s7 + $0x458] sm:$0xff] }
 0x286   : > { %5821 = vmatpush3.bf16.msra.mxu0 %v5818_v24  ;;  %v4188_v24 = vld [vmem:[%s8180_s7 + $0x470] sm:$0xff] }
 0x287   : > { %5823 = vmatprep.subr.bf16.mxu0 %v5822_v10 }
 0x28a   : > { %5825 = vmatpush3.bf16.msra.mxu0 %v5822_v10 }
 0x28b   : > { %5827 = vmatprep.subr.bf16.mxu0 %v5826_v39 }
 0x28e   : > { %5829 = vmatpush3.bf16.msra.mxu0 %v5826_v39  ;;  %v3665_v39 = vld [vmem:[#allocation3 + $0x92] sm:$0xff] }
 0x28f   : > { %5831 = vmatprep.subr.bf16.mxu0 %v5830_v61 }
 0x292   : > { %5833 = vmatpush3.bf16.msra.mxu0 %v5830_v61 }
 0x293   : > { %5835 = vmatprep.subr.bf16.mxu0 %v5834_v38 }
 0x295   : > { %5223 = vmatmul.mubr.f32.vlgmr.msra.gmra.mrb[0].mxu0 %v7760_v1  ;;  %v5846_v1 = vpack.c.bf16 %v4165_v27, %v4164_v54 }
 0x296   : > { %5225 = vmatprep.mubr.f32.mxu0 %v7777_v49  ;;  %5837 = vmatpush3.bf16.msra.mxu0 %v5834_v38  ;;  %v4166_v49 = vld [vmem:[%s8180_s7 + $0x3c0] sm:$0xff] }
 0x297   : > { %5839 = vmatprep.subr.bf16.mxu0 %v5838_v2 }
 0x299   : > { %5226 = vmatmul.mubr.f32.gmra.mrb[2].mxu0 %v7793_v55  ;;  %v5850_v55 = vpack.c.bf16 %v4167_v34, %v4166_v49 }
 0x29a   : > { %5228 = vmatprep.mubr.f32.mxu0 %v7807_v53  ;;  %5841 = vmatpush3.bf16.msra.mxu0 %v5838_v2  ;;  %v4168_v53 = vld [vmem:[%s8180_s7 + $0x3d0] sm:$0xff] }
 0x29b   : > { %5843 = vmatprep.subr.bf16.mxu0 %v5842_v28 }
 0x29d   : > { %5229 = vmatmul.mubr.f32.gmra.mrb[4].mxu0 %v7820_v8  ;;  %v5854_v8 = vpack.c.bf16 %v4169_v23, %v4168_v53 }
 0x29e   : > { %5231 = vmatprep.mubr.f32.mxu0 %v7914_v0  ;;  %5845 = vmatpush3.bf16.msra.mxu0 %v5842_v28  ;;  %v4170_v0 = vld [vmem:[%s8180_s7 + $0x3e0] sm:$0xff] }
 0x29f   : > { %5847 = vmatprep.subr.bf16.mxu0 %v5846_v1  ;;  %v5858_v43 = vpack.c.bf16 %v4171_v62, %v4170_v0 }
 0x2a1   : > { %5232 = vmatmul.mubr.f32.gmra.mrb[6].mxu0 %v3389_v50 }
 0x2a2   : > { %5849 = vmatpush3.bf16.msra.mxu0 %v5846_v1  ;;  %5266 = vmatprep.mubr.f32.mxu0 %v7710_v15  ;;  %v4173_v15 = vld [vmem:[%s8180_s7 + $0x3f8] sm:$0xff] }
 0x2a3   : > { %5851 = vmatprep.subr.bf16.mxu0 %v5850_v55  ;;  %v5862_v20 = vpack.c.bf16 %v4173_v15, %v4172_v40 }
 0x2a6   : > { %5853 = vmatpush3.bf16.msra.mxu0 %v5850_v55 }
 0x2a7   : > { %5855 = vmatprep.subr.bf16.mxu0 %v5854_v8 }
 0x2aa   : > { %5857 = vmatpush3.bf16.msra.mxu0 %v5854_v8 }
 0x2ab   : > { %5859 = vmatprep.subr.bf16.mxu0 %v5858_v43 }
 0x2ae   : > { %5861 = vmatpush3.bf16.msra.mxu0 %v5858_v43 }
 0x2af   : > { %5863 = vmatprep.subr.bf16.mxu0 %v5862_v20 }
 0x2b2   : > { %5865 = vmatpush3.bf16.msra.mxu0 %v5862_v20 }
 0x2b3   : > { %5867 = vmatprep.subr.bf16.mxu0 %v5866_v46 }
 0x2b5   : > { %5267 = vmatmul.mubr.f32.vlgmr.msra.gmra.mrb[0].mxu0 %v7723_v9  ;;  %v5878_v9 = vpack.c.bf16 %v4181_v11, %v4180_v59 }
 0x2b6   : > { %5269 = vmatprep.mubr.f32.mxu0 %v7739_v26  ;;  %5869 = vmatpush3.bf16.msra.mxu0 %v5866_v46  ;;  %v4182_v26 = vld [vmem:[%s8180_s7 + $0x440] sm:$0xff] }
 0x2b7   : > { %5871 = vmatprep.subr.bf16.mxu0 %v5870_v32 }
 0x2b9   : > { %5270 = vmatmul.mubr.f32.gmra.mrb[2].mxu0 %v7756_v45  ;;  %v5882_v45 = vpack.c.bf16 %v4183_v52, %v4182_v26 }
 0x2ba   : > { %5272 = vmatprep.mubr.f32.mxu0 %v7773_v7  ;;  %5873 = vmatpush3.bf16.msra.mxu0 %v5870_v32  ;;  %v4184_v7 = vld [vmem:[%s8180_s7 + $0x450] sm:$0xff] }
 0x2bb   : > { %5875 = vmatprep.subr.bf16.mxu0 %v5874_v16 }
 0x2bd   : > { %5273 = vmatmul.mubr.f32.gmra.mrb[4].mxu0 %v7790_v18  ;;  %v5886_v18 = vpack.c.bf16 %v4185_v44, %v4184_v7 }
 0x2be   : > { %5275 = vmatprep.mubr.f32.mxu0 %v7805_v33  ;;  %5877 = vmatpush3.bf16.msra.mxu0 %v5874_v16  ;;  %v4186_v33 = vld [vmem:[%s8180_s7 + $0x460] sm:$0xff] }
 0x2bf   : > { %5879 = vmatprep.subr.bf16.mxu0 %v5878_v9  ;;  %v5890_v35 = vpack.c.bf16 %v4187_v63, %v4186_v33 }
 0x2c1   : > { %5276 = vmatmul.mubr.f32.gmra.mrb[6].mxu0 %v3527_v60 }
 0x2c2   : > { %5881 = vmatpush3.bf16.msra.mxu0 %v5878_v9  ;;  %5310 = vmatprep.mubr.f32.mxu0 %v7829_v42  ;;  %v4189_v42 = vld [vmem:[%s8180_s7 + $0x478] sm:$0xff] }
 0x2c3   : > { %5883 = vmatprep.subr.bf16.mxu0 %v5882_v45  ;;  %v5894_v21 = vpack.c.bf16 %v4189_v42, %v4188_v24 }
 0x2c6   : > { %5885 = vmatpush3.bf16.msra.mxu0 %v5882_v45 }
 0x2c7   : > { %5887 = vmatprep.subr.bf16.mxu0 %v5886_v18 }
 0x2ca   : > { %5889 = vmatpush3.bf16.msra.mxu0 %v5886_v18 }
 0x2cb   : > { %5891 = vmatprep.subr.bf16.mxu0 %v5890_v35 }
 0x2ce   : > { %5893 = vmatpush3.bf16.msra.mxu0 %v5890_v35 }
 0x2cf   : > { %5895 = vmatprep.subr.bf16.mxu0 %v5894_v21  ;;  %v4916_v58 = vpop.f32.mrb[128].mxu1 }
 0x2d0   : > { %v2547_v10 = vpop.f32.mrb[129].mxu1 }
 0x2d2   : > { %5897 = vmatpush3.bf16.msra.mxu0 %v5894_v21 }
 0x2d5   : > { %5311 = vmatmul.mubr.f32.vlgmr.msra.gmra.mrb[0].mxu0 %v7832_v14 }
 0x2d6   : > { %5313 = vmatprep.mubr.f32.mxu0 %v7841_v3 }
 0x2d7   : > { %v4919_v36 = vpop.f32.mrb[130].mxu1 }
 0x2d8   : > { %v2557_v57 = vpop.f32.mrb[131].mxu1 }
 0x2d9   : > { %5314 = vmatmul.mubr.f32.gmra.mrb[2].mxu0 %v7844_v4 }
 0x2da   : > { %5316 = vmatprep.mubr.f32.mxu0 %v7853_v13 }
 0x2dd   : > { %5317 = vmatmul.mubr.f32.gmra.mrb[4].mxu0 %v7856_v31 }
 0x2de   : > { %5319 = vmatprep.mubr.f32.mxu0 %v8028_v41 }
 0x2df   : > { %v4922_v5 = vpop.f32.mrb[132].mxu1 }
 0x2e0   : > { %v2567_v19 = vpop.f32.mrb[133].mxu1 }
 0x2e1   : > { %5320 = vmatmul.mubr.f32.gmra.mrb[6].mxu0 %v3665_v39 }
 0x2e7   : > { %v4925_v61 = vpop.f32.mrb[134].mxu1 }
 0x2e8   : > { %v2577_v51 = vpop.f32.mrb[135].mxu1 }
 0x3a8   : > { %v5312_v14 = vpop.f32.mrb[0].mxu0 }
 0x3a9   : > { %v5898_v3 = vadd.f32 %v5312_v14, %v4916_v58  ;;  %v3749_v4 = vpop.f32.mrb[1].mxu0 }
 0x3aa   : > { %v5899_v17 = vadd.f32 %v3749_v4, %v2547_v10 }
 0x3ab   : > { %3797 = vst [vmem:[%s305_s26 + $0x8] sm:$0xff] %v5898_v3 }
 0x3ac   : > { %3796 = vst [vmem:[%s305_s26] sm:$0xff] %v5899_v17  ;;  %v5315_v13 = vpop.f32.mrb[2].mxu0 }
 0x3ad   : > { %v5900_v31 = vadd.f32 %v5315_v13, %v4919_v36  ;;  %v3759_v41 = vpop.f32.mrb[3].mxu0 }
 0x3ae   : > { %v5901_v38 = vadd.f32 %v3759_v41, %v2557_v57 }
 0x3af   : > { %3799 = vst [vmem:[%s305_s26 + $0x18] sm:$0xff] %v5900_v31 }
 0x3b0   : > { %3798 = vst [vmem:[%s305_s26 + $0x10] sm:$0xff] %v5901_v38  ;;  %v5318_v25 = vpop.f32.mrb[4].mxu0 }
 0x3b1   : > { %v5902_v48 = vadd.f32 %v5318_v25, %v4922_v5  ;;  %v3769_v2 = vpop.f32.mrb[5].mxu0 }
 0x3b2   : > { %v5903_v6 = vadd.f32 %v3769_v2, %v2567_v19 }
 0x3b3   : > { %3801 = vst [vmem:[%s305_s26 + $0x28] sm:$0xff] %v5902_v48 }
 0x3b4   : > { %3800 = vst [vmem:[%s305_s26 + $0x20] sm:$0xff] %v5903_v6  ;;  %v5321_v30 = vpop.f32.mrb[6].mxu0 }
 0x3b5   : > { %v5904_v28 = vadd.f32 %v5321_v30, %v4925_v61  ;;  %v3779_v54 = vpop.f32.mrb[7].mxu0 }
 0x3b6   : > { %v5905_v27 = vadd.f32 %v3779_v54, %v2577_v51 }
 0x3b7   : > { %3803 = vst [vmem:[%s305_s26 + $0x38] sm:$0xff] %v5904_v28 }
 0x3b8   : > { %3802 = vst [vmem:[%s305_s26 + $0x30] sm:$0xff] %v5905_v27 }
 0x3b9 PF: > { %s18_s27 = sadd.s32 1, %s5985_s27  }
 0x3ba   : > { %p15_p4 = scmp.ge.s32.totalorder %s18_s27, 4  }
 0x3bc   :  { %17 = sbr.rel (!%p15_p4) target bundleno = 1 (0x1), region = 105 }

</bundles_post_ra>
